<compile_context>
chip_gen: v7x
topology: tpu7x:2x2x1
jax: 0.10.0
libtpu: 0.0.40
codegen_flags: <defaults>
</compile_context>

<pallas_src>
import math

import jax
import jax.numpy as jnp
from jax.experimental import pallas as pl
from jax.experimental.pallas import tpu as pltpu


# ----------------------------------------------------------------------------
# helpers (match the PyTorch reference)
# ----------------------------------------------------------------------------
def _make_divisible(v, divisor, min_value=None):
    if min_value is None:
        min_value = divisor
    new_v = max(min_value, int(v + divisor / 2) // divisor * divisor)
    if new_v < 0.9 * v:
        new_v += divisor
    return new_v


def _apply_act(y, act):
    # act is a static Python string -> resolved at trace time; f32 math (VPU).
    if act == "relu":
        return jnp.maximum(y, 0.0)
    if act == "hswish":
        return y * (jnp.clip(y + 3.0, 0.0, 6.0) * (1.0 / 6.0))
    if act == "hsigmoid":
        return jnp.clip(y + 3.0, 0.0, 6.0) * (1.0 / 6.0)
    return y  # "none"


def _tile_rows(m, cap=2048):
    """Row tile for a folded (M, C) matmul: full M if small, else a
    multiple-of-8 divisor of M (bf16 blocks keep this well inside VMEM)."""
    if m <= cap:
        return m
    t = (cap // 8) * 8
    while t >= 8:
        if m % t == 0:
            return t
        t -= 8
    # TODO(synk): pad-and-mask fallback for M with no multiple-of-8 divisor.
    return m


def _tile_hw(hw, cap=2048):
    if hw <= cap:
        return hw
    t = (cap // 8) * 8
    while t >= 8:
        if hw % t == 0:
            return t
        t -= 8
    return hw


def _dw_row_tile(ho, wo, c, budget_bytes=1 << 20):
    """Output-row tile for the depthwise conv so the f32 accumulator stays
    small (vreg-resident) instead of spilling through VMEM every tap."""
    if ho * wo * c * 4 <= budget_bytes:
        return ho
    for t in range(min(ho, 16), 0, -1):
        if ho % t == 0 and t * wo * c * 4 <= budget_bytes:
            return t
    return 1


# ----------------------------------------------------------------------------
# shared in-kernel math
# ----------------------------------------------------------------------------
def _conv_body(xv, w_ref, sc_ref, bi_ref, pre_act, post_act, gate=None, res=None):
    """(optional gate) -> pre_act -> bf16 MXU matmul (f32 acc) -> folded BN
       -> post_act -> (optional residual add).  Epilogue stays in f32."""
    if gate is not None:
        xv = xv.astype(jnp.float32) * gate
    if pre_act != "none":
        xv = _apply_act(xv.astype(jnp.float32), pre_act)
    y = jnp.dot(xv.astype(jnp.bfloat16), w_ref[...],
                preferred_element_type=jnp.float32)
    y = y * sc_ref[...] + bi_ref[...]
    y = _apply_act(y, post_act)
    if res is not None:
        y = y + res.astype(jnp.float32)
    return y


def _se_gate_from_refs(p, w1_ref, b1_ref, w2_ref, b2_ref):
    """SE gate: relu(p @ w1 + b1) @ w2 + b2 -> hsigmoid.  Tiny f32 matmuls."""
    h = jnp.dot(p, w1_ref[...], preferred_element_type=jnp.float32) + b1_ref[...]
    h = jnp.maximum(h, 0.0)
    g = jnp.dot(h, w2_ref[...], preferred_element_type=jnp.float32) + b2_ref[...]
    return jnp.clip(g + 3.0, 0.0, 6.0) * (1.0 / 6.0)


# ----------------------------------------------------------------------------
# Pallas kernels
# ----------------------------------------------------------------------------
def _make_conv2d_kernel(has_res, pre_act, post_act):
    """1x1 conv on a folded (M, Cin) activation; optional residual add."""
    if has_res:
        def kern(x_ref, w_ref, sc_ref, bi_ref, r_ref, o_ref):
            y = _conv_body(x_ref[...], w_ref, sc_ref, bi_ref,
                           pre_act, post_act, res=r_ref[...])
            o_ref[...] = y.astype(o_ref.dtype)
    else:
        def kern(x_ref, w_ref, sc_ref, bi_ref, o_ref):
            y = _conv_body(x_ref[...], w_ref, sc_ref, bi_ref,
                           pre_act, post_act)
            o_ref[...] = y.astype(o_ref.dtype)
    return kern


def _make_conv_se_kernel(has_res, pre_act, post_act):
    """Projection conv with the SE gate fused in (per-image 3-D layout)."""
    if has_res:
        def kern(x_ref, w_ref, sc_ref, bi_ref, p_ref,
                 w1_ref, b1_ref, w2_ref, b2_ref, r_ref, o_ref):
            g = _se_gate_from_refs(p_ref[0], w1_ref, b1_ref, w2_ref, b2_ref)
            y = _conv_body(x_ref[0], w_ref, sc_ref, bi_ref,
                           pre_act, post_act, gate=g, res=r_ref[0])
            o_ref[0] = y.astype(o_ref.dtype)
    else:
        def kern(x_ref, w_ref, sc_ref, bi_ref, p_ref,
                 w1_ref, b1_ref, w2_ref, b2_ref, o_ref):
            g = _se_gate_from_refs(p_ref[0], w1_ref, b1_ref, w2_ref, b2_ref)
            y = _conv_body(x_ref[0], w_ref, sc_ref, bi_ref,
                           pre_act, post_act, gate=g)
            o_ref[0] = y.astype(o_ref.dtype)
    return kern


def _make_dw_kernel(k, s, tr, ho, wo, act):
    """Row-tiled depthwise conv on (phase-split when stride>1) padded input.

    x_ref block: (1, s*s, hps, wps, C).  The kernel does k*k shifted
    multiply-adds into a (tr, wo, C) f32 accumulator, applies folded BN + act,
    and accumulates the per-image spatial mean (for SE) into the resident
    pooled-output block across row tiles.
    """
    inv_hw = 1.0 / float(ho * wo)

    def kernel(x_ref, w_ref, sc_ref, bi_ref, o_ref, p_ref):
        j = pl.program_id(1)
        r0 = pl.multiple_of(j * tr, tr)
        wv = w_ref[...]                               # (k*k, 1, C) f32
        c = o_ref.shape[-1]
        acc = jnp.zeros((tr, wo, c), jnp.float32)
        for dy in range(k):
            qy = dy // s
            for pw in range(s):                        # dx % s phase
                ph = (dy % s) * s + pw
                rows = x_ref[0, ph, pl.ds(r0 + qy, tr), :, :].astype(jnp.float32)
                for dx in range(pw, k, s):
                    qx = dx // s
                    acc = acc + rows[:, qx:qx + wo, :] * wv[dy * k + dx]
        y = acc * sc_ref[...] + bi_ref[...]
        y = _apply_act(y, act)
        o_ref[0] = y.astype(o_ref.dtype)
        psum = jnp.sum(jnp.sum(y, axis=0), axis=0, keepdims=True) * inv_hw

        @pl.when(j == 0)
        def _():
            p_ref[0] = psum

        @pl.when(j > 0)
        def _():
            p_ref[0] = p_ref[0] + psum

    return kernel


def _make_classifier_kernel(hw):
    """Fused global-avg-pool + Linear + h_swish + (Dropout=id) + Linear."""
    inv = 1.0 / float(hw)

    def kernel(x_ref, w1_ref, b1_ref, w2_ref, b2_ref, o_ref):
        xs = jnp.sum(x_ref[...].astype(jnp.float32), axis=1) * inv     # (N, C)
        h = jnp.dot(xs.astype(jnp.bfloat16), w1_ref[...],
                    preferred_element_type=jnp.float32) + b1_ref[...]
        h = _apply_act(h, "hswish")
        o = jnp.dot(h.astype(jnp.bfloat16), w2_ref[...],
                    preferred_element_type=jnp.float32) + b2_ref[...]
        o_ref[...] = o.astype(o_ref.dtype)

    return kernel


# ----------------------------------------------------------------------------
# Pallas wrappers
# ----------------------------------------------------------------------------
def conv1x1(x2, w, scale, bias, *, residual=None, pre_act="none",
            post_act="none", out_dtype=jnp.bfloat16):
    """x2: (M, Cin) with batch folded into M, w: (Cin, Cout) bf16."""
    m, cin = x2.shape
    cout = w.shape[1]
    tm = _tile_rows(m)
    grid = (m // tm,)

    in_specs = [
        pl.BlockSpec((tm, cin), lambda j: (j, 0)),
        pl.BlockSpec((cin, cout), lambda j: (0, 0)),
        pl.BlockSpec((1, cout), lambda j: (0, 0)),
        pl.BlockSpec((1, cout), lambda j: (0, 0)),
    ]
    args = [x2, w, scale.reshape(1, cout), bias.reshape(1, cout)]
    if residual is not None:
        in_specs.append(pl.BlockSpec((tm, cout), lambda j: (j, 0)))
        args.append(residual)

    kern = _make_conv2d_kernel(residual is not None, pre_act, post_act)
    return pl.pallas_call(
        kern,
        out_shape=jax.ShapeDtypeStruct((m, cout), out_dtype),
        grid=grid,
        in_specs=in_specs,
        out_specs=pl.BlockSpec((tm, cout), lambda j: (j, 0)),
        compiler_params=pltpu.CompilerParams(dimension_semantics=("parallel",)),
    )(*args)


def conv1x1_se(x3, w, scale, bias, pooled, se, *, residual=None,
               pre_act="none", post_act="none", out_dtype=jnp.bfloat16):
    """Projection conv with fused SE gate.  x3: (N, HW, Cin) per-image layout,
    pooled: (N, 1, Cin) f32 spatial mean produced by the depthwise kernel."""
    n, hw, cin = x3.shape
    cout = w.shape[1]
    thw = _tile_hw(hw)
    grid = (n, hw // thw)
    cr = se["w1"].shape[1]

    in_specs = [
        pl.BlockSpec((1, thw, cin), lambda i, j: (i, j, 0)),
        pl.BlockSpec((cin, cout), lambda i, j: (0, 0)),
        pl.BlockSpec((1, cout), lambda i, j: (0, 0)),
        pl.BlockSpec((1, cout), lambda i, j: (0, 0)),
        pl.BlockSpec((1, 1, cin), lambda i, j: (i, 0, 0)),
        pl.BlockSpec((cin, cr), lambda i, j: (0, 0)),
        pl.BlockSpec((1, cr), lambda i, j: (0, 0)),
        pl.BlockSpec((cr, cin), lambda i, j: (0, 0)),
        pl.BlockSpec((1, cin), lambda i, j: (0, 0)),
    ]
    args = [x3, w, scale.reshape(1, cout), bias.reshape(1, cout),
            pooled, se["w1"], se["b1"].reshape(1, cr),
            se["w2"], se["b2"].reshape(1, cin)]
    if residual is not None:
        in_specs.append(pl.BlockSpec((1, thw, cout), lambda i, j: (i, j, 0)))
        args.append(residual)

    kern = _make_conv_se_kernel(residual is not None, pre_act, post_act)
    return pl.pallas_call(
        kern,
        out_shape=jax.ShapeDtypeStruct((n, hw, cout), out_dtype),
        grid=grid,
        in_specs=in_specs,
        out_specs=pl.BlockSpec((1, thw, cout), lambda i, j: (i, j, 0)),
        compiler_params=pltpu.CompilerParams(
            dimension_semantics=("parallel", "parallel")),
    )(*args)


def dwconv_bn_act(x, w_khwc, scale, bias, stride, act):
    """Depthwise conv + folded BN + act, fully in-kernel (no im2col blow-up).
    Returns (y, pooled) where pooled is the per-image spatial mean of y.
    Stride-1 layers skip the phase-split transpose (zero-pad only)."""
    n, h, w_, c = x.shape
    k = w_khwc.shape[0]
    s = stride
    p = (k - 1) // 2
    ho = (h + 2 * p - k) // s + 1
    wo = (w_ + 2 * p - k) // s + 1

    if s == 1:
        hps, wps = h + 2 * p, w_ + 2 * p
        xp = jnp.pad(x, ((0, 0), (p, p), (p, p), (0, 0)))
        xphase = xp.reshape(n, 1, hps, wps, c)
        nphase = 1
    else:
        hps = (k - 1) // s + ho
        wps = (k - 1) // s + wo
        hp_tot, wp_tot = s * hps, s * wps
        assert hp_tot >= h + p and wp_tot >= w_ + p
        xp = jnp.pad(x, ((0, 0), (p, hp_tot - h - p), (p, wp_tot - w_ - p), (0, 0)))
        # phase split so that every tap in-kernel is a unit-stride slice
        xphase = (xp.reshape(n, hps, s, wps, s, c)
                    .transpose(0, 2, 4, 1, 3, 5)
                    .reshape(n, s * s, hps, wps, c))
        nphase = s * s

    tr = _dw_row_tile(ho, wo, c)
    n_rt = ho // tr
    kern = _make_dw_kernel(k, s, tr, ho, wo, act)
    out, pooled = pl.pallas_call(
        kern,
        out_shape=(jax.ShapeDtypeStruct((n, ho, wo, c), jnp.bfloat16),
                   jax.ShapeDtypeStruct((n, 1, c), jnp.float32)),
        grid=(n, n_rt),
        in_specs=[
            pl.BlockSpec((1, nphase, hps, wps, c), lambda i, j: (i, 0, 0, 0, 0)),
            pl.BlockSpec((k * k, 1, c), lambda i, j: (0, 0, 0)),
            pl.BlockSpec((1, c), lambda i, j: (0, 0)),
            pl.BlockSpec((1, c), lambda i, j: (0, 0)),
        ],
        out_specs=(pl.BlockSpec((1, tr, wo, c), lambda i, j: (i, j, 0, 0)),
                   pl.BlockSpec((1, 1, c), lambda i, j: (i, 0, 0))),
        compiler_params=pltpu.CompilerParams(
            dimension_semantics=("parallel", "arbitrary")),
    )(xphase, w_khwc.reshape(k * k, 1, c), scale.reshape(1, c), bias.reshape(1, c))
    return out, pooled


def classifier_head(x3, fc1, fc2):
    """Fused global-avg-pool + Linear + h_swish + Dropout(eval=id) + Linear."""
    n, hw, c = x3.shape
    w1, b1 = fc1
    w2, b2 = fc2
    oc = w1.shape[1]
    ncls = w2.shape[1]
    return pl.pallas_call(
        _make_classifier_kernel(hw),
        out_shape=jax.ShapeDtypeStruct((n, ncls), jnp.float32),
        grid=(1,),
        in_specs=[
            pl.BlockSpec((n, hw, c), lambda i: (0, 0, 0)),
            pl.BlockSpec((c, oc), lambda i: (0, 0)),
            pl.BlockSpec((1, oc), lambda i: (0, 0)),
            pl.BlockSpec((oc, ncls), lambda i: (0, 0)),
            pl.BlockSpec((1, ncls), lambda i: (0, 0)),
        ],
        out_specs=pl.BlockSpec((n, ncls), lambda i: (0, 0)),
    )(x3, w1, b1.reshape(1, oc), w2, b2.reshape(1, ncls))


# ----------------------------------------------------------------------------
# glue: im2col only for the (tiny, 3-channel) stem conv
# ----------------------------------------------------------------------------
def extract_patches(x, k, stride):
    """x: (N,H,W,C) NHWC -> patches (N*Ho*Wo, k*k, C), Ho, Wo (pad=(k-1)//2)."""
    n, h, w, c = x.shape
    p = (k - 1) // 2
    xp = jnp.pad(x, ((0, 0), (p, p), (p, p), (0, 0)))
    ho = (h + 2 * p - k) // stride + 1
    wo = (w + 2 * p - k) // stride + 1
    taps = []
    for dy in range(k):
        for dx in range(k):
            taps.append(xp[:, dy:dy + stride * ho:stride, dx:dx + stride * wo:stride, :])
    pat = jnp.stack(taps, axis=3)            # (N, Ho, Wo, k*k, C)
    return pat.reshape(n * ho * wo, k * k, c), ho, wo


def conv_kxk_bn_act(x, w_hwio, scale, bias, stride, act):
    n, h, w_, cin = x.shape
    k = w_hwio.shape[0]
    cout = w_hwio.shape[3]
    patches, ho, wo = extract_patches(x, k, stride)           # (N*Ho*Wo, k*k, Cin)
    kdim = k * k * cin
    kpad = (-kdim) % 8                                        # pad K for MXU layout
    xm = patches.reshape(n * ho * wo, kdim)
    wm = w_hwio.reshape(kdim, cout)
    if kpad:
        xm = jnp.pad(xm, ((0, 0), (0, kpad)))
        wm = jnp.pad(wm, ((0, kpad), (0, 0)))
    xm = xm.astype(jnp.bfloat16)
    wm = wm.astype(jnp.bfloat16)
    y = conv1x1(xm, wm, scale, bias, post_act=act)
    return y.reshape(n, ho, wo, cout)


# ----------------------------------------------------------------------------
# inverted residual block (SE gate, pre-act and residual fused into projection)
# ----------------------------------------------------------------------------
def inverted_residual(x, bp):
    inp, hidden, oup, k, s, use_se, use_hs = bp["cfg"]
    act = "hswish" if use_hs else "relu"
    n, h, w_, _ = x.shape

    if inp == hidden:
        # dw -> BN -> act -> [SE] -> pw -> BN
        hvals, pooled = dwconv_bn_act(x, bp["dw_w"], bp["dw_bn"][0], bp["dw_bn"][1], s, act)
        pre = "none"
    else:
        # pw expand -> BN -> act
        y = conv1x1(x.reshape(n * h * w_, inp), bp["exp_w"],
                    bp["exp_bn"][0], bp["exp_bn"][1], post_act=act)
        y = y.reshape(n, h, w_, hidden)
        if use_se:
            # dw -> BN -> SE -> act -> pw -> BN  (act fused into projection)
            hvals, pooled = dwconv_bn_act(y, bp["dw_w"], bp["dw_bn"][0], bp["dw_bn"][1], s, "none")
            pre = act
        else:
            hvals, pooled = dwconv_bn_act(y, bp["dw_w"], bp["dw_bn"][0], bp["dw_bn"][1], s, act)
            pre = "none"

    _, ho, wo, _ = hvals.shape
    residual = x if bp["identity"] else None

    if use_se:
        res3 = residual.reshape(n, h * w_, oup) if residual is not None else None
        out = conv1x1_se(hvals.reshape(n, ho * wo, hidden), bp["pw_w"],
                         bp["pw_bn"][0], bp["pw_bn"][1], pooled, bp["se"],
                         residual=res3, pre_act=pre, post_act="none")
        return out.reshape(n, ho, wo, oup)

    res2 = residual.reshape(n * h * w_, oup) if residual is not None else None
    out = conv1x1(hvals.reshape(n * ho * wo, hidden), bp["pw_w"],
                  bp["pw_bn"][0], bp["pw_bn"][1],
                  residual=res2, pre_act=pre, post_act="none")
    return out.reshape(n, ho, wo, oup)


def mobilenetv3_forward(x_nchw, params):
    x = jnp.transpose(x_nchw, (0, 2, 3, 1)).astype(jnp.float32)    # NCHW -> NHWC
    # stem: conv_3x3_bn(3, C, stride=2) + h_swish
    x = conv_kxk_bn_act(x, params["stem_w"], params["stem_bn"][0], params["stem_bn"][1], 2, "hswish")
    # inverted residual blocks
    for bp in params["blocks"]:
        x = inverted_residual(x, bp)
    # head: conv_1x1_bn(C, exp_size) + h_swish
    n, h, w, c = x.shape
    x2 = conv1x1(x.reshape(n * h * w, c), params["head_w"],
                 params["head_bn"][0], params["head_bn"][1], post_act="hswish")
    x3 = x2.reshape(n, h * w, -1)
    # global average pool + classifier (fused into one kernel)
    out = classifier_head(x3, params["fc1"], params["fc2"])
    return out


# ----------------------------------------------------------------------------
# deterministic parameter init (mirrors MobileNetV3._initialize_weights);
# matmul weights are pre-cast to bf16 once here (constant weight DMA savings).
# ----------------------------------------------------------------------------
class KeyGen:
    def __init__(self, key):
        self._key = key

    def __call__(self):
        self._key, sub = jax.random.split(self._key)
        return sub


def init_conv(kg, k, cin, cout):
    std = math.sqrt(2.0 / (k * k * cout))
    return jax.random.normal(kg(), (k, k, cin, cout), jnp.float32) * std   # HWIO


def init_conv1x1(kg, cin, cout):
    std = math.sqrt(2.0 / cout)
    w = jax.random.normal(kg(), (cin, cout), jnp.float32) * std            # (Cin, Cout)
    return w.astype(jnp.bfloat16)


def init_dwconv(kg, k, c):
    std = math.sqrt(2.0 / (k * k * c))
    return jax.random.normal(kg(), (k, k, c), jnp.float32) * std


def init_bn(c, eps=1e-5):
    gamma = jnp.ones((c,), jnp.float32)
    beta = jnp.zeros((c,), jnp.float32)
    mean = jnp.zeros((c,), jnp.float32)
    var = jnp.ones((c,), jnp.float32)
    scale = gamma / jnp.sqrt(var + eps)
    bias = beta - mean * scale
    return scale, bias


def init_linear(kg, cin, cout, w_dtype=jnp.bfloat16):
    w = (jax.random.normal(kg(), (cin, cout), jnp.float32) * 0.01).astype(w_dtype)
    b = jnp.zeros((cout,), jnp.float32)
    return w, b


def init_se(kg, c):
    cr = _make_divisible(c // 4, 8)
    w1, b1 = init_linear(kg, c, cr, w_dtype=jnp.float32)   # tiny; keep f32
    w2, b2 = init_linear(kg, cr, c, w_dtype=jnp.float32)
    return {"w1": w1, "b1": b1, "w2": w2, "b2": b2}


def init_mobilenetv3(key, cfgs, mode="small", num_classes=10, width_mult=1.0):
    kg = KeyGen(key)
    params = {}
    input_channel = _make_divisible(16 * width_mult, 8)
    params["stem_w"] = init_conv(kg, 3, 3, input_channel)
    params["stem_bn"] = init_bn(input_channel)

    blocks = []
    exp_size = input_channel
    for k, t, c, use_se, use_hs, s in cfgs:
        output_channel = _make_divisible(c * width_mult, 8)
        exp_size = _make_divisible(input_channel * t, 8)
        bp = {
            "cfg": (input_channel, exp_size, output_channel, k, s, bool(use_se), bool(use_hs)),
            "identity": (s == 1 and input_channel == output_channel),
        }
        if input_channel != exp_size:
            bp["exp_w"] = init_conv1x1(kg, input_channel, exp_size)
            bp["exp_bn"] = init_bn(exp_size)
        bp["dw_w"] = init_dwconv(kg, k, exp_size)
        bp["dw_bn"] = init_bn(exp_size)
        if use_se:
            bp["se"] = init_se(kg, exp_size)
        bp["pw_w"] = init_conv1x1(kg, exp_size, output_channel)
        bp["pw_bn"] = init_bn(output_channel)
        blocks.append(bp)
        input_channel = output_channel
    params["blocks"] = blocks

    params["head_w"] = init_conv1x1(kg, input_channel, exp_size)
    params["head_bn"] = init_bn(exp_size)

    oc = {"large": 1280, "small": 1024}[mode]
    oc = _make_divisible(oc * width_mult, 8) if width_mult > 1.0 else oc
    params["fc1"] = init_linear(kg, exp_size, oc)
    params["fc2"] = init_linear(kg, oc, num_classes)
    return params


# ----------------------------------------------------------------------------
if __name__ == "__main__":
    # small MobileNetV3 config (k, t, c, use_se, use_hs, stride)
    cfgs = [
        [3, 1, 16, 1, 0, 2],
        [3, 4, 24, 0, 0, 2],
        [5, 4, 24, 1, 1, 1],
    ]
    root = jax.random.PRNGKey(0)
    k_params, k_input = jax.random.split(root)
    params = init_mobilenetv3(k_params, cfgs, mode="small", num_classes=10, width_mult=1.0)

    # PyTorch-layout NCHW input (batch=2, channels=3, spatial=16x16)
    x = jax.random.normal(k_input, (2, 3, 16, 16), jnp.float32)

    fwd = jax.jit(lambda inp: mobilenetv3_forward(inp, params))
    out = fwd(x)
    out = jax.block_until_ready(out)
    assert out.shape == (2, 10) and out.dtype == jnp.float32
    print("KERNEL_OK")
</pallas_src>

<mosaic_0001>
module attributes {stable_mosaic.version = 11 : i64} {
  func.func @kern(%arg0: i32, %arg1: memref<128x32xbf16, #tpu.memory_space<vmem>>, %arg2: memref<32x16xbf16, #tpu.memory_space<vmem>>, %arg3: memref<1x16xf32, #tpu.memory_space<vmem>>, %arg4: memref<1x16xf32, #tpu.memory_space<vmem>>, %arg5: memref<128x16xbf16, #tpu.memory_space<vmem>>) attributes {dimension_semantics = [#tpu.dimension_semantics<parallel>], iteration_bounds = array<i64: 1>, scalar_prefetch = 0 : i64, scratch_operands = 0 : i64, tpu.core_type = #tpu.core_type<tc>, window_params = [{transform_indices = @transform_0, window_bounds = array<i64: 128, 32>}, {pipeline_mode = #tpu.pipeline_mode<synchronous>, transform_indices = @transform_1, window_bounds = array<i64: 32, 16>}, {pipeline_mode = #tpu.pipeline_mode<synchronous>, transform_indices = @transform_2, window_bounds = array<i64: 1, 16>}, {pipeline_mode = #tpu.pipeline_mode<synchronous>, transform_indices = @transform_3, window_bounds = array<i64: 1, 16>}, {transform_indices = @transform_4, window_bounds = array<i64: 128, 16>}]} {
    %c0 = arith.constant 0 : index
    %c0_0 = arith.constant 0 : index
    %0 = vector.load %arg1[%c0, %c0_0] : memref<128x32xbf16, #tpu.memory_space<vmem>>, vector<128x32xbf16>
    %c0_1 = arith.constant 0 : index
    %c0_2 = arith.constant 0 : index
    %1 = vector.load %arg2[%c0_1, %c0_2] : memref<32x16xbf16, #tpu.memory_space<vmem>>, vector<32x16xbf16>
    %cst = arith.constant dense<0.000000e+00> : vector<128x16xf32>
    %2 = tpu.matmul %0, %1, %cst {dimension_numbers = #tpu.dot_dimension_numbers<[1], [0], [0], [1], [0, 0, 1, 1], [], []>} : vector<128x32xbf16>, vector<32x16xbf16>, vector<128x16xf32> -> vector<128x16xf32>
    %c0_3 = arith.constant 0 : index
    %c0_4 = arith.constant 0 : index
    %3 = vector.load %arg3[%c0_3, %c0_4] : memref<1x16xf32, #tpu.memory_space<vmem>>, vector<1x16xf32>
    %4 = vector.broadcast %3 : vector<1x16xf32> to vector<128x16xf32>
    %5 = arith.mulf %2, %4 : vector<128x16xf32>
    %c0_5 = arith.constant 0 : index
    %c0_6 = arith.constant 0 : index
    %6 = vector.load %arg4[%c0_5, %c0_6] : memref<1x16xf32, #tpu.memory_space<vmem>>, vector<1x16xf32>
    %7 = vector.broadcast %6 : vector<1x16xf32> to vector<128x16xf32>
    %8 = arith.addf %5, %7 : vector<128x16xf32>
    %cst_7 = arith.constant 3.000000e+00 : f32
    %9 = vector.broadcast %cst_7 : f32 to vector<128x16xf32>
    %10 = arith.addf %8, %9 : vector<128x16xf32>
    %cst_8 = arith.constant 0.000000e+00 : f32
    %cst_9 = arith.constant 6.000000e+00 : f32
    %11 = vector.broadcast %cst_8 : f32 to vector<128x16xf32>
    %12 = arith.maximumf %11, %10 : vector<128x16xf32>
    %13 = vector.broadcast %cst_9 : f32 to vector<128x16xf32>
    %14 = arith.minimumf %13, %12 : vector<128x16xf32>
    %cst_10 = arith.constant 0.166666672 : f32
    %15 = vector.broadcast %cst_10 : f32 to vector<128x16xf32>
    %16 = arith.mulf %14, %15 : vector<128x16xf32>
    %17 = arith.mulf %8, %16 : vector<128x16xf32>
    %18 = arith.truncf %17 : vector<128x16xf32> to vector<128x16xbf16>
    %c0_11 = arith.constant 0 : index
    %c0_12 = arith.constant 0 : index
    %19 = vector.load %arg5[%c0_11, %c0_12] : memref<128x16xbf16, #tpu.memory_space<vmem>>, vector<128x16xbf16>
    tpu.vector_store %arg5[%c0_11, %c0_12], %18 {strides = array<i32>} : memref<128x16xbf16, #tpu.memory_space<vmem>>, vector<128x16xbf16>,
    return
  }
  func.func @transform_0(%arg0: i32) -> (i32, i32) {
    %c0_i32 = arith.constant 0 : i32
    %c0_i32_0 = arith.constant 0 : i32
    return %arg0, %c0_i32 : i32, i32
  }
  func.func @transform_1(%arg0: i32) -> (i32, i32) {
    %c0_i32 = arith.constant 0 : i32
    %c0_i32_0 = arith.constant 0 : i32
    %c0_i32_1 = arith.constant 0 : i32
    return %c0_i32, %c0_i32_0 : i32, i32
  }
  func.func @transform_2(%arg0: i32) -> (i32, i32) {
    %c0_i32 = arith.constant 0 : i32
    %c0_i32_0 = arith.constant 0 : i32
    %c0_i32_1 = arith.constant 0 : i32
    return %c0_i32, %c0_i32_0 : i32, i32
  }
  func.func @transform_3(%arg0: i32) -> (i32, i32) {
    %c0_i32 = arith.constant 0 : i32
    %c0_i32_0 = arith.constant 0 : i32
    %c0_i32_1 = arith.constant 0 : i32
    return %c0_i32, %c0_i32_0 : i32, i32
  }
  func.func @transform_4(%arg0: i32) -> (i32, i32) {
    %c0_i32 = arith.constant 0 : i32
    %c0_i32_0 = arith.constant 0 : i32
    return %arg0, %c0_i32 : i32, i32
  }
}

module attributes {stable_mosaic.version = 11 : i64} {
  func.func @kern(%arg0: i32, %arg1: i32, %arg2: memref<1x16x16xbf16, #tpu.memory_space<vmem>>, %arg3: memref<16x16xbf16, #tpu.memory_space<vmem>>, %arg4: memref<1x16xf32, #tpu.memory_space<vmem>>, %arg5: memref<1x16xf32, #tpu.memory_space<vmem>>, %arg6: memref<1x1x16xf32, #tpu.memory_space<vmem>>, %arg7: memref<16x8xf32, #tpu.memory_space<vmem>>, %arg8: memref<1x8xf32, #tpu.memory_space<vmem>>, %arg9: memref<8x16xf32, #tpu.memory_space<vmem>>, %arg10: memref<1x16xf32, #tpu.memory_space<vmem>>, %arg11: memref<1x16x16xbf16, #tpu.memory_space<vmem>>) attributes {dimension_semantics = [#tpu.dimension_semantics<parallel>, #tpu.dimension_semantics<parallel>], iteration_bounds = array<i64: 2, 1>, scalar_prefetch = 0 : i64, scratch_operands = 0 : i64, tpu.core_type = #tpu.core_type<tc>, window_params = [{transform_indices = @transform_0, window_bounds = array<i64: 1, 16, 16>}, {pipeline_mode = #tpu.pipeline_mode<synchronous>, transform_indices = @transform_1, window_bounds = array<i64: 16, 16>}, {pipeline_mode = #tpu.pipeline_mode<synchronous>, transform_indices = @transform_2, window_bounds = array<i64: 1, 16>}, {pipeline_mode = #tpu.pipeline_mode<synchronous>, transform_indices = @transform_3, window_bounds = array<i64: 1, 16>}, {transform_indices = @transform_4, window_bounds = array<i64: 1, 1, 16>}, {pipeline_mode = #tpu.pipeline_mode<synchronous>, transform_indices = @transform_5, window_bounds = array<i64: 16, 8>}, {pipeline_mode = #tpu.pipeline_mode<synchronous>, transform_indices = @transform_6, window_bounds = array<i64: 1, 8>}, {pipeline_mode = #tpu.pipeline_mode<synchronous>, transform_indices = @transform_7, window_bounds = array<i64: 8, 16>}, {pipeline_mode = #tpu.pipeline_mode<synchronous>, transform_indices = @transform_8, window_bounds = array<i64: 1, 16>}, {transform_indices = @transform_9, window_bounds = array<i64: 1, 16, 16>}]} {
    %c0 = arith.constant 0 : index
    %c0_0 = arith.constant 0 : index
    %c0_1 = arith.constant 0 : index
    %0 = vector.load %arg6[%c0, %c0_0, %c0_1] : memref<1x1x16xf32, #tpu.memory_space<vmem>>, vector<1x1x16xf32>
    %1 = vector.shape_cast %0 : vector<1x1x16xf32> to vector<1x16xf32>
    %c0_2 = arith.constant 0 : index
    %c0_3 = arith.constant 0 : index
    %2 = vector.load %arg7[%c0_2, %c0_3] : memref<16x8xf32, #tpu.memory_space<vmem>>, vector<16x8xf32>
    %cst = arith.constant dense<0.000000e+00> : vector<1x8xf32>
    %3 = tpu.matmul %1, %2, %cst {dimension_numbers = #tpu.dot_dimension_numbers<[1], [0], [0], [1], [0, 0, 1, 1], [], []>} : vector<1x16xf32>, vector<16x8xf32>, vector<1x8xf32> -> vector<1x8xf32>
    %c0_4 = arith.constant 0 : index
    %c0_5 = arith.constant 0 : index
    %4 = vector.load %arg8[%c0_4, %c0_5] : memref<1x8xf32, #tpu.memory_space<vmem>>, vector<1x8xf32>
    %5 = arith.addf %3, %4 : vector<1x8xf32>
    %cst_6 = arith.constant 0.000000e+00 : f32
    %6 = vector.broadcast %cst_6 : f32 to vector<1x8xf32>
    %7 = arith.maximumf %5, %6 : vector<1x8xf32>
    %c0_7 = arith.constant 0 : index
    %c0_8 = arith.constant 0 : index
    %8 = vector.load %arg9[%c0_7, %c0_8] : memref<8x16xf32, #tpu.memory_space<vmem>>, vector<8x16xf32>
    %cst_9 = arith.constant dense<0.000000e+00> : vector<1x16xf32>
    %9 = tpu.matmul %7, %8, %cst_9 {dimension_numbers = #tpu.dot_dimension_numbers<[1], [0], [0], [1], [0, 0, 1, 1], [], []>} : vector<1x8xf32>, vector<8x16xf32>, vector<1x16xf32> -> vector<1x16xf32>
    %c0_10 = arith.constant 0 : index
    %c0_11 = arith.constant 0 : index
    %10 = vector.load %arg10[%c0_10, %c0_11] : memref<1x16xf32, #tpu.memory_space<vmem>>, vector<1x16xf32>
    %11 = arith.addf %9, %10 : vector<1x16xf32>
    %cst_12 = arith.constant 3.000000e+00 : f32
    %12 = vector.broadcast %cst_12 : f32 to vector<1x16xf32>
    %13 = arith.addf %11, %12 : vector<1x16xf32>
    %cst_13 = arith.constant 0.000000e+00 : f32
    %cst_14 = arith.constant 6.000000e+00 : f32
    %14 = vector.broadcast %cst_13 : f32 to vector<1x16xf32>
    %15 = arith.maximumf %14, %13 : vector<1x16xf32>
    %16 = vector.broadcast %cst_14 : f32 to vector<1x16xf32>
    %17 = arith.minimumf %16, %15 : vector<1x16xf32>
    %cst_15 = arith.constant 0.166666672 : f32
    %18 = vector.broadcast %cst_15 : f32 to vector<1x16xf32>
    %19 = arith.mulf %17, %18 : vector<1x16xf32>
    %c0_16 = arith.constant 0 : index
    %c0_17 = arith.constant 0 : index
    %c0_18 = arith.constant 0 : index
    %20 = vector.load %arg2[%c0_16, %c0_17, %c0_18] : memref<1x16x16xbf16, #tpu.memory_space<vmem>>, vector<1x16x16xbf16>
    %21 = vector.shape_cast %20 : vector<1x16x16xbf16> to vector<16x16xbf16>
    %22 = arith.extf %21 : vector<16x16xbf16> to vector<16x16xf32>
    %23 = vector.broadcast %19 : vector<1x16xf32> to vector<16x16xf32>
    %24 = arith.mulf %22, %23 : vector<16x16xf32>
    %25 = arith.truncf %24 : vector<16x16xf32> to vector<16x16xbf16>
    %c0_19 = arith.constant 0 : index
    %c0_20 = arith.constant 0 : index
    %26 = vector.load %arg3[%c0_19, %c0_20] : memref<16x16xbf16, #tpu.memory_space<vmem>>, vector<16x16xbf16>
    %cst_21 = arith.constant dense<0.000000e+00> : vector<16x16xf32>
    %27 = tpu.matmul %25, %26, %cst_21 {dimension_numbers = #tpu.dot_dimension_numbers<[1], [0], [0], [1], [0, 0, 1, 1], [], []>} : vector<16x16xbf16>, vector<16x16xbf16>, vector<16x16xf32> -> vector<16x16xf32>
    %c0_22 = arith.constant 0 : index
    %c0_23 = arith.constant 0 : index
    %28 = vector.load %arg4[%c0_22, %c0_23] : memref<1x16xf32, #tpu.memory_space<vmem>>, vector<1x16xf32>
    %29 = vector.broadcast %28 : vector<1x16xf32> to vector<16x16xf32>
    %30 = arith.mulf %27, %29 : vector<16x16xf32>
    %c0_24 = arith.constant 0 : index
    %c0_25 = arith.constant 0 : index
    %31 = vector.load %arg5[%c0_24, %c0_25] : memref<1x16xf32, #tpu.memory_space<vmem>>, vector<1x16xf32>
    %32 = vector.broadcast %31 : vector<1x16xf32> to vector<16x16xf32>
    %33 = arith.addf %30, %32 : vector<16x16xf32>
    %34 = arith.truncf %33 : vector<16x16xf32> to vector<16x16xbf16>
    %c0_26 = arith.constant 0 : index
    %c0_27 = arith.constant 0 : index
    %c0_28 = arith.constant 0 : index
    %35 = vector.load %arg11[%c0_26, %c0_27, %c0_28] : memref<1x16x16xbf16, #tpu.memory_space<vmem>>, vector<1x16x16xbf16>
    %36 = vector.shape_cast %35 : vector<1x16x16xbf16> to vector<16x16xbf16>
    %37 = vector.shape_cast %34 : vector<16x16xbf16> to vector<1x16x16xbf16>
    tpu.vector_store %arg11[%c0_26, %c0_27, %c0_28], %37 {strides = array<i32>} : memref<1x16x16xbf16, #tpu.memory_space<vmem>>, vector<1x16x16xbf16>,
    return
  }
  func.func @transform_0(%arg0: i32, %arg1: i32) -> (i32, i32, i32) {
    %c0_i32 = arith.constant 0 : i32
    %c0_i32_0 = arith.constant 0 : i32
    return %arg0, %arg1, %c0_i32 : i32, i32, i32
  }
  func.func @transform_1(%arg0: i32, %arg1: i32) -> (i32, i32) {
    %c0_i32 = arith.constant 0 : i32
    %c0_i32_0 = arith.constant 0 : i32
    %c0_i32_1 = arith.constant 0 : i32
    return %c0_i32, %c0_i32_0 : i32, i32
  }
  func.func @transform_2(%arg0: i32, %arg1: i32) -> (i32, i32) {
    %c0_i32 = arith.constant 0 : i32
    %c0_i32_0 = arith.constant 0 : i32
    %c0_i32_1 = arith.constant 0 : i32
    return %c0_i32, %c0_i32_0 : i32, i32
  }
  func.func @transform_3(%arg0: i32, %arg1: i32) -> (i32, i32) {
    %c0_i32 = arith.constant 0 : i32
    %c0_i32_0 = arith.constant 0 : i32
    %c0_i32_1 = arith.constant 0 : i32
    return %c0_i32, %c0_i32_0 : i32, i32
  }
  func.func @transform_4(%arg0: i32, %arg1: i32) -> (i32, i32, i32) {
    %c0_i32 = arith.constant 0 : i32
    %c0_i32_0 = arith.constant 0 : i32
    %c0_i32_1 = arith.constant 0 : i32
    return %arg0, %c0_i32, %c0_i32_0 : i32, i32, i32
  }
  func.func @transform_5(%arg0: i32, %arg1: i32) -> (i32, i32) {
    %c0_i32 = arith.constant 0 : i32
    %c0_i32_0 = arith.constant 0 : i32
    %c0_i32_1 = arith.constant 0 : i32
    return %c0_i32, %c0_i32_0 : i32, i32
  }
  func.func @transform_6(%arg0: i32, %arg1: i32) -> (i32, i32) {
    %c0_i32 = arith.constant 0 : i32
    %c0_i32_0 = arith.constant 0 : i32
    %c0_i32_1 = arith.constant 0 : i32
    return %c0_i32, %c0_i32_0 : i32, i32
  }
  func.func @transform_7(%arg0: i32, %arg1: i32) -> (i32, i32) {
    %c0_i32 = arith.constant 0 : i32
    %c0_i32_0 = arith.constant 0 : i32
    %c0_i32_1 = arith.constant 0 : i32
    return %c0_i32, %c0_i32_0 : i32, i32
  }
  func.func @transform_8(%arg0: i32, %arg1: i32) -> (i32, i32) {
    %c0_i32 = arith.constant 0 : i32
    %c0_i32_0 = arith.constant 0 : i32
    %c0_i32_1 = arith.constant 0 : i32
    return %c0_i32, %c0_i32_0 : i32, i32
  }
  func.func @transform_9(%arg0: i32, %arg1: i32) -> (i32, i32, i32) {
    %c0_i32 = arith.constant 0 : i32
    %c0_i32_0 = arith.constant 0 : i32
    return %arg0, %arg1, %c0_i32 : i32, i32, i32
  }
}

module attributes {stable_mosaic.version = 11 : i64} {
  func.func @kernel(%arg0: i32, %arg1: i32, %arg2: memref<1x4x5x5x16xbf16, #tpu.memory_space<vmem>>, %arg3: memref<9x1x16xf32, #tpu.memory_space<vmem>>, %arg4: memref<1x16xf32, #tpu.memory_space<vmem>>, %arg5: memref<1x16xf32, #tpu.memory_space<vmem>>, %arg6: memref<1x4x4x16xbf16, #tpu.memory_space<vmem>>, %arg7: memref<1x1x16xf32, #tpu.memory_space<vmem>>) attributes {dimension_semantics = [#tpu.dimension_semantics<parallel>, #tpu.dimension_semantics<arbitrary>], iteration_bounds = array<i64: 2, 1>, scalar_prefetch = 0 : i64, scratch_operands = 0 : i64, tpu.core_type = #tpu.core_type<tc>, window_params = [{transform_indices = @transform_0, window_bounds = array<i64: 1, 4, 5, 5, 16>}, {pipeline_mode = #tpu.pipeline_mode<synchronous>, transform_indices = @transform_1, window_bounds = array<i64: 9, 1, 16>}, {pipeline_mode = #tpu.pipeline_mode<synchronous>, transform_indices = @transform_2, window_bounds = array<i64: 1, 16>}, {pipeline_mode = #tpu.pipeline_mode<synchronous>, transform_indices = @transform_3, window_bounds = array<i64: 1, 16>}, {transform_indices = @transform_4, window_bounds = array<i64: 1, 4, 4, 16>}, {transform_indices = @transform_5, window_bounds = array<i64: 1, 1, 16>}]} {
    %c4_i32 = arith.constant 4 : i32
    %0 = arith.muli %arg1, %c4_i32 : i32
    %1 = tpu.assume_multiple %0, 4 : i32
    %c0 = arith.constant 0 : index
    %c0_0 = arith.constant 0 : index
    %c0_1 = arith.constant 0 : index
    %2 = vector.load %arg3[%c0, %c0_0, %c0_1] : memref<9x1x16xf32, #tpu.memory_space<vmem>>, vector<9x1x16xf32>
    %cst = arith.constant 0.000000e+00 : f32
    %3 = vector.broadcast %cst : f32 to vector<4x4x16xf32>
    %c0_i32 = arith.constant 0 : i32
    %4 = arith.addi %1, %c0_i32 : i32
    %c0_2 = arith.constant 0 : index
    %c0_3 = arith.constant 0 : index
    %5 = arith.index_cast %4 : i32 to index
    %c0_4 = arith.constant 0 : index
    %c0_5 = arith.constant 0 : index
    %6 = vector.load %arg2[%c0_2, %c0_3, %5, %c0_4, %c0_5] : memref<1x4x5x5x16xbf16, #tpu.memory_space<vmem>>, vector<1x1x4x5x16xbf16>
    %7 = vector.shape_cast %6 : vector<1x1x4x5x16xbf16> to vector<4x5x16xbf16>
    %8 = arith.extf %7 : vector<4x5x16xbf16> to vector<4x5x16xf32>
    %9 = vector.extract_strided_slice %8 {offsets = [0, 0, 0], sizes = [4, 4, 16], strides = [1, 1, 1]} : vector<4x5x16xf32> to vector<4x4x16xf32>
    %10 = vector.extract_strided_slice %2 {offsets = [0, 0, 0], sizes = [1, 1, 16], strides = [1, 1, 1]} : vector<9x1x16xf32> to vector<1x1x16xf32>
    %11 = vector.shape_cast %10 : vector<1x1x16xf32> to vector<1x16xf32>
    %12 = vector.shape_cast %11 : vector<1x16xf32> to vector<1x1x16xf32>
    %13 = vector.broadcast %12 : vector<1x1x16xf32> to vector<4x4x16xf32>
    %14 = arith.mulf %9, %13 : vector<4x4x16xf32>
    %15 = arith.addf %3, %14 : vector<4x4x16xf32>
    %16 = vector.extract_strided_slice %8 {offsets = [0, 1, 0], sizes = [4, 4, 16], strides = [1, 1, 1]} : vector<4x5x16xf32> to vector<4x4x16xf32>
    %17 = vector.extract_strided_slice %2 {offsets = [2, 0, 0], sizes = [1, 1, 16], strides = [1, 1, 1]} : vector<9x1x16xf32> to vector<1x1x16xf32>
    %18 = vector.shape_cast %17 : vector<1x1x16xf32> to vector<1x16xf32>
    %19 = vector.shape_cast %18 : vector<1x16xf32> to vector<1x1x16xf32>
    %20 = vector.broadcast %19 : vector<1x1x16xf32> to vector<4x4x16xf32>
    %21 = arith.mulf %16, %20 : vector<4x4x16xf32>
    %22 = arith.addf %15, %21 : vector<4x4x16xf32>
    %c0_i32_6 = arith.constant 0 : i32
    %23 = arith.addi %1, %c0_i32_6 : i32
    %c0_7 = arith.constant 0 : index
    %c1 = arith.constant 1 : index
    %24 = arith.index_cast %23 : i32 to index
    %c0_8 = arith.constant 0 : index
    %c0_9 = arith.constant 0 : index
    %25 = vector.load %arg2[%c0_7, %c1, %24, %c0_8, %c0_9] : memref<1x4x5x5x16xbf16, #tpu.memory_space<vmem>>, vector<1x1x4x5x16xbf16>
    %26 = vector.shape_cast %25 : vector<1x1x4x5x16xbf16> to vector<4x5x16xbf16>
    %27 = arith.extf %26 : vector<4x5x16xbf16> to vector<4x5x16xf32>
    %28 = vector.extract_strided_slice %27 {offsets = [0, 0, 0], sizes = [4, 4, 16], strides = [1, 1, 1]} : vector<4x5x16xf32> to vector<4x4x16xf32>
    %29 = vector.extract_strided_slice %2 {offsets = [1, 0, 0], sizes = [1, 1, 16], strides = [1, 1, 1]} : vector<9x1x16xf32> to vector<1x1x16xf32>
    %30 = vector.shape_cast %29 : vector<1x1x16xf32> to vector<1x16xf32>
    %31 = vector.shape_cast %30 : vector<1x16xf32> to vector<1x1x16xf32>
    %32 = vector.broadcast %31 : vector<1x1x16xf32> to vector<4x4x16xf32>
    %33 = arith.mulf %28, %32 : vector<4x4x16xf32>
    %34 = arith.addf %22, %33 : vector<4x4x16xf32>
    %c0_i32_10 = arith.constant 0 : i32
    %35 = arith.addi %1, %c0_i32_10 : i32
    %c0_11 = arith.constant 0 : index
    %c2 = arith.constant 2 : index
    %36 = arith.index_cast %35 : i32 to index
    %c0_12 = arith.constant 0 : index
    %c0_13 = arith.constant 0 : index
    %37 = vector.load %arg2[%c0_11, %c2, %36, %c0_12, %c0_13] : memref<1x4x5x5x16xbf16, #tpu.memory_space<vmem>>, vector<1x1x4x5x16xbf16>
    %38 = vector.shape_cast %37 : vector<1x1x4x5x16xbf16> to vector<4x5x16xbf16>
    %39 = arith.extf %38 : vector<4x5x16xbf16> to vector<4x5x16xf32>
    %40 = vector.extract_strided_slice %39 {offsets = [0, 0, 0], sizes = [4, 4, 16], strides = [1, 1, 1]} : vector<4x5x16xf32> to vector<4x4x16xf32>
    %41 = vector.extract_strided_slice %2 {offsets = [3, 0, 0], sizes = [1, 1, 16], strides = [1, 1, 1]} : vector<9x1x16xf32> to vector<1x1x16xf32>
    %42 = vector.shape_cast %41 : vector<1x1x16xf32> to vector<1x16xf32>
    %43 = vector.shape_cast %42 : vector<1x16xf32> to vector<1x1x16xf32>
    %44 = vector.broadcast %43 : vector<1x1x16xf32> to vector<4x4x16xf32>
    %45 = arith.mulf %40, %44 : vector<4x4x16xf32>
    %46 = arith.addf %34, %45 : vector<4x4x16xf32>
    %47 = vector.extract_strided_slice %39 {offsets = [0, 1, 0], sizes = [4, 4, 16], strides = [1, 1, 1]} : vector<4x5x16xf32> to vector<4x4x16xf32>
    %48 = vector.extract_strided_slice %2 {offsets = [5, 0, 0], sizes = [1, 1, 16], strides = [1, 1, 1]} : vector<9x1x16xf32> to vector<1x1x16xf32>
    %49 = vector.shape_cast %48 : vector<1x1x16xf32> to vector<1x16xf32>
    %50 = vector.shape_cast %49 : vector<1x16xf32> to vector<1x1x16xf32>
    %51 = vector.broadcast %50 : vector<1x1x16xf32> to vector<4x4x16xf32>
    %52 = arith.mulf %47, %51 : vector<4x4x16xf32>
    %53 = arith.addf %46, %52 : vector<4x4x16xf32>
    %c0_i32_14 = arith.constant 0 : i32
    %54 = arith.addi %1, %c0_i32_14 : i32
    %c0_15 = arith.constant 0 : index
    %c3 = arith.constant 3 : index
    %55 = arith.index_cast %54 : i32 to index
    %c0_16 = arith.constant 0 : index
    %c0_17 = arith.constant 0 : index
    %56 = vector.load %arg2[%c0_15, %c3, %55, %c0_16, %c0_17] : memref<1x4x5x5x16xbf16, #tpu.memory_space<vmem>>, vector<1x1x4x5x16xbf16>
    %57 = vector.shape_cast %56 : vector<1x1x4x5x16xbf16> to vector<4x5x16xbf16>
    %58 = arith.extf %57 : vector<4x5x16xbf16> to vector<4x5x16xf32>
    %59 = vector.extract_strided_slice %58 {offsets = [0, 0, 0], sizes = [4, 4, 16], strides = [1, 1, 1]} : vector<4x5x16xf32> to vector<4x4x16xf32>
    %60 = vector.extract_strided_slice %2 {offsets = [4, 0, 0], sizes = [1, 1, 16], strides = [1, 1, 1]} : vector<9x1x16xf32> to vector<1x1x16xf32>
    %61 = vector.shape_cast %60 : vector<1x1x16xf32> to vector<1x16xf32>
    %62 = vector.shape_cast %61 : vector<1x16xf32> to vector<1x1x16xf32>
    %63 = vector.broadcast %62 : vector<1x1x16xf32> to vector<4x4x16xf32>
    %64 = arith.mulf %59, %63 : vector<4x4x16xf32>
    %65 = arith.addf %53, %64 : vector<4x4x16xf32>
    %c1_i32 = arith.constant 1 : i32
    %66 = arith.addi %1, %c1_i32 : i32
    %c0_18 = arith.constant 0 : index
    %c0_19 = arith.constant 0 : index
    %67 = arith.index_cast %66 : i32 to index
    %c0_20 = arith.constant 0 : index
    %c0_21 = arith.constant 0 : index
    %68 = vector.load %arg2[%c0_18, %c0_19, %67, %c0_20, %c0_21] : memref<1x4x5x5x16xbf16, #tpu.memory_space<vmem>>, vector<1x1x4x5x16xbf16>
    %69 = vector.shape_cast %68 : vector<1x1x4x5x16xbf16> to vector<4x5x16xbf16>
    %70 = arith.extf %69 : vector<4x5x16xbf16> to vector<4x5x16xf32>
    %71 = vector.extract_strided_slice %70 {offsets = [0, 0, 0], sizes = [4, 4, 16], strides = [1, 1, 1]} : vector<4x5x16xf32> to vector<4x4x16xf32>
    %72 = vector.extract_strided_slice %2 {offsets = [6, 0, 0], sizes = [1, 1, 16], strides = [1, 1, 1]} : vector<9x1x16xf32> to vector<1x1x16xf32>
    %73 = vector.shape_cast %72 : vector<1x1x16xf32> to vector<1x16xf32>
    %74 = vector.shape_cast %73 : vector<1x16xf32> to vector<1x1x16xf32>
    %75 = vector.broadcast %74 : vector<1x1x16xf32> to vector<4x4x16xf32>
    %76 = arith.mulf %71, %75 : vector<4x4x16xf32>
    %77 = arith.addf %65, %76 : vector<4x4x16xf32>
    %78 = vector.extract_strided_slice %70 {offsets = [0, 1, 0], sizes = [4, 4, 16], strides = [1, 1, 1]} : vector<4x5x16xf32> to vector<4x4x16xf32>
    %79 = vector.extract_strided_slice %2 {offsets = [8, 0, 0], sizes = [1, 1, 16], strides = [1, 1, 1]} : vector<9x1x16xf32> to vector<1x1x16xf32>
    %80 = vector.shape_cast %79 : vector<1x1x16xf32> to vector<1x16xf32>
    %81 = vector.shape_cast %80 : vector<1x16xf32> to vector<1x1x16xf32>
    %82 = vector.broadcast %81 : vector<1x1x16xf32> to vector<4x4x16xf32>
    %83 = arith.mulf %78, %82 : vector<4x4x16xf32>
    %84 = arith.addf %77, %83 : vector<4x4x16xf32>
    %c1_i32_22 = arith.constant 1 : i32
    %85 = arith.addi %1, %c1_i32_22 : i32
    %c0_23 = arith.constant 0 : index
    %c1_24 = arith.constant 1 : index
    %86 = arith.index_cast %85 : i32 to index
    %c0_25 = arith.constant 0 : index
    %c0_26 = arith.constant 0 : index
    %87 = vector.load %arg2[%c0_23, %c1_24, %86, %c0_25, %c0_26] : memref<1x4x5x5x16xbf16, #tpu.memory_space<vmem>>, vector<1x1x4x5x16xbf16>
    %88 = vector.shape_cast %87 : vector<1x1x4x5x16xbf16> to vector<4x5x16xbf16>
    %89 = arith.extf %88 : vector<4x5x16xbf16> to vector<4x5x16xf32>
    %90 = vector.extract_strided_slice %89 {offsets = [0, 0, 0], sizes = [4, 4, 16], strides = [1, 1, 1]} : vector<4x5x16xf32> to vector<4x4x16xf32>
    %91 = vector.extract_strided_slice %2 {offsets = [7, 0, 0], sizes = [1, 1, 16], strides = [1, 1, 1]} : vector<9x1x16xf32> to vector<1x1x16xf32>
    %92 = vector.shape_cast %91 : vector<1x1x16xf32> to vector<1x16xf32>
    %93 = vector.shape_cast %92 : vector<1x16xf32> to vector<1x1x16xf32>
    %94 = vector.broadcast %93 : vector<1x1x16xf32> to vector<4x4x16xf32>
    %95 = arith.mulf %90, %94 : vector<4x4x16xf32>
    %96 = arith.addf %84, %95 : vector<4x4x16xf32>
    %c0_27 = arith.constant 0 : index
    %c0_28 = arith.constant 0 : index
    %97 = vector.load %arg4[%c0_27, %c0_28] : memref<1x16xf32, #tpu.memory_space<vmem>>, vector<1x16xf32>
    %98 = vector.shape_cast %97 : vector<1x16xf32> to vector<1x1x16xf32>
    %99 = vector.broadcast %98 : vector<1x1x16xf32> to vector<4x4x16xf32>
    %100 = arith.mulf %96, %99 : vector<4x4x16xf32>
    %c0_29 = arith.constant 0 : index
    %c0_30 = arith.constant 0 : index
    %101 = vector.load %arg5[%c0_29, %c0_30] : memref<1x16xf32, #tpu.memory_space<vmem>>, vector<1x16xf32>
    %102 = vector.shape_cast %101 : vector<1x16xf32> to vector<1x1x16xf32>
    %103 = vector.broadcast %102 : vector<1x1x16xf32> to vector<4x4x16xf32>
    %104 = arith.addf %100, %103 : vector<4x4x16xf32>
    %cst_31 = arith.constant 0.000000e+00 : f32
    %105 = vector.broadcast %cst_31 : f32 to vector<4x4x16xf32>
    %106 = arith.maximumf %104, %105 : vector<4x4x16xf32>
    %107 = arith.truncf %106 : vector<4x4x16xf32> to vector<4x4x16xbf16>
    %c0_32 = arith.constant 0 : index
    %c0_33 = arith.constant 0 : index
    %c0_34 = arith.constant 0 : index
    %c0_35 = arith.constant 0 : index
    %108 = vector.load %arg6[%c0_32, %c0_33, %c0_34, %c0_35] : memref<1x4x4x16xbf16, #tpu.memory_space<vmem>>, vector<1x4x4x16xbf16>
    %109 = vector.shape_cast %108 : vector<1x4x4x16xbf16> to vector<4x4x16xbf16>
    %110 = vector.shape_cast %107 : vector<4x4x16xbf16> to vector<1x4x4x16xbf16>
    tpu.vector_store %arg6[%c0_32, %c0_33, %c0_34, %c0_35], %110 {strides = array<i32>} : memref<1x4x4x16xbf16, #tpu.memory_space<vmem>>, vector<1x4x4x16xbf16>,
    %cst_36 = arith.constant dense<0.000000e+00> : vector<4x16xf32>
    %111 = vector.multi_reduction <add>, %106, %cst_36 [0] : vector<4x4x16xf32> to vector<4x16xf32>
    %cst_37 = arith.constant dense<0.000000e+00> : vector<16xf32>
    %112 = vector.multi_reduction <add>, %111, %cst_37 [0] : vector<4x16xf32> to vector<16xf32>
    %113 = vector.shape_cast %112 : vector<16xf32> to vector<1x16xf32>
    %cst_38 = arith.constant 6.250000e-02 : f32
    %114 = vector.broadcast %cst_38 : f32 to vector<1x16xf32>
    %115 = arith.mulf %113, %114 : vector<1x16xf32>
    %c0_i32_39 = arith.constant 0 : i32
    %116 = arith.cmpi eq, %arg1, %c0_i32_39 : i32
    %117 = arith.extui %116 : i1 to i32
    %c0_i32_40 = arith.constant 0 : i32
    %118 = arith.cmpi ne, %117, %c0_i32_40 : i32
    scf.if %118 {
      %c0_43 = arith.constant 0 : index
      %c0_44 = arith.constant 0 : index
      %c0_45 = arith.constant 0 : index
      %122 = vector.load %arg7[%c0_43, %c0_44, %c0_45] : memref<1x1x16xf32, #tpu.memory_space<vmem>>, vector<1x1x16xf32>
      %123 = vector.shape_cast %122 : vector<1x1x16xf32> to vector<1x16xf32>
      %124 = vector.shape_cast %115 : vector<1x16xf32> to vector<1x1x16xf32>
      tpu.vector_store %arg7[%c0_43, %c0_44, %c0_45], %124 {strides = array<i32>} : memref<1x1x16xf32, #tpu.memory_space<vmem>>, vector<1x1x16xf32>,
    } else {
    }
    %c0_i32_41 = arith.constant 0 : i32
    %119 = arith.cmpi sgt, %arg1, %c0_i32_41 : i32
    %120 = arith.extui %119 : i1 to i32
    %c0_i32_42 = arith.constant 0 : i32
    %121 = arith.cmpi ne, %120, %c0_i32_42 : i32
    scf.if %121 {
      %c0_43 = arith.constant 0 : index
      %c0_44 = arith.constant 0 : index
      %c0_45 = arith.constant 0 : index
      %122 = vector.load %arg7[%c0_43, %c0_44, %c0_45] : memref<1x1x16xf32, #tpu.memory_space<vmem>>, vector<1x1x16xf32>
      %123 = vector.shape_cast %122 : vector<1x1x16xf32> to vector<1x16xf32>
      %124 = arith.addf %123, %115 : vector<1x16xf32>
      %c0_46 = arith.constant 0 : index
      %c0_47 = arith.constant 0 : index
      %c0_48 = arith.constant 0 : index
      %125 = vector.load %arg7[%c0_46, %c0_47, %c0_48] : memref<1x1x16xf32, #tpu.memory_space<vmem>>, vector<1x1x16xf32>
      %126 = vector.shape_cast %125 : vector<1x1x16xf32> to vector<1x16xf32>
      %127 = vector.shape_cast %124 : vector<1x16xf32> to vector<1x1x16xf32>
      tpu.vector_store %arg7[%c0_46, %c0_47, %c0_48], %127 {strides = array<i32>} : memref<1x1x16xf32, #tpu.memory_space<vmem>>, vector<1x1x16xf32>,
    } else {
    }
    return
  }
  func.func @transform_0(%arg0: i32, %arg1: i32) -> (i32, i32, i32, i32, i32) {
    %c0_i32 = arith.constant 0 : i32
    %c0_i32_0 = arith.constant 0 : i32
    %c0_i32_1 = arith.constant 0 : i32
    %c0_i32_2 = arith.constant 0 : i32
    %c0_i32_3 = arith.constant 0 : i32
    return %arg0, %c0_i32, %c0_i32_0, %c0_i32_1, %c0_i32_2 : i32, i32, i32, i32, i32
  }
  func.func @transform_1(%arg0: i32, %arg1: i32) -> (i32, i32, i32) {
    %c0_i32 = arith.constant 0 : i32
    %c0_i32_0 = arith.constant 0 : i32
    %c0_i32_1 = arith.constant 0 : i32
    %c0_i32_2 = arith.constant 0 : i32
    return %c0_i32, %c0_i32_0, %c0_i32_1 : i32, i32, i32
  }
  func.func @transform_2(%arg0: i32, %arg1: i32) -> (i32, i32) {
    %c0_i32 = arith.constant 0 : i32
    %c0_i32_0 = arith.constant 0 : i32
    %c0_i32_1 = arith.constant 0 : i32
    return %c0_i32, %c0_i32_0 : i32, i32
  }
  func.func @transform_3(%arg0: i32, %arg1: i32) -> (i32, i32) {
    %c0_i32 = arith.constant 0 : i32
    %c0_i32_0 = arith.constant 0 : i32
    %c0_i32_1 = arith.constant 0 : i32
    return %c0_i32, %c0_i32_0 : i32, i32
  }
  func.func @transform_4(%arg0: i32, %arg1: i32) -> (i32, i32, i32, i32) {
    %c0_i32 = arith.constant 0 : i32
    %c0_i32_0 = arith.constant 0 : i32
    %c0_i32_1 = arith.constant 0 : i32
    return %arg0, %arg1, %c0_i32, %c0_i32_0 : i32, i32, i32, i32
  }
  func.func @transform_5(%arg0: i32, %arg1: i32) -> (i32, i32, i32) {
    %c0_i32 = arith.constant 0 : i32
    %c0_i32_0 = arith.constant 0 : i32
    %c0_i32_1 = arith.constant 0 : i32
    return %arg0, %c0_i32, %c0_i32_0 : i32, i32, i32
  }
}

module attributes {stable_mosaic.version = 11 : i64} {
  func.func @kern(%arg0: i32, %arg1: memref<32x16xbf16, #tpu.memory_space<vmem>>, %arg2: memref<16x64xbf16, #tpu.memory_space<vmem>>, %arg3: memref<1x64xf32, #tpu.memory_space<vmem>>, %arg4: memref<1x64xf32, #tpu.memory_space<vmem>>, %arg5: memref<32x64xbf16, #tpu.memory_space<vmem>>) attributes {dimension_semantics = [#tpu.dimension_semantics<parallel>], iteration_bounds = array<i64: 1>, scalar_prefetch = 0 : i64, scratch_operands = 0 : i64, tpu.core_type = #tpu.core_type<tc>, window_params = [{transform_indices = @transform_0, window_bounds = array<i64: 32, 16>}, {pipeline_mode = #tpu.pipeline_mode<synchronous>, transform_indices = @transform_1, window_bounds = array<i64: 16, 64>}, {pipeline_mode = #tpu.pipeline_mode<synchronous>, transform_indices = @transform_2, window_bounds = array<i64: 1, 64>}, {pipeline_mode = #tpu.pipeline_mode<synchronous>, transform_indices = @transform_3, window_bounds = array<i64: 1, 64>}, {transform_indices = @transform_4, window_bounds = array<i64: 32, 64>}]} {
    %c0 = arith.constant 0 : index
    %c0_0 = arith.constant 0 : index
    %0 = vector.load %arg1[%c0, %c0_0] : memref<32x16xbf16, #tpu.memory_space<vmem>>, vector<32x16xbf16>
    %c0_1 = arith.constant 0 : index
    %c0_2 = arith.constant 0 : index
    %1 = vector.load %arg2[%c0_1, %c0_2] : memref<16x64xbf16, #tpu.memory_space<vmem>>, vector<16x64xbf16>
    %cst = arith.constant dense<0.000000e+00> : vector<32x64xf32>
    %2 = tpu.matmul %0, %1, %cst {dimension_numbers = #tpu.dot_dimension_numbers<[1], [0], [0], [1], [0, 0, 1, 1], [], []>} : vector<32x16xbf16>, vector<16x64xbf16>, vector<32x64xf32> -> vector<32x64xf32>
    %c0_3 = arith.constant 0 : index
    %c0_4 = arith.constant 0 : index
    %3 = vector.load %arg3[%c0_3, %c0_4] : memref<1x64xf32, #tpu.memory_space<vmem>>, vector<1x64xf32>
    %4 = vector.broadcast %3 : vector<1x64xf32> to vector<32x64xf32>
    %5 = arith.mulf %2, %4 : vector<32x64xf32>
    %c0_5 = arith.constant 0 : index
    %c0_6 = arith.constant 0 : index
    %6 = vector.load %arg4[%c0_5, %c0_6] : memref<1x64xf32, #tpu.memory_space<vmem>>, vector<1x64xf32>
    %7 = vector.broadcast %6 : vector<1x64xf32> to vector<32x64xf32>
    %8 = arith.addf %5, %7 : vector<32x64xf32>
    %cst_7 = arith.constant 0.000000e+00 : f32
    %9 = vector.broadcast %cst_7 : f32 to vector<32x64xf32>
    %10 = arith.maximumf %8, %9 : vector<32x64xf32>
    %11 = arith.truncf %10 : vector<32x64xf32> to vector<32x64xbf16>
    %c0_8 = arith.constant 0 : index
    %c0_9 = arith.constant 0 : index
    %12 = vector.load %arg5[%c0_8, %c0_9] : memref<32x64xbf16, #tpu.memory_space<vmem>>, vector<32x64xbf16>
    tpu.vector_store %arg5[%c0_8, %c0_9], %11 {strides = array<i32>} : memref<32x64xbf16, #tpu.memory_space<vmem>>, vector<32x64xbf16>,
    return
  }
  func.func @transform_0(%arg0: i32) -> (i32, i32) {
    %c0_i32 = arith.constant 0 : i32
    %c0_i32_0 = arith.constant 0 : i32
    return %arg0, %c0_i32 : i32, i32
  }
  func.func @transform_1(%arg0: i32) -> (i32, i32) {
    %c0_i32 = arith.constant 0 : i32
    %c0_i32_0 = arith.constant 0 : i32
    %c0_i32_1 = arith.constant 0 : i32
    return %c0_i32, %c0_i32_0 : i32, i32
  }
  func.func @transform_2(%arg0: i32) -> (i32, i32) {
    %c0_i32 = arith.constant 0 : i32
    %c0_i32_0 = arith.constant 0 : i32
    %c0_i32_1 = arith.constant 0 : i32
    return %c0_i32, %c0_i32_0 : i32, i32
  }
  func.func @transform_3(%arg0: i32) -> (i32, i32) {
    %c0_i32 = arith.constant 0 : i32
    %c0_i32_0 = arith.constant 0 : i32
    %c0_i32_1 = arith.constant 0 : i32
    return %c0_i32, %c0_i32_0 : i32, i32
  }
  func.func @transform_4(%arg0: i32) -> (i32, i32) {
    %c0_i32 = arith.constant 0 : i32
    %c0_i32_0 = arith.constant 0 : i32
    return %arg0, %c0_i32 : i32, i32
  }
}

module attributes {stable_mosaic.version = 11 : i64} {
  func.func @kern(%arg0: i32, %arg1: memref<8x64xbf16, #tpu.memory_space<vmem>>, %arg2: memref<64x24xbf16, #tpu.memory_space<vmem>>, %arg3: memref<1x24xf32, #tpu.memory_space<vmem>>, %arg4: memref<1x24xf32, #tpu.memory_space<vmem>>, %arg5: memref<8x24xbf16, #tpu.memory_space<vmem>>) attributes {dimension_semantics = [#tpu.dimension_semantics<parallel>], iteration_bounds = array<i64: 1>, scalar_prefetch = 0 : i64, scratch_operands = 0 : i64, tpu.core_type = #tpu.core_type<tc>, window_params = [{transform_indices = @transform_0, window_bounds = array<i64: 8, 64>}, {pipeline_mode = #tpu.pipeline_mode<synchronous>, transform_indices = @transform_1, window_bounds = array<i64: 64, 24>}, {pipeline_mode = #tpu.pipeline_mode<synchronous>, transform_indices = @transform_2, window_bounds = array<i64: 1, 24>}, {pipeline_mode = #tpu.pipeline_mode<synchronous>, transform_indices = @transform_3, window_bounds = array<i64: 1, 24>}, {transform_indices = @transform_4, window_bounds = array<i64: 8, 24>}]} {
    %c0 = arith.constant 0 : index
    %c0_0 = arith.constant 0 : index
    %0 = vector.load %arg1[%c0, %c0_0] : memref<8x64xbf16, #tpu.memory_space<vmem>>, vector<8x64xbf16>
    %c0_1 = arith.constant 0 : index
    %c0_2 = arith.constant 0 : index
    %1 = vector.load %arg2[%c0_1, %c0_2] : memref<64x24xbf16, #tpu.memory_space<vmem>>, vector<64x24xbf16>
    %cst = arith.constant dense<0.000000e+00> : vector<8x24xf32>
    %2 = tpu.matmul %0, %1, %cst {dimension_numbers = #tpu.dot_dimension_numbers<[1], [0], [0], [1], [0, 0, 1, 1], [], []>} : vector<8x64xbf16>, vector<64x24xbf16>, vector<8x24xf32> -> vector<8x24xf32>
    %c0_3 = arith.constant 0 : index
    %c0_4 = arith.constant 0 : index
    %3 = vector.load %arg3[%c0_3, %c0_4] : memref<1x24xf32, #tpu.memory_space<vmem>>, vector<1x24xf32>
    %4 = vector.broadcast %3 : vector<1x24xf32> to vector<8x24xf32>
    %5 = arith.mulf %2, %4 : vector<8x24xf32>
    %c0_5 = arith.constant 0 : index
    %c0_6 = arith.constant 0 : index
    %6 = vector.load %arg4[%c0_5, %c0_6] : memref<1x24xf32, #tpu.memory_space<vmem>>, vector<1x24xf32>
    %7 = vector.broadcast %6 : vector<1x24xf32> to vector<8x24xf32>
    %8 = arith.addf %5, %7 : vector<8x24xf32>
    %9 = arith.truncf %8 : vector<8x24xf32> to vector<8x24xbf16>
    %c0_7 = arith.constant 0 : index
    %c0_8 = arith.constant 0 : index
    %10 = vector.load %arg5[%c0_7, %c0_8] : memref<8x24xbf16, #tpu.memory_space<vmem>>, vector<8x24xbf16>
    tpu.vector_store %arg5[%c0_7, %c0_8], %9 {strides = array<i32>} : memref<8x24xbf16, #tpu.memory_space<vmem>>, vector<8x24xbf16>,
    return
  }
  func.func @transform_0(%arg0: i32) -> (i32, i32) {
    %c0_i32 = arith.constant 0 : i32
    %c0_i32_0 = arith.constant 0 : i32
    return %arg0, %c0_i32 : i32, i32
  }
  func.func @transform_1(%arg0: i32) -> (i32, i32) {
    %c0_i32 = arith.constant 0 : i32
    %c0_i32_0 = arith.constant 0 : i32
    %c0_i32_1 = arith.constant 0 : i32
    return %c0_i32, %c0_i32_0 : i32, i32
  }
  func.func @transform_2(%arg0: i32) -> (i32, i32) {
    %c0_i32 = arith.constant 0 : i32
    %c0_i32_0 = arith.constant 0 : i32
    %c0_i32_1 = arith.constant 0 : i32
    return %c0_i32, %c0_i32_0 : i32, i32
  }
  func.func @transform_3(%arg0: i32) -> (i32, i32) {
    %c0_i32 = arith.constant 0 : i32
    %c0_i32_0 = arith.constant 0 : i32
    %c0_i32_1 = arith.constant 0 : i32
    return %c0_i32, %c0_i32_0 : i32, i32
  }
  func.func @transform_4(%arg0: i32) -> (i32, i32) {
    %c0_i32 = arith.constant 0 : i32
    %c0_i32_0 = arith.constant 0 : i32
    return %arg0, %c0_i32 : i32, i32
  }
}

module attributes {stable_mosaic.version = 11 : i64} {
  func.func @kernel(%arg0: i32, %arg1: i32, %arg2: memref<1x4x3x3x64xbf16, #tpu.memory_space<vmem>>, %arg3: memref<9x1x64xf32, #tpu.memory_space<vmem>>, %arg4: memref<1x64xf32, #tpu.memory_space<vmem>>, %arg5: memref<1x64xf32, #tpu.memory_space<vmem>>, %arg6: memref<1x2x2x64xbf16, #tpu.memory_space<vmem>>, %arg7: memref<1x1x64xf32, #tpu.memory_space<vmem>>) attributes {dimension_semantics = [#tpu.dimension_semantics<parallel>, #tpu.dimension_semantics<arbitrary>], iteration_bounds = array<i64: 2, 1>, scalar_prefetch = 0 : i64, scratch_operands = 0 : i64, tpu.core_type = #tpu.core_type<tc>, window_params = [{transform_indices = @transform_0, window_bounds = array<i64: 1, 4, 3, 3, 64>}, {pipeline_mode = #tpu.pipeline_mode<synchronous>, transform_indices = @transform_1, window_bounds = array<i64: 9, 1, 64>}, {pipeline_mode = #tpu.pipeline_mode<synchronous>, transform_indices = @transform_2, window_bounds = array<i64: 1, 64>}, {pipeline_mode = #tpu.pipeline_mode<synchronous>, transform_indices = @transform_3, window_bounds = array<i64: 1, 64>}, {transform_indices = @transform_4, window_bounds = array<i64: 1, 2, 2, 64>}, {transform_indices = @transform_5, window_bounds = array<i64: 1, 1, 64>}]} {
    %c2_i32 = arith.constant 2 : i32
    %0 = arith.muli %arg1, %c2_i32 : i32
    %1 = tpu.assume_multiple %0, 2 : i32
    %c0 = arith.constant 0 : index
    %c0_0 = arith.constant 0 : index
    %c0_1 = arith.constant 0 : index
    %2 = vector.load %arg3[%c0, %c0_0, %c0_1] : memref<9x1x64xf32, #tpu.memory_space<vmem>>, vector<9x1x64xf32>
    %cst = arith.constant 0.000000e+00 : f32
    %3 = vector.broadcast %cst : f32 to vector<2x2x64xf32>
    %c0_i32 = arith.constant 0 : i32
    %4 = arith.addi %1, %c0_i32 : i32
    %c0_2 = arith.constant 0 : index
    %c0_3 = arith.constant 0 : index
    %5 = arith.index_cast %4 : i32 to index
    %c0_4 = arith.constant 0 : index
    %c0_5 = arith.constant 0 : index
    %6 = vector.load %arg2[%c0_2, %c0_3, %5, %c0_4, %c0_5] : memref<1x4x3x3x64xbf16, #tpu.memory_space<vmem>>, vector<1x1x2x3x64xbf16>
    %7 = vector.shape_cast %6 : vector<1x1x2x3x64xbf16> to vector<2x3x64xbf16>
    %8 = arith.extf %7 : vector<2x3x64xbf16> to vector<2x3x64xf32>
    %9 = vector.extract_strided_slice %8 {offsets = [0, 0, 0], sizes = [2, 2, 64], strides = [1, 1, 1]} : vector<2x3x64xf32> to vector<2x2x64xf32>
    %10 = vector.extract_strided_slice %2 {offsets = [0, 0, 0], sizes = [1, 1, 64], strides = [1, 1, 1]} : vector<9x1x64xf32> to vector<1x1x64xf32>
    %11 = vector.shape_cast %10 : vector<1x1x64xf32> to vector<1x64xf32>
    %12 = vector.shape_cast %11 : vector<1x64xf32> to vector<1x1x64xf32>
    %13 = vector.broadcast %12 : vector<1x1x64xf32> to vector<2x2x64xf32>
    %14 = arith.mulf %9, %13 : vector<2x2x64xf32>
    %15 = arith.addf %3, %14 : vector<2x2x64xf32>
    %16 = vector.extract_strided_slice %8 {offsets = [0, 1, 0], sizes = [2, 2, 64], strides = [1, 1, 1]} : vector<2x3x64xf32> to vector<2x2x64xf32>
    %17 = vector.extract_strided_slice %2 {offsets = [2, 0, 0], sizes = [1, 1, 64], strides = [1, 1, 1]} : vector<9x1x64xf32> to vector<1x1x64xf32>
    %18 = vector.shape_cast %17 : vector<1x1x64xf32> to vector<1x64xf32>
    %19 = vector.shape_cast %18 : vector<1x64xf32> to vector<1x1x64xf32>
    %20 = vector.broadcast %19 : vector<1x1x64xf32> to vector<2x2x64xf32>
    %21 = arith.mulf %16, %20 : vector<2x2x64xf32>
    %22 = arith.addf %15, %21 : vector<2x2x64xf32>
    %c0_i32_6 = arith.constant 0 : i32
    %23 = arith.addi %1, %c0_i32_6 : i32
    %c0_7 = arith.constant 0 : index
    %c1 = arith.constant 1 : index
    %24 = arith.index_cast %23 : i32 to index
    %c0_8 = arith.constant 0 : index
    %c0_9 = arith.constant 0 : index
    %25 = vector.load %arg2[%c0_7, %c1, %24, %c0_8, %c0_9] : memref<1x4x3x3x64xbf16, #tpu.memory_space<vmem>>, vector<1x1x2x3x64xbf16>
    %26 = vector.shape_cast %25 : vector<1x1x2x3x64xbf16> to vector<2x3x64xbf16>
    %27 = arith.extf %26 : vector<2x3x64xbf16> to vector<2x3x64xf32>
    %28 = vector.extract_strided_slice %27 {offsets = [0, 0, 0], sizes = [2, 2, 64], strides = [1, 1, 1]} : vector<2x3x64xf32> to vector<2x2x64xf32>
    %29 = vector.extract_strided_slice %2 {offsets = [1, 0, 0], sizes = [1, 1, 64], strides = [1, 1, 1]} : vector<9x1x64xf32> to vector<1x1x64xf32>
    %30 = vector.shape_cast %29 : vector<1x1x64xf32> to vector<1x64xf32>
    %31 = vector.shape_cast %30 : vector<1x64xf32> to vector<1x1x64xf32>
    %32 = vector.broadcast %31 : vector<1x1x64xf32> to vector<2x2x64xf32>
    %33 = arith.mulf %28, %32 : vector<2x2x64xf32>
    %34 = arith.addf %22, %33 : vector<2x2x64xf32>
    %c0_i32_10 = arith.constant 0 : i32
    %35 = arith.addi %1, %c0_i32_10 : i32
    %c0_11 = arith.constant 0 : index
    %c2 = arith.constant 2 : index
    %36 = arith.index_cast %35 : i32 to index
    %c0_12 = arith.constant 0 : index
    %c0_13 = arith.constant 0 : index
    %37 = vector.load %arg2[%c0_11, %c2, %36, %c0_12, %c0_13] : memref<1x4x3x3x64xbf16, #tpu.memory_space<vmem>>, vector<1x1x2x3x64xbf16>
    %38 = vector.shape_cast %37 : vector<1x1x2x3x64xbf16> to vector<2x3x64xbf16>
    %39 = arith.extf %38 : vector<2x3x64xbf16> to vector<2x3x64xf32>
    %40 = vector.extract_strided_slice %39 {offsets = [0, 0, 0], sizes = [2, 2, 64], strides = [1, 1, 1]} : vector<2x3x64xf32> to vector<2x2x64xf32>
    %41 = vector.extract_strided_slice %2 {offsets = [3, 0, 0], sizes = [1, 1, 64], strides = [1, 1, 1]} : vector<9x1x64xf32> to vector<1x1x64xf32>
    %42 = vector.shape_cast %41 : vector<1x1x64xf32> to vector<1x64xf32>
    %43 = vector.shape_cast %42 : vector<1x64xf32> to vector<1x1x64xf32>
    %44 = vector.broadcast %43 : vector<1x1x64xf32> to vector<2x2x64xf32>
    %45 = arith.mulf %40, %44 : vector<2x2x64xf32>
    %46 = arith.addf %34, %45 : vector<2x2x64xf32>
    %47 = vector.extract_strided_slice %39 {offsets = [0, 1, 0], sizes = [2, 2, 64], strides = [1, 1, 1]} : vector<2x3x64xf32> to vector<2x2x64xf32>
    %48 = vector.extract_strided_slice %2 {offsets = [5, 0, 0], sizes = [1, 1, 64], strides = [1, 1, 1]} : vector<9x1x64xf32> to vector<1x1x64xf32>
    %49 = vector.shape_cast %48 : vector<1x1x64xf32> to vector<1x64xf32>
    %50 = vector.shape_cast %49 : vector<1x64xf32> to vector<1x1x64xf32>
    %51 = vector.broadcast %50 : vector<1x1x64xf32> to vector<2x2x64xf32>
    %52 = arith.mulf %47, %51 : vector<2x2x64xf32>
    %53 = arith.addf %46, %52 : vector<2x2x64xf32>
    %c0_i32_14 = arith.constant 0 : i32
    %54 = arith.addi %1, %c0_i32_14 : i32
    %c0_15 = arith.constant 0 : index
    %c3 = arith.constant 3 : index
    %55 = arith.index_cast %54 : i32 to index
    %c0_16 = arith.constant 0 : index
    %c0_17 = arith.constant 0 : index
    %56 = vector.load %arg2[%c0_15, %c3, %55, %c0_16, %c0_17] : memref<1x4x3x3x64xbf16, #tpu.memory_space<vmem>>, vector<1x1x2x3x64xbf16>
    %57 = vector.shape_cast %56 : vector<1x1x2x3x64xbf16> to vector<2x3x64xbf16>
    %58 = arith.extf %57 : vector<2x3x64xbf16> to vector<2x3x64xf32>
    %59 = vector.extract_strided_slice %58 {offsets = [0, 0, 0], sizes = [2, 2, 64], strides = [1, 1, 1]} : vector<2x3x64xf32> to vector<2x2x64xf32>
    %60 = vector.extract_strided_slice %2 {offsets = [4, 0, 0], sizes = [1, 1, 64], strides = [1, 1, 1]} : vector<9x1x64xf32> to vector<1x1x64xf32>
    %61 = vector.shape_cast %60 : vector<1x1x64xf32> to vector<1x64xf32>
    %62 = vector.shape_cast %61 : vector<1x64xf32> to vector<1x1x64xf32>
    %63 = vector.broadcast %62 : vector<1x1x64xf32> to vector<2x2x64xf32>
    %64 = arith.mulf %59, %63 : vector<2x2x64xf32>
    %65 = arith.addf %53, %64 : vector<2x2x64xf32>
    %c1_i32 = arith.constant 1 : i32
    %66 = arith.addi %1, %c1_i32 : i32
    %c0_18 = arith.constant 0 : index
    %c0_19 = arith.constant 0 : index
    %67 = arith.index_cast %66 : i32 to index
    %c0_20 = arith.constant 0 : index
    %c0_21 = arith.constant 0 : index
    %68 = vector.load %arg2[%c0_18, %c0_19, %67, %c0_20, %c0_21] : memref<1x4x3x3x64xbf16, #tpu.memory_space<vmem>>, vector<1x1x2x3x64xbf16>
    %69 = vector.shape_cast %68 : vector<1x1x2x3x64xbf16> to vector<2x3x64xbf16>
    %70 = arith.extf %69 : vector<2x3x64xbf16> to vector<2x3x64xf32>
    %71 = vector.extract_strided_slice %70 {offsets = [0, 0, 0], sizes = [2, 2, 64], strides = [1, 1, 1]} : vector<2x3x64xf32> to vector<2x2x64xf32>
    %72 = vector.extract_strided_slice %2 {offsets = [6, 0, 0], sizes = [1, 1, 64], strides = [1, 1, 1]} : vector<9x1x64xf32> to vector<1x1x64xf32>
    %73 = vector.shape_cast %72 : vector<1x1x64xf32> to vector<1x64xf32>
    %74 = vector.shape_cast %73 : vector<1x64xf32> to vector<1x1x64xf32>
    %75 = vector.broadcast %74 : vector<1x1x64xf32> to vector<2x2x64xf32>
    %76 = arith.mulf %71, %75 : vector<2x2x64xf32>
    %77 = arith.addf %65, %76 : vector<2x2x64xf32>
    %78 = vector.extract_strided_slice %70 {offsets = [0, 1, 0], sizes = [2, 2, 64], strides = [1, 1, 1]} : vector<2x3x64xf32> to vector<2x2x64xf32>
    %79 = vector.extract_strided_slice %2 {offsets = [8, 0, 0], sizes = [1, 1, 64], strides = [1, 1, 1]} : vector<9x1x64xf32> to vector<1x1x64xf32>
    %80 = vector.shape_cast %79 : vector<1x1x64xf32> to vector<1x64xf32>
    %81 = vector.shape_cast %80 : vector<1x64xf32> to vector<1x1x64xf32>
    %82 = vector.broadcast %81 : vector<1x1x64xf32> to vector<2x2x64xf32>
    %83 = arith.mulf %78, %82 : vector<2x2x64xf32>
    %84 = arith.addf %77, %83 : vector<2x2x64xf32>
    %c1_i32_22 = arith.constant 1 : i32
    %85 = arith.addi %1, %c1_i32_22 : i32
    %c0_23 = arith.constant 0 : index
    %c1_24 = arith.constant 1 : index
    %86 = arith.index_cast %85 : i32 to index
    %c0_25 = arith.constant 0 : index
    %c0_26 = arith.constant 0 : index
    %87 = vector.load %arg2[%c0_23, %c1_24, %86, %c0_25, %c0_26] : memref<1x4x3x3x64xbf16, #tpu.memory_space<vmem>>, vector<1x1x2x3x64xbf16>
    %88 = vector.shape_cast %87 : vector<1x1x2x3x64xbf16> to vector<2x3x64xbf16>
    %89 = arith.extf %88 : vector<2x3x64xbf16> to vector<2x3x64xf32>
    %90 = vector.extract_strided_slice %89 {offsets = [0, 0, 0], sizes = [2, 2, 64], strides = [1, 1, 1]} : vector<2x3x64xf32> to vector<2x2x64xf32>
    %91 = vector.extract_strided_slice %2 {offsets = [7, 0, 0], sizes = [1, 1, 64], strides = [1, 1, 1]} : vector<9x1x64xf32> to vector<1x1x64xf32>
    %92 = vector.shape_cast %91 : vector<1x1x64xf32> to vector<1x64xf32>
    %93 = vector.shape_cast %92 : vector<1x64xf32> to vector<1x1x64xf32>
    %94 = vector.broadcast %93 : vector<1x1x64xf32> to vector<2x2x64xf32>
    %95 = arith.mulf %90, %94 : vector<2x2x64xf32>
    %96 = arith.addf %84, %95 : vector<2x2x64xf32>
    %c0_27 = arith.constant 0 : index
    %c0_28 = arith.constant 0 : index
    %97 = vector.load %arg4[%c0_27, %c0_28] : memref<1x64xf32, #tpu.memory_space<vmem>>, vector<1x64xf32>
    %98 = vector.shape_cast %97 : vector<1x64xf32> to vector<1x1x64xf32>
    %99 = vector.broadcast %98 : vector<1x1x64xf32> to vector<2x2x64xf32>
    %100 = arith.mulf %96, %99 : vector<2x2x64xf32>
    %c0_29 = arith.constant 0 : index
    %c0_30 = arith.constant 0 : index
    %101 = vector.load %arg5[%c0_29, %c0_30] : memref<1x64xf32, #tpu.memory_space<vmem>>, vector<1x64xf32>
    %102 = vector.shape_cast %101 : vector<1x64xf32> to vector<1x1x64xf32>
    %103 = vector.broadcast %102 : vector<1x1x64xf32> to vector<2x2x64xf32>
    %104 = arith.addf %100, %103 : vector<2x2x64xf32>
    %cst_31 = arith.constant 0.000000e+00 : f32
    %105 = vector.broadcast %cst_31 : f32 to vector<2x2x64xf32>
    %106 = arith.maximumf %104, %105 : vector<2x2x64xf32>
    %107 = arith.truncf %106 : vector<2x2x64xf32> to vector<2x2x64xbf16>
    %c0_32 = arith.constant 0 : index
    %c0_33 = arith.constant 0 : index
    %c0_34 = arith.constant 0 : index
    %c0_35 = arith.constant 0 : index
    %108 = vector.load %arg6[%c0_32, %c0_33, %c0_34, %c0_35] : memref<1x2x2x64xbf16, #tpu.memory_space<vmem>>, vector<1x2x2x64xbf16>
    %109 = vector.shape_cast %108 : vector<1x2x2x64xbf16> to vector<2x2x64xbf16>
    %110 = vector.shape_cast %107 : vector<2x2x64xbf16> to vector<1x2x2x64xbf16>
    tpu.vector_store %arg6[%c0_32, %c0_33, %c0_34, %c0_35], %110 {strides = array<i32>} : memref<1x2x2x64xbf16, #tpu.memory_space<vmem>>, vector<1x2x2x64xbf16>,
    %cst_36 = arith.constant dense<0.000000e+00> : vector<2x64xf32>
    %111 = vector.multi_reduction <add>, %106, %cst_36 [0] : vector<2x2x64xf32> to vector<2x64xf32>
    %cst_37 = arith.constant dense<0.000000e+00> : vector<64xf32>
    %112 = vector.multi_reduction <add>, %111, %cst_37 [0] : vector<2x64xf32> to vector<64xf32>
    %113 = vector.shape_cast %112 : vector<64xf32> to vector<1x64xf32>
    %cst_38 = arith.constant 2.500000e-01 : f32
    %114 = vector.broadcast %cst_38 : f32 to vector<1x64xf32>
    %115 = arith.mulf %113, %114 : vector<1x64xf32>
    %c0_i32_39 = arith.constant 0 : i32
    %116 = arith.cmpi eq, %arg1, %c0_i32_39 : i32
    %117 = arith.extui %116 : i1 to i32
    %c0_i32_40 = arith.constant 0 : i32
    %118 = arith.cmpi ne, %117, %c0_i32_40 : i32
    scf.if %118 {
      %c0_43 = arith.constant 0 : index
      %c0_44 = arith.constant 0 : index
      %c0_45 = arith.constant 0 : index
      %122 = vector.load %arg7[%c0_43, %c0_44, %c0_45] : memref<1x1x64xf32, #tpu.memory_space<vmem>>, vector<1x1x64xf32>
      %123 = vector.shape_cast %122 : vector<1x1x64xf32> to vector<1x64xf32>
      %124 = vector.shape_cast %115 : vector<1x64xf32> to vector<1x1x64xf32>
      tpu.vector_store %arg7[%c0_43, %c0_44, %c0_45], %124 {strides = array<i32>} : memref<1x1x64xf32, #tpu.memory_space<vmem>>, vector<1x1x64xf32>,
    } else {
    }
    %c0_i32_41 = arith.constant 0 : i32
    %119 = arith.cmpi sgt, %arg1, %c0_i32_41 : i32
    %120 = arith.extui %119 : i1 to i32
    %c0_i32_42 = arith.constant 0 : i32
    %121 = arith.cmpi ne, %120, %c0_i32_42 : i32
    scf.if %121 {
      %c0_43 = arith.constant 0 : index
      %c0_44 = arith.constant 0 : index
      %c0_45 = arith.constant 0 : index
      %122 = vector.load %arg7[%c0_43, %c0_44, %c0_45] : memref<1x1x64xf32, #tpu.memory_space<vmem>>, vector<1x1x64xf32>
      %123 = vector.shape_cast %122 : vector<1x1x64xf32> to vector<1x64xf32>
      %124 = arith.addf %123, %115 : vector<1x64xf32>
      %c0_46 = arith.constant 0 : index
      %c0_47 = arith.constant 0 : index
      %c0_48 = arith.constant 0 : index
      %125 = vector.load %arg7[%c0_46, %c0_47, %c0_48] : memref<1x1x64xf32, #tpu.memory_space<vmem>>, vector<1x1x64xf32>
      %126 = vector.shape_cast %125 : vector<1x1x64xf32> to vector<1x64xf32>
      %127 = vector.shape_cast %124 : vector<1x64xf32> to vector<1x1x64xf32>
      tpu.vector_store %arg7[%c0_46, %c0_47, %c0_48], %127 {strides = array<i32>} : memref<1x1x64xf32, #tpu.memory_space<vmem>>, vector<1x1x64xf32>,
    } else {
    }
    return
  }
  func.func @transform_0(%arg0: i32, %arg1: i32) -> (i32, i32, i32, i32, i32) {
    %c0_i32 = arith.constant 0 : i32
    %c0_i32_0 = arith.constant 0 : i32
    %c0_i32_1 = arith.constant 0 : i32
    %c0_i32_2 = arith.constant 0 : i32
    %c0_i32_3 = arith.constant 0 : i32
    return %arg0, %c0_i32, %c0_i32_0, %c0_i32_1, %c0_i32_2 : i32, i32, i32, i32, i32
  }
  func.func @transform_1(%arg0: i32, %arg1: i32) -> (i32, i32, i32) {
    %c0_i32 = arith.constant 0 : i32
    %c0_i32_0 = arith.constant 0 : i32
    %c0_i32_1 = arith.constant 0 : i32
    %c0_i32_2 = arith.constant 0 : i32
    return %c0_i32, %c0_i32_0, %c0_i32_1 : i32, i32, i32
  }
  func.func @transform_2(%arg0: i32, %arg1: i32) -> (i32, i32) {
    %c0_i32 = arith.constant 0 : i32
    %c0_i32_0 = arith.constant 0 : i32
    %c0_i32_1 = arith.constant 0 : i32
    return %c0_i32, %c0_i32_0 : i32, i32
  }
  func.func @transform_3(%arg0: i32, %arg1: i32) -> (i32, i32) {
    %c0_i32 = arith.constant 0 : i32
    %c0_i32_0 = arith.constant 0 : i32
    %c0_i32_1 = arith.constant 0 : i32
    return %c0_i32, %c0_i32_0 : i32, i32
  }
  func.func @transform_4(%arg0: i32, %arg1: i32) -> (i32, i32, i32, i32) {
    %c0_i32 = arith.constant 0 : i32
    %c0_i32_0 = arith.constant 0 : i32
    %c0_i32_1 = arith.constant 0 : i32
    return %arg0, %arg1, %c0_i32, %c0_i32_0 : i32, i32, i32, i32
  }
  func.func @transform_5(%arg0: i32, %arg1: i32) -> (i32, i32, i32) {
    %c0_i32 = arith.constant 0 : i32
    %c0_i32_0 = arith.constant 0 : i32
    %c0_i32_1 = arith.constant 0 : i32
    return %arg0, %c0_i32, %c0_i32_0 : i32, i32, i32
  }
}

module attributes {stable_mosaic.version = 11 : i64} {
  func.func @kern(%arg0: i32, %arg1: memref<8x24xbf16, #tpu.memory_space<vmem>>, %arg2: memref<24x96xbf16, #tpu.memory_space<vmem>>, %arg3: memref<1x96xf32, #tpu.memory_space<vmem>>, %arg4: memref<1x96xf32, #tpu.memory_space<vmem>>, %arg5: memref<8x96xbf16, #tpu.memory_space<vmem>>) attributes {dimension_semantics = [#tpu.dimension_semantics<parallel>], iteration_bounds = array<i64: 1>, scalar_prefetch = 0 : i64, scratch_operands = 0 : i64, tpu.core_type = #tpu.core_type<tc>, window_params = [{transform_indices = @transform_0, window_bounds = array<i64: 8, 24>}, {pipeline_mode = #tpu.pipeline_mode<synchronous>, transform_indices = @transform_1, window_bounds = array<i64: 24, 96>}, {pipeline_mode = #tpu.pipeline_mode<synchronous>, transform_indices = @transform_2, window_bounds = array<i64: 1, 96>}, {pipeline_mode = #tpu.pipeline_mode<synchronous>, transform_indices = @transform_3, window_bounds = array<i64: 1, 96>}, {transform_indices = @transform_4, window_bounds = array<i64: 8, 96>}]} {
    %c0 = arith.constant 0 : index
    %c0_0 = arith.constant 0 : index
    %0 = vector.load %arg1[%c0, %c0_0] : memref<8x24xbf16, #tpu.memory_space<vmem>>, vector<8x24xbf16>
    %c0_1 = arith.constant 0 : index
    %c0_2 = arith.constant 0 : index
    %1 = vector.load %arg2[%c0_1, %c0_2] : memref<24x96xbf16, #tpu.memory_space<vmem>>, vector<24x96xbf16>
    %cst = arith.constant dense<0.000000e+00> : vector<8x96xf32>
    %2 = tpu.matmul %0, %1, %cst {dimension_numbers = #tpu.dot_dimension_numbers<[1], [0], [0], [1], [0, 0, 1, 1], [], []>} : vector<8x24xbf16>, vector<24x96xbf16>, vector<8x96xf32> -> vector<8x96xf32>
    %c0_3 = arith.constant 0 : index
    %c0_4 = arith.constant 0 : index
    %3 = vector.load %arg3[%c0_3, %c0_4] : memref<1x96xf32, #tpu.memory_space<vmem>>, vector<1x96xf32>
    %4 = vector.broadcast %3 : vector<1x96xf32> to vector<8x96xf32>
    %5 = arith.mulf %2, %4 : vector<8x96xf32>
    %c0_5 = arith.constant 0 : index
    %c0_6 = arith.constant 0 : index
    %6 = vector.load %arg4[%c0_5, %c0_6] : memref<1x96xf32, #tpu.memory_space<vmem>>, vector<1x96xf32>
    %7 = vector.broadcast %6 : vector<1x96xf32> to vector<8x96xf32>
    %8 = arith.addf %5, %7 : vector<8x96xf32>
    %cst_7 = arith.constant 3.000000e+00 : f32
    %9 = vector.broadcast %cst_7 : f32 to vector<8x96xf32>
    %10 = arith.addf %8, %9 : vector<8x96xf32>
    %cst_8 = arith.constant 0.000000e+00 : f32
    %cst_9 = arith.constant 6.000000e+00 : f32
    %11 = vector.broadcast %cst_8 : f32 to vector<8x96xf32>
    %12 = arith.maximumf %11, %10 : vector<8x96xf32>
    %13 = vector.broadcast %cst_9 : f32 to vector<8x96xf32>
    %14 = arith.minimumf %13, %12 : vector<8x96xf32>
    %cst_10 = arith.constant 0.166666672 : f32
    %15 = vector.broadcast %cst_10 : f32 to vector<8x96xf32>
    %16 = arith.mulf %14, %15 : vector<8x96xf32>
    %17 = arith.mulf %8, %16 : vector<8x96xf32>
    %18 = arith.truncf %17 : vector<8x96xf32> to vector<8x96xbf16>
    %c0_11 = arith.constant 0 : index
    %c0_12 = arith.constant 0 : index
    %19 = vector.load %arg5[%c0_11, %c0_12] : memref<8x96xbf16, #tpu.memory_space<vmem>>, vector<8x96xbf16>
    tpu.vector_store %arg5[%c0_11, %c0_12], %18 {strides = array<i32>} : memref<8x96xbf16, #tpu.memory_space<vmem>>, vector<8x96xbf16>,
    return
  }
  func.func @transform_0(%arg0: i32) -> (i32, i32) {
    %c0_i32 = arith.constant 0 : i32
    %c0_i32_0 = arith.constant 0 : i32
    return %arg0, %c0_i32 : i32, i32
  }
  func.func @transform_1(%arg0: i32) -> (i32, i32) {
    %c0_i32 = arith.constant 0 : i32
    %c0_i32_0 = arith.constant 0 : i32
    %c0_i32_1 = arith.constant 0 : i32
    return %c0_i32, %c0_i32_0 : i32, i32
  }
  func.func @transform_2(%arg0: i32) -> (i32, i32) {
    %c0_i32 = arith.constant 0 : i32
    %c0_i32_0 = arith.constant 0 : i32
    %c0_i32_1 = arith.constant 0 : i32
    return %c0_i32, %c0_i32_0 : i32, i32
  }
  func.func @transform_3(%arg0: i32) -> (i32, i32) {
    %c0_i32 = arith.constant 0 : i32
    %c0_i32_0 = arith.constant 0 : i32
    %c0_i32_1 = arith.constant 0 : i32
    return %c0_i32, %c0_i32_0 : i32, i32
  }
  func.func @transform_4(%arg0: i32) -> (i32, i32) {
    %c0_i32 = arith.constant 0 : i32
    %c0_i32_0 = arith.constant 0 : i32
    return %arg0, %c0_i32 : i32, i32
  }
}

module attributes {stable_mosaic.version = 11 : i64} {
  func.func @kernel(%arg0: i32, %arg1: i32, %arg2: memref<1x1x6x6x96xbf16, #tpu.memory_space<vmem>>, %arg3: memref<25x1x96xf32, #tpu.memory_space<vmem>>, %arg4: memref<1x96xf32, #tpu.memory_space<vmem>>, %arg5: memref<1x96xf32, #tpu.memory_space<vmem>>, %arg6: memref<1x2x2x96xbf16, #tpu.memory_space<vmem>>, %arg7: memref<1x1x96xf32, #tpu.memory_space<vmem>>) attributes {dimension_semantics = [#tpu.dimension_semantics<parallel>, #tpu.dimension_semantics<arbitrary>], iteration_bounds = array<i64: 2, 1>, scalar_prefetch = 0 : i64, scratch_operands = 0 : i64, tpu.core_type = #tpu.core_type<tc>, window_params = [{transform_indices = @transform_0, window_bounds = array<i64: 1, 1, 6, 6, 96>}, {pipeline_mode = #tpu.pipeline_mode<synchronous>, transform_indices = @transform_1, window_bounds = array<i64: 25, 1, 96>}, {pipeline_mode = #tpu.pipeline_mode<synchronous>, transform_indices = @transform_2, window_bounds = array<i64: 1, 96>}, {pipeline_mode = #tpu.pipeline_mode<synchronous>, transform_indices = @transform_3, window_bounds = array<i64: 1, 96>}, {transform_indices = @transform_4, window_bounds = array<i64: 1, 2, 2, 96>}, {transform_indices = @transform_5, window_bounds = array<i64: 1, 1, 96>}]} {
    %c2_i32 = arith.constant 2 : i32
    %0 = arith.muli %arg1, %c2_i32 : i32
    %1 = tpu.assume_multiple %0, 2 : i32
    %c0 = arith.constant 0 : index
    %c0_0 = arith.constant 0 : index
    %c0_1 = arith.constant 0 : index
    %2 = vector.load %arg3[%c0, %c0_0, %c0_1] : memref<25x1x96xf32, #tpu.memory_space<vmem>>, vector<25x1x96xf32>
    %cst = arith.constant 0.000000e+00 : f32
    %3 = vector.broadcast %cst : f32 to vector<2x2x96xf32>
    %c0_i32 = arith.constant 0 : i32
    %4 = arith.addi %1, %c0_i32 : i32
    %c0_2 = arith.constant 0 : index
    %c0_3 = arith.constant 0 : index
    %5 = arith.index_cast %4 : i32 to index
    %c0_4 = arith.constant 0 : index
    %c0_5 = arith.constant 0 : index
    %6 = vector.load %arg2[%c0_2, %c0_3, %5, %c0_4, %c0_5] : memref<1x1x6x6x96xbf16, #tpu.memory_space<vmem>>, vector<1x1x2x6x96xbf16>
    %7 = vector.shape_cast %6 : vector<1x1x2x6x96xbf16> to vector<2x6x96xbf16>
    %8 = arith.extf %7 : vector<2x6x96xbf16> to vector<2x6x96xf32>
    %9 = vector.extract_strided_slice %8 {offsets = [0, 0, 0], sizes = [2, 2, 96], strides = [1, 1, 1]} : vector<2x6x96xf32> to vector<2x2x96xf32>
    %10 = vector.extract_strided_slice %2 {offsets = [0, 0, 0], sizes = [1, 1, 96], strides = [1, 1, 1]} : vector<25x1x96xf32> to vector<1x1x96xf32>
    %11 = vector.shape_cast %10 : vector<1x1x96xf32> to vector<1x96xf32>
    %12 = vector.shape_cast %11 : vector<1x96xf32> to vector<1x1x96xf32>
    %13 = vector.broadcast %12 : vector<1x1x96xf32> to vector<2x2x96xf32>
    %14 = arith.mulf %9, %13 : vector<2x2x96xf32>
    %15 = arith.addf %3, %14 : vector<2x2x96xf32>
    %16 = vector.extract_strided_slice %8 {offsets = [0, 1, 0], sizes = [2, 2, 96], strides = [1, 1, 1]} : vector<2x6x96xf32> to vector<2x2x96xf32>
    %17 = vector.extract_strided_slice %2 {offsets = [1, 0, 0], sizes = [1, 1, 96], strides = [1, 1, 1]} : vector<25x1x96xf32> to vector<1x1x96xf32>
    %18 = vector.shape_cast %17 : vector<1x1x96xf32> to vector<1x96xf32>
    %19 = vector.shape_cast %18 : vector<1x96xf32> to vector<1x1x96xf32>
    %20 = vector.broadcast %19 : vector<1x1x96xf32> to vector<2x2x96xf32>
    %21 = arith.mulf %16, %20 : vector<2x2x96xf32>
    %22 = arith.addf %15, %21 : vector<2x2x96xf32>
    %23 = vector.extract_strided_slice %8 {offsets = [0, 2, 0], sizes = [2, 2, 96], strides = [1, 1, 1]} : vector<2x6x96xf32> to vector<2x2x96xf32>
    %24 = vector.extract_strided_slice %2 {offsets = [2, 0, 0], sizes = [1, 1, 96], strides = [1, 1, 1]} : vector<25x1x96xf32> to vector<1x1x96xf32>
    %25 = vector.shape_cast %24 : vector<1x1x96xf32> to vector<1x96xf32>
    %26 = vector.shape_cast %25 : vector<1x96xf32> to vector<1x1x96xf32>
    %27 = vector.broadcast %26 : vector<1x1x96xf32> to vector<2x2x96xf32>
    %28 = arith.mulf %23, %27 : vector<2x2x96xf32>
    %29 = arith.addf %22, %28 : vector<2x2x96xf32>
    %30 = vector.extract_strided_slice %8 {offsets = [0, 3, 0], sizes = [2, 2, 96], strides = [1, 1, 1]} : vector<2x6x96xf32> to vector<2x2x96xf32>
    %31 = vector.extract_strided_slice %2 {offsets = [3, 0, 0], sizes = [1, 1, 96], strides = [1, 1, 1]} : vector<25x1x96xf32> to vector<1x1x96xf32>
    %32 = vector.shape_cast %31 : vector<1x1x96xf32> to vector<1x96xf32>
    %33 = vector.shape_cast %32 : vector<1x96xf32> to vector<1x1x96xf32>
    %34 = vector.broadcast %33 : vector<1x1x96xf32> to vector<2x2x96xf32>
    %35 = arith.mulf %30, %34 : vector<2x2x96xf32>
    %36 = arith.addf %29, %35 : vector<2x2x96xf32>
    %37 = vector.extract_strided_slice %8 {offsets = [0, 4, 0], sizes = [2, 2, 96], strides = [1, 1, 1]} : vector<2x6x96xf32> to vector<2x2x96xf32>
    %38 = vector.extract_strided_slice %2 {offsets = [4, 0, 0], sizes = [1, 1, 96], strides = [1, 1, 1]} : vector<25x1x96xf32> to vector<1x1x96xf32>
    %39 = vector.shape_cast %38 : vector<1x1x96xf32> to vector<1x96xf32>
    %40 = vector.shape_cast %39 : vector<1x96xf32> to vector<1x1x96xf32>
    %41 = vector.broadcast %40 : vector<1x1x96xf32> to vector<2x2x96xf32>
    %42 = arith.mulf %37, %41 : vector<2x2x96xf32>
    %43 = arith.addf %36, %42 : vector<2x2x96xf32>
    %c1_i32 = arith.constant 1 : i32
    %44 = arith.addi %1, %c1_i32 : i32
    %c0_6 = arith.constant 0 : index
    %c0_7 = arith.constant 0 : index
    %45 = arith.index_cast %44 : i32 to index
    %c0_8 = arith.constant 0 : index
    %c0_9 = arith.constant 0 : index
    %46 = vector.load %arg2[%c0_6, %c0_7, %45, %c0_8, %c0_9] : memref<1x1x6x6x96xbf16, #tpu.memory_space<vmem>>, vector<1x1x2x6x96xbf16>
    %47 = vector.shape_cast %46 : vector<1x1x2x6x96xbf16> to vector<2x6x96xbf16>
    %48 = arith.extf %47 : vector<2x6x96xbf16> to vector<2x6x96xf32>
    %49 = vector.extract_strided_slice %48 {offsets = [0, 0, 0], sizes = [2, 2, 96], strides = [1, 1, 1]} : vector<2x6x96xf32> to vector<2x2x96xf32>
    %50 = vector.extract_strided_slice %2 {offsets = [5, 0, 0], sizes = [1, 1, 96], strides = [1, 1, 1]} : vector<25x1x96xf32> to vector<1x1x96xf32>
    %51 = vector.shape_cast %50 : vector<1x1x96xf32> to vector<1x96xf32>
    %52 = vector.shape_cast %51 : vector<1x96xf32> to vector<1x1x96xf32>
    %53 = vector.broadcast %52 : vector<1x1x96xf32> to vector<2x2x96xf32>
    %54 = arith.mulf %49, %53 : vector<2x2x96xf32>
    %55 = arith.addf %43, %54 : vector<2x2x96xf32>
    %56 = vector.extract_strided_slice %48 {offsets = [0, 1, 0], sizes = [2, 2, 96], strides = [1, 1, 1]} : vector<2x6x96xf32> to vector<2x2x96xf32>
    %57 = vector.extract_strided_slice %2 {offsets = [6, 0, 0], sizes = [1, 1, 96], strides = [1, 1, 1]} : vector<25x1x96xf32> to vector<1x1x96xf32>
    %58 = vector.shape_cast %57 : vector<1x1x96xf32> to vector<1x96xf32>
    %59 = vector.shape_cast %58 : vector<1x96xf32> to vector<1x1x96xf32>
    %60 = vector.broadcast %59 : vector<1x1x96xf32> to vector<2x2x96xf32>
    %61 = arith.mulf %56, %60 : vector<2x2x96xf32>
    %62 = arith.addf %55, %61 : vector<2x2x96xf32>
    %63 = vector.extract_strided_slice %48 {offsets = [0, 2, 0], sizes = [2, 2, 96], strides = [1, 1, 1]} : vector<2x6x96xf32> to vector<2x2x96xf32>
    %64 = vector.extract_strided_slice %2 {offsets = [7, 0, 0], sizes = [1, 1, 96], strides = [1, 1, 1]} : vector<25x1x96xf32> to vector<1x1x96xf32>
    %65 = vector.shape_cast %64 : vector<1x1x96xf32> to vector<1x96xf32>
    %66 = vector.shape_cast %65 : vector<1x96xf32> to vector<1x1x96xf32>
    %67 = vector.broadcast %66 : vector<1x1x96xf32> to vector<2x2x96xf32>
    %68 = arith.mulf %63, %67 : vector<2x2x96xf32>
    %69 = arith.addf %62, %68 : vector<2x2x96xf32>
    %70 = vector.extract_strided_slice %48 {offsets = [0, 3, 0], sizes = [2, 2, 96], strides = [1, 1, 1]} : vector<2x6x96xf32> to vector<2x2x96xf32>
    %71 = vector.extract_strided_slice %2 {offsets = [8, 0, 0], sizes = [1, 1, 96], strides = [1, 1, 1]} : vector<25x1x96xf32> to vector<1x1x96xf32>
    %72 = vector.shape_cast %71 : vector<1x1x96xf32> to vector<1x96xf32>
    %73 = vector.shape_cast %72 : vector<1x96xf32> to vector<1x1x96xf32>
    %74 = vector.broadcast %73 : vector<1x1x96xf32> to vector<2x2x96xf32>
    %75 = arith.mulf %70, %74 : vector<2x2x96xf32>
    %76 = arith.addf %69, %75 : vector<2x2x96xf32>
    %77 = vector.extract_strided_slice %48 {offsets = [0, 4, 0], sizes = [2, 2, 96], strides = [1, 1, 1]} : vector<2x6x96xf32> to vector<2x2x96xf32>
    %78 = vector.extract_strided_slice %2 {offsets = [9, 0, 0], sizes = [1, 1, 96], strides = [1, 1, 1]} : vector<25x1x96xf32> to vector<1x1x96xf32>
    %79 = vector.shape_cast %78 : vector<1x1x96xf32> to vector<1x96xf32>
    %80 = vector.shape_cast %79 : vector<1x96xf32> to vector<1x1x96xf32>
    %81 = vector.broadcast %80 : vector<1x1x96xf32> to vector<2x2x96xf32>
    %82 = arith.mulf %77, %81 : vector<2x2x96xf32>
    %83 = arith.addf %76, %82 : vector<2x2x96xf32>
    %c2_i32_10 = arith.constant 2 : i32
    %84 = arith.addi %1, %c2_i32_10 : i32
    %c0_11 = arith.constant 0 : index
    %c0_12 = arith.constant 0 : index
    %85 = arith.index_cast %84 : i32 to index
    %c0_13 = arith.constant 0 : index
    %c0_14 = arith.constant 0 : index
    %86 = vector.load %arg2[%c0_11, %c0_12, %85, %c0_13, %c0_14] : memref<1x1x6x6x96xbf16, #tpu.memory_space<vmem>>, vector<1x1x2x6x96xbf16>
    %87 = vector.shape_cast %86 : vector<1x1x2x6x96xbf16> to vector<2x6x96xbf16>
    %88 = arith.extf %87 : vector<2x6x96xbf16> to vector<2x6x96xf32>
    %89 = vector.extract_strided_slice %88 {offsets = [0, 0, 0], sizes = [2, 2, 96], strides = [1, 1, 1]} : vector<2x6x96xf32> to vector<2x2x96xf32>
    %90 = vector.extract_strided_slice %2 {offsets = [10, 0, 0], sizes = [1, 1, 96], strides = [1, 1, 1]} : vector<25x1x96xf32> to vector<1x1x96xf32>
    %91 = vector.shape_cast %90 : vector<1x1x96xf32> to vector<1x96xf32>
    %92 = vector.shape_cast %91 : vector<1x96xf32> to vector<1x1x96xf32>
    %93 = vector.broadcast %92 : vector<1x1x96xf32> to vector<2x2x96xf32>
    %94 = arith.mulf %89, %93 : vector<2x2x96xf32>
    %95 = arith.addf %83, %94 : vector<2x2x96xf32>
    %96 = vector.extract_strided_slice %88 {offsets = [0, 1, 0], sizes = [2, 2, 96], strides = [1, 1, 1]} : vector<2x6x96xf32> to vector<2x2x96xf32>
    %97 = vector.extract_strided_slice %2 {offsets = [11, 0, 0], sizes = [1, 1, 96], strides = [1, 1, 1]} : vector<25x1x96xf32> to vector<1x1x96xf32>
    %98 = vector.shape_cast %97 : vector<1x1x96xf32> to vector<1x96xf32>
    %99 = vector.shape_cast %98 : vector<1x96xf32> to vector<1x1x96xf32>
    %100 = vector.broadcast %99 : vector<1x1x96xf32> to vector<2x2x96xf32>
    %101 = arith.mulf %96, %100 : vector<2x2x96xf32>
    %102 = arith.addf %95, %101 : vector<2x2x96xf32>
    %103 = vector.extract_strided_slice %88 {offsets = [0, 2, 0], sizes = [2, 2, 96], strides = [1, 1, 1]} : vector<2x6x96xf32> to vector<2x2x96xf32>
    %104 = vector.extract_strided_slice %2 {offsets = [12, 0, 0], sizes = [1, 1, 96], strides = [1, 1, 1]} : vector<25x1x96xf32> to vector<1x1x96xf32>
    %105 = vector.shape_cast %104 : vector<1x1x96xf32> to vector<1x96xf32>
    %106 = vector.shape_cast %105 : vector<1x96xf32> to vector<1x1x96xf32>
    %107 = vector.broadcast %106 : vector<1x1x96xf32> to vector<2x2x96xf32>
    %108 = arith.mulf %103, %107 : vector<2x2x96xf32>
    %109 = arith.addf %102, %108 : vector<2x2x96xf32>
    %110 = vector.extract_strided_slice %88 {offsets = [0, 3, 0], sizes = [2, 2, 96], strides = [1, 1, 1]} : vector<2x6x96xf32> to vector<2x2x96xf32>
    %111 = vector.extract_strided_slice %2 {offsets = [13, 0, 0], sizes = [1, 1, 96], strides = [1, 1, 1]} : vector<25x1x96xf32> to vector<1x1x96xf32>
    %112 = vector.shape_cast %111 : vector<1x1x96xf32> to vector<1x96xf32>
    %113 = vector.shape_cast %112 : vector<1x96xf32> to vector<1x1x96xf32>
    %114 = vector.broadcast %113 : vector<1x1x96xf32> to vector<2x2x96xf32>
    %115 = arith.mulf %110, %114 : vector<2x2x96xf32>
    %116 = arith.addf %109, %115 : vector<2x2x96xf32>
    %117 = vector.extract_strided_slice %88 {offsets = [0, 4, 0], sizes = [2, 2, 96], strides = [1, 1, 1]} : vector<2x6x96xf32> to vector<2x2x96xf32>
    %118 = vector.extract_strided_slice %2 {offsets = [14, 0, 0], sizes = [1, 1, 96], strides = [1, 1, 1]} : vector<25x1x96xf32> to vector<1x1x96xf32>
    %119 = vector.shape_cast %118 : vector<1x1x96xf32> to vector<1x96xf32>
    %120 = vector.shape_cast %119 : vector<1x96xf32> to vector<1x1x96xf32>
    %121 = vector.broadcast %120 : vector<1x1x96xf32> to vector<2x2x96xf32>
    %122 = arith.mulf %117, %121 : vector<2x2x96xf32>
    %123 = arith.addf %116, %122 : vector<2x2x96xf32>
    %c3_i32 = arith.constant 3 : i32
    %124 = arith.addi %1, %c3_i32 : i32
    %c0_15 = arith.constant 0 : index
    %c0_16 = arith.constant 0 : index
    %125 = arith.index_cast %124 : i32 to index
    %c0_17 = arith.constant 0 : index
    %c0_18 = arith.constant 0 : index
    %126 = vector.load %arg2[%c0_15, %c0_16, %125, %c0_17, %c0_18] : memref<1x1x6x6x96xbf16, #tpu.memory_space<vmem>>, vector<1x1x2x6x96xbf16>
    %127 = vector.shape_cast %126 : vector<1x1x2x6x96xbf16> to vector<2x6x96xbf16>
    %128 = arith.extf %127 : vector<2x6x96xbf16> to vector<2x6x96xf32>
    %129 = vector.extract_strided_slice %128 {offsets = [0, 0, 0], sizes = [2, 2, 96], strides = [1, 1, 1]} : vector<2x6x96xf32> to vector<2x2x96xf32>
    %130 = vector.extract_strided_slice %2 {offsets = [15, 0, 0], sizes = [1, 1, 96], strides = [1, 1, 1]} : vector<25x1x96xf32> to vector<1x1x96xf32>
    %131 = vector.shape_cast %130 : vector<1x1x96xf32> to vector<1x96xf32>
    %132 = vector.shape_cast %131 : vector<1x96xf32> to vector<1x1x96xf32>
    %133 = vector.broadcast %132 : vector<1x1x96xf32> to vector<2x2x96xf32>
    %134 = arith.mulf %129, %133 : vector<2x2x96xf32>
    %135 = arith.addf %123, %134 : vector<2x2x96xf32>
    %136 = vector.extract_strided_slice %128 {offsets = [0, 1, 0], sizes = [2, 2, 96], strides = [1, 1, 1]} : vector<2x6x96xf32> to vector<2x2x96xf32>
    %137 = vector.extract_strided_slice %2 {offsets = [16, 0, 0], sizes = [1, 1, 96], strides = [1, 1, 1]} : vector<25x1x96xf32> to vector<1x1x96xf32>
    %138 = vector.shape_cast %137 : vector<1x1x96xf32> to vector<1x96xf32>
    %139 = vector.shape_cast %138 : vector<1x96xf32> to vector<1x1x96xf32>
    %140 = vector.broadcast %139 : vector<1x1x96xf32> to vector<2x2x96xf32>
    %141 = arith.mulf %136, %140 : vector<2x2x96xf32>
    %142 = arith.addf %135, %141 : vector<2x2x96xf32>
    %143 = vector.extract_strided_slice %128 {offsets = [0, 2, 0], sizes = [2, 2, 96], strides = [1, 1, 1]} : vector<2x6x96xf32> to vector<2x2x96xf32>
    %144 = vector.extract_strided_slice %2 {offsets = [17, 0, 0], sizes = [1, 1, 96], strides = [1, 1, 1]} : vector<25x1x96xf32> to vector<1x1x96xf32>
    %145 = vector.shape_cast %144 : vector<1x1x96xf32> to vector<1x96xf32>
    %146 = vector.shape_cast %145 : vector<1x96xf32> to vector<1x1x96xf32>
    %147 = vector.broadcast %146 : vector<1x1x96xf32> to vector<2x2x96xf32>
    %148 = arith.mulf %143, %147 : vector<2x2x96xf32>
    %149 = arith.addf %142, %148 : vector<2x2x96xf32>
    %150 = vector.extract_strided_slice %128 {offsets = [0, 3, 0], sizes = [2, 2, 96], strides = [1, 1, 1]} : vector<2x6x96xf32> to vector<2x2x96xf32>
    %151 = vector.extract_strided_slice %2 {offsets = [18, 0, 0], sizes = [1, 1, 96], strides = [1, 1, 1]} : vector<25x1x96xf32> to vector<1x1x96xf32>
    %152 = vector.shape_cast %151 : vector<1x1x96xf32> to vector<1x96xf32>
    %153 = vector.shape_cast %152 : vector<1x96xf32> to vector<1x1x96xf32>
    %154 = vector.broadcast %153 : vector<1x1x96xf32> to vector<2x2x96xf32>
    %155 = arith.mulf %150, %154 : vector<2x2x96xf32>
    %156 = arith.addf %149, %155 : vector<2x2x96xf32>
    %157 = vector.extract_strided_slice %128 {offsets = [0, 4, 0], sizes = [2, 2, 96], strides = [1, 1, 1]} : vector<2x6x96xf32> to vector<2x2x96xf32>
    %158 = vector.extract_strided_slice %2 {offsets = [19, 0, 0], sizes = [1, 1, 96], strides = [1, 1, 1]} : vector<25x1x96xf32> to vector<1x1x96xf32>
    %159 = vector.shape_cast %158 : vector<1x1x96xf32> to vector<1x96xf32>
    %160 = vector.shape_cast %159 : vector<1x96xf32> to vector<1x1x96xf32>
    %161 = vector.broadcast %160 : vector<1x1x96xf32> to vector<2x2x96xf32>
    %162 = arith.mulf %157, %161 : vector<2x2x96xf32>
    %163 = arith.addf %156, %162 : vector<2x2x96xf32>
    %c4_i32 = arith.constant 4 : i32
    %164 = arith.addi %1, %c4_i32 : i32
    %c0_19 = arith.constant 0 : index
    %c0_20 = arith.constant 0 : index
    %165 = arith.index_cast %164 : i32 to index
    %c0_21 = arith.constant 0 : index
    %c0_22 = arith.constant 0 : index
    %166 = vector.load %arg2[%c0_19, %c0_20, %165, %c0_21, %c0_22] : memref<1x1x6x6x96xbf16, #tpu.memory_space<vmem>>, vector<1x1x2x6x96xbf16>
    %167 = vector.shape_cast %166 : vector<1x1x2x6x96xbf16> to vector<2x6x96xbf16>
    %168 = arith.extf %167 : vector<2x6x96xbf16> to vector<2x6x96xf32>
    %169 = vector.extract_strided_slice %168 {offsets = [0, 0, 0], sizes = [2, 2, 96], strides = [1, 1, 1]} : vector<2x6x96xf32> to vector<2x2x96xf32>
    %170 = vector.extract_strided_slice %2 {offsets = [20, 0, 0], sizes = [1, 1, 96], strides = [1, 1, 1]} : vector<25x1x96xf32> to vector<1x1x96xf32>
    %171 = vector.shape_cast %170 : vector<1x1x96xf32> to vector<1x96xf32>
    %172 = vector.shape_cast %171 : vector<1x96xf32> to vector<1x1x96xf32>
    %173 = vector.broadcast %172 : vector<1x1x96xf32> to vector<2x2x96xf32>
    %174 = arith.mulf %169, %173 : vector<2x2x96xf32>
    %175 = arith.addf %163, %174 : vector<2x2x96xf32>
    %176 = vector.extract_strided_slice %168 {offsets = [0, 1, 0], sizes = [2, 2, 96], strides = [1, 1, 1]} : vector<2x6x96xf32> to vector<2x2x96xf32>
    %177 = vector.extract_strided_slice %2 {offsets = [21, 0, 0], sizes = [1, 1, 96], strides = [1, 1, 1]} : vector<25x1x96xf32> to vector<1x1x96xf32>
    %178 = vector.shape_cast %177 : vector<1x1x96xf32> to vector<1x96xf32>
    %179 = vector.shape_cast %178 : vector<1x96xf32> to vector<1x1x96xf32>
    %180 = vector.broadcast %179 : vector<1x1x96xf32> to vector<2x2x96xf32>
    %181 = arith.mulf %176, %180 : vector<2x2x96xf32>
    %182 = arith.addf %175, %181 : vector<2x2x96xf32>
    %183 = vector.extract_strided_slice %168 {offsets = [0, 2, 0], sizes = [2, 2, 96], strides = [1, 1, 1]} : vector<2x6x96xf32> to vector<2x2x96xf32>
    %184 = vector.extract_strided_slice %2 {offsets = [22, 0, 0], sizes = [1, 1, 96], strides = [1, 1, 1]} : vector<25x1x96xf32> to vector<1x1x96xf32>
    %185 = vector.shape_cast %184 : vector<1x1x96xf32> to vector<1x96xf32>
    %186 = vector.shape_cast %185 : vector<1x96xf32> to vector<1x1x96xf32>
    %187 = vector.broadcast %186 : vector<1x1x96xf32> to vector<2x2x96xf32>
    %188 = arith.mulf %183, %187 : vector<2x2x96xf32>
    %189 = arith.addf %182, %188 : vector<2x2x96xf32>
    %190 = vector.extract_strided_slice %168 {offsets = [0, 3, 0], sizes = [2, 2, 96], strides = [1, 1, 1]} : vector<2x6x96xf32> to vector<2x2x96xf32>
    %191 = vector.extract_strided_slice %2 {offsets = [23, 0, 0], sizes = [1, 1, 96], strides = [1, 1, 1]} : vector<25x1x96xf32> to vector<1x1x96xf32>
    %192 = vector.shape_cast %191 : vector<1x1x96xf32> to vector<1x96xf32>
    %193 = vector.shape_cast %192 : vector<1x96xf32> to vector<1x1x96xf32>
    %194 = vector.broadcast %193 : vector<1x1x96xf32> to vector<2x2x96xf32>
    %195 = arith.mulf %190, %194 : vector<2x2x96xf32>
    %196 = arith.addf %189, %195 : vector<2x2x96xf32>
    %197 = vector.extract_strided_slice %168 {offsets = [0, 4, 0], sizes = [2, 2, 96], strides = [1, 1, 1]} : vector<2x6x96xf32> to vector<2x2x96xf32>
    %198 = vector.extract_strided_slice %2 {offsets = [24, 0, 0], sizes = [1, 1, 96], strides = [1, 1, 1]} : vector<25x1x96xf32> to vector<1x1x96xf32>
    %199 = vector.shape_cast %198 : vector<1x1x96xf32> to vector<1x96xf32>
    %200 = vector.shape_cast %199 : vector<1x96xf32> to vector<1x1x96xf32>
    %201 = vector.broadcast %200 : vector<1x1x96xf32> to vector<2x2x96xf32>
    %202 = arith.mulf %197, %201 : vector<2x2x96xf32>
    %203 = arith.addf %196, %202 : vector<2x2x96xf32>
    %c0_23 = arith.constant 0 : index
    %c0_24 = arith.constant 0 : index
    %204 = vector.load %arg4[%c0_23, %c0_24] : memref<1x96xf32, #tpu.memory_space<vmem>>, vector<1x96xf32>
    %205 = vector.shape_cast %204 : vector<1x96xf32> to vector<1x1x96xf32>
    %206 = vector.broadcast %205 : vector<1x1x96xf32> to vector<2x2x96xf32>
    %207 = arith.mulf %203, %206 : vector<2x2x96xf32>
    %c0_25 = arith.constant 0 : index
    %c0_26 = arith.constant 0 : index
    %208 = vector.load %arg5[%c0_25, %c0_26] : memref<1x96xf32, #tpu.memory_space<vmem>>, vector<1x96xf32>
    %209 = vector.shape_cast %208 : vector<1x96xf32> to vector<1x1x96xf32>
    %210 = vector.broadcast %209 : vector<1x1x96xf32> to vector<2x2x96xf32>
    %211 = arith.addf %207, %210 : vector<2x2x96xf32>
    %212 = arith.truncf %211 : vector<2x2x96xf32> to vector<2x2x96xbf16>
    %c0_27 = arith.constant 0 : index
    %c0_28 = arith.constant 0 : index
    %c0_29 = arith.constant 0 : index
    %c0_30 = arith.constant 0 : index
    %213 = vector.load %arg6[%c0_27, %c0_28, %c0_29, %c0_30] : memref<1x2x2x96xbf16, #tpu.memory_space<vmem>>, vector<1x2x2x96xbf16>
    %214 = vector.shape_cast %213 : vector<1x2x2x96xbf16> to vector<2x2x96xbf16>
    %215 = vector.shape_cast %212 : vector<2x2x96xbf16> to vector<1x2x2x96xbf16>
    tpu.vector_store %arg6[%c0_27, %c0_28, %c0_29, %c0_30], %215 {strides = array<i32>} : memref<1x2x2x96xbf16, #tpu.memory_space<vmem>>, vector<1x2x2x96xbf16>,
    %cst_31 = arith.constant dense<0.000000e+00> : vector<2x96xf32>
    %216 = vector.multi_reduction <add>, %211, %cst_31 [0] : vector<2x2x96xf32> to vector<2x96xf32>
    %cst_32 = arith.constant dense<0.000000e+00> : vector<96xf32>
    %217 = vector.multi_reduction <add>, %216, %cst_32 [0] : vector<2x96xf32> to vector<96xf32>
    %218 = vector.shape_cast %217 : vector<96xf32> to vector<1x96xf32>
    %cst_33 = arith.constant 2.500000e-01 : f32
    %219 = vector.broadcast %cst_33 : f32 to vector<1x96xf32>
    %220 = arith.mulf %218, %219 : vector<1x96xf32>
    %c0_i32_34 = arith.constant 0 : i32
    %221 = arith.cmpi eq, %arg1, %c0_i32_34 : i32
    %222 = arith.extui %221 : i1 to i32
    %c0_i32_35 = arith.constant 0 : i32
    %223 = arith.cmpi ne, %222, %c0_i32_35 : i32
    scf.if %223 {
      %c0_38 = arith.constant 0 : index
      %c0_39 = arith.constant 0 : index
      %c0_40 = arith.constant 0 : index
      %227 = vector.load %arg7[%c0_38, %c0_39, %c0_40] : memref<1x1x96xf32, #tpu.memory_space<vmem>>, vector<1x1x96xf32>
      %228 = vector.shape_cast %227 : vector<1x1x96xf32> to vector<1x96xf32>
      %229 = vector.shape_cast %220 : vector<1x96xf32> to vector<1x1x96xf32>
      tpu.vector_store %arg7[%c0_38, %c0_39, %c0_40], %229 {strides = array<i32>} : memref<1x1x96xf32, #tpu.memory_space<vmem>>, vector<1x1x96xf32>,
    } else {
    }
    %c0_i32_36 = arith.constant 0 : i32
    %224 = arith.cmpi sgt, %arg1, %c0_i32_36 : i32
    %225 = arith.extui %224 : i1 to i32
    %c0_i32_37 = arith.constant 0 : i32
    %226 = arith.cmpi ne, %225, %c0_i32_37 : i32
    scf.if %226 {
      %c0_38 = arith.constant 0 : index
      %c0_39 = arith.constant 0 : index
      %c0_40 = arith.constant 0 : index
      %227 = vector.load %arg7[%c0_38, %c0_39, %c0_40] : memref<1x1x96xf32, #tpu.memory_space<vmem>>, vector<1x1x96xf32>
      %228 = vector.shape_cast %227 : vector<1x1x96xf32> to vector<1x96xf32>
      %229 = arith.addf %228, %220 : vector<1x96xf32>
      %c0_41 = arith.constant 0 : index
      %c0_42 = arith.constant 0 : index
      %c0_43 = arith.constant 0 : index
      %230 = vector.load %arg7[%c0_41, %c0_42, %c0_43] : memref<1x1x96xf32, #tpu.memory_space<vmem>>, vector<1x1x96xf32>
      %231 = vector.shape_cast %230 : vector<1x1x96xf32> to vector<1x96xf32>
      %232 = vector.shape_cast %229 : vector<1x96xf32> to vector<1x1x96xf32>
      tpu.vector_store %arg7[%c0_41, %c0_42, %c0_43], %232 {strides = array<i32>} : memref<1x1x96xf32, #tpu.memory_space<vmem>>, vector<1x1x96xf32>,
    } else {
    }
    return
  }
  func.func @transform_0(%arg0: i32, %arg1: i32) -> (i32, i32, i32, i32, i32) {
    %c0_i32 = arith.constant 0 : i32
    %c0_i32_0 = arith.constant 0 : i32
    %c0_i32_1 = arith.constant 0 : i32
    %c0_i32_2 = arith.constant 0 : i32
    %c0_i32_3 = arith.constant 0 : i32
    return %arg0, %c0_i32, %c0_i32_0, %c0_i32_1, %c0_i32_2 : i32, i32, i32, i32, i32
  }
  func.func @transform_1(%arg0: i32, %arg1: i32) -> (i32, i32, i32) {
    %c0_i32 = arith.constant 0 : i32
    %c0_i32_0 = arith.constant 0 : i32
    %c0_i32_1 = arith.constant 0 : i32
    %c0_i32_2 = arith.constant 0 : i32
    return %c0_i32, %c0_i32_0, %c0_i32_1 : i32, i32, i32
  }
  func.func @transform_2(%arg0: i32, %arg1: i32) -> (i32, i32) {
    %c0_i32 = arith.constant 0 : i32
    %c0_i32_0 = arith.constant 0 : i32
    %c0_i32_1 = arith.constant 0 : i32
    return %c0_i32, %c0_i32_0 : i32, i32
  }
  func.func @transform_3(%arg0: i32, %arg1: i32) -> (i32, i32) {
    %c0_i32 = arith.constant 0 : i32
    %c0_i32_0 = arith.constant 0 : i32
    %c0_i32_1 = arith.constant 0 : i32
    return %c0_i32, %c0_i32_0 : i32, i32
  }
  func.func @transform_4(%arg0: i32, %arg1: i32) -> (i32, i32, i32, i32) {
    %c0_i32 = arith.constant 0 : i32
    %c0_i32_0 = arith.constant 0 : i32
    %c0_i32_1 = arith.constant 0 : i32
    return %arg0, %arg1, %c0_i32, %c0_i32_0 : i32, i32, i32, i32
  }
  func.func @transform_5(%arg0: i32, %arg1: i32) -> (i32, i32, i32) {
    %c0_i32 = arith.constant 0 : i32
    %c0_i32_0 = arith.constant 0 : i32
    %c0_i32_1 = arith.constant 0 : i32
    return %arg0, %c0_i32, %c0_i32_0 : i32, i32, i32
  }
}

module attributes {stable_mosaic.version = 11 : i64} {
  func.func @kern(%arg0: i32, %arg1: i32, %arg2: memref<1x4x96xbf16, #tpu.memory_space<vmem>>, %arg3: memref<96x24xbf16, #tpu.memory_space<vmem>>, %arg4: memref<1x24xf32, #tpu.memory_space<vmem>>, %arg5: memref<1x24xf32, #tpu.memory_space<vmem>>, %arg6: memref<1x1x96xf32, #tpu.memory_space<vmem>>, %arg7: memref<96x24xf32, #tpu.memory_space<vmem>>, %arg8: memref<1x24xf32, #tpu.memory_space<vmem>>, %arg9: memref<24x96xf32, #tpu.memory_space<vmem>>, %arg10: memref<1x96xf32, #tpu.memory_space<vmem>>, %arg11: memref<1x4x24xbf16, #tpu.memory_space<vmem>>, %arg12: memref<1x4x24xbf16, #tpu.memory_space<vmem>>) attributes {dimension_semantics = [#tpu.dimension_semantics<parallel>, #tpu.dimension_semantics<parallel>], iteration_bounds = array<i64: 2, 1>, scalar_prefetch = 0 : i64, scratch_operands = 0 : i64, tpu.core_type = #tpu.core_type<tc>, window_params = [{transform_indices = @transform_0, window_bounds = array<i64: 1, 4, 96>}, {pipeline_mode = #tpu.pipeline_mode<synchronous>, transform_indices = @transform_1, window_bounds = array<i64: 96, 24>}, {pipeline_mode = #tpu.pipeline_mode<synchronous>, transform_indices = @transform_2, window_bounds = array<i64: 1, 24>}, {pipeline_mode = #tpu.pipeline_mode<synchronous>, transform_indices = @transform_3, window_bounds = array<i64: 1, 24>}, {transform_indices = @transform_4, window_bounds = array<i64: 1, 1, 96>}, {pipeline_mode = #tpu.pipeline_mode<synchronous>, transform_indices = @transform_5, window_bounds = array<i64: 96, 24>}, {pipeline_mode = #tpu.pipeline_mode<synchronous>, transform_indices = @transform_6, window_bounds = array<i64: 1, 24>}, {pipeline_mode = #tpu.pipeline_mode<synchronous>, transform_indices = @transform_7, window_bounds = array<i64: 24, 96>}, {pipeline_mode = #tpu.pipeline_mode<synchronous>, transform_indices = @transform_8, window_bounds = array<i64: 1, 96>}, {transform_indices = @transform_9, window_bounds = array<i64: 1, 4, 24>}, {transform_indices = @transform_10, window_bounds = array<i64: 1, 4, 24>}]} {
    %c0 = arith.constant 0 : index
    %c0_0 = arith.constant 0 : index
    %c0_1 = arith.constant 0 : index
    %0 = vector.load %arg6[%c0, %c0_0, %c0_1] : memref<1x1x96xf32, #tpu.memory_space<vmem>>, vector<1x1x96xf32>
    %1 = vector.shape_cast %0 : vector<1x1x96xf32> to vector<1x96xf32>
    %c0_2 = arith.constant 0 : index
    %c0_3 = arith.constant 0 : index
    %2 = vector.load %arg7[%c0_2, %c0_3] : memref<96x24xf32, #tpu.memory_space<vmem>>, vector<96x24xf32>
    %cst = arith.constant dense<0.000000e+00> : vector<1x24xf32>
    %3 = tpu.matmul %1, %2, %cst {dimension_numbers = #tpu.dot_dimension_numbers<[1], [0], [0], [1], [0, 0, 1, 1], [], []>} : vector<1x96xf32>, vector<96x24xf32>, vector<1x24xf32> -> vector<1x24xf32>
    %c0_4 = arith.constant 0 : index
    %c0_5 = arith.constant 0 : index
    %4 = vector.load %arg8[%c0_4, %c0_5] : memref<1x24xf32, #tpu.memory_space<vmem>>, vector<1x24xf32>
    %5 = arith.addf %3, %4 : vector<1x24xf32>
    %cst_6 = arith.constant 0.000000e+00 : f32
    %6 = vector.broadcast %cst_6 : f32 to vector<1x24xf32>
    %7 = arith.maximumf %5, %6 : vector<1x24xf32>
    %c0_7 = arith.constant 0 : index
    %c0_8 = arith.constant 0 : index
    %8 = vector.load %arg9[%c0_7, %c0_8] : memref<24x96xf32, #tpu.memory_space<vmem>>, vector<24x96xf32>
    %cst_9 = arith.constant dense<0.000000e+00> : vector<1x96xf32>
    %9 = tpu.matmul %7, %8, %cst_9 {dimension_numbers = #tpu.dot_dimension_numbers<[1], [0], [0], [1], [0, 0, 1, 1], [], []>} : vector<1x24xf32>, vector<24x96xf32>, vector<1x96xf32> -> vector<1x96xf32>
    %c0_10 = arith.constant 0 : index
    %c0_11 = arith.constant 0 : index
    %10 = vector.load %arg10[%c0_10, %c0_11] : memref<1x96xf32, #tpu.memory_space<vmem>>, vector<1x96xf32>
    %11 = arith.addf %9, %10 : vector<1x96xf32>
    %cst_12 = arith.constant 3.000000e+00 : f32
    %12 = vector.broadcast %cst_12 : f32 to vector<1x96xf32>
    %13 = arith.addf %11, %12 : vector<1x96xf32>
    %cst_13 = arith.constant 0.000000e+00 : f32
    %cst_14 = arith.constant 6.000000e+00 : f32
    %14 = vector.broadcast %cst_13 : f32 to vector<1x96xf32>
    %15 = arith.maximumf %14, %13 : vector<1x96xf32>
    %16 = vector.broadcast %cst_14 : f32 to vector<1x96xf32>
    %17 = arith.minimumf %16, %15 : vector<1x96xf32>
    %cst_15 = arith.constant 0.166666672 : f32
    %18 = vector.broadcast %cst_15 : f32 to vector<1x96xf32>
    %19 = arith.mulf %17, %18 : vector<1x96xf32>
    %c0_16 = arith.constant 0 : index
    %c0_17 = arith.constant 0 : index
    %c0_18 = arith.constant 0 : index
    %20 = vector.load %arg2[%c0_16, %c0_17, %c0_18] : memref<1x4x96xbf16, #tpu.memory_space<vmem>>, vector<1x4x96xbf16>
    %21 = vector.shape_cast %20 : vector<1x4x96xbf16> to vector<4x96xbf16>
    %c0_19 = arith.constant 0 : index
    %c0_20 = arith.constant 0 : index
    %c0_21 = arith.constant 0 : index
    %22 = vector.load %arg11[%c0_19, %c0_20, %c0_21] : memref<1x4x24xbf16, #tpu.memory_space<vmem>>, vector<1x4x24xbf16>
    %23 = vector.shape_cast %22 : vector<1x4x24xbf16> to vector<4x24xbf16>
    %24 = arith.extf %21 : vector<4x96xbf16> to vector<4x96xf32>
    %25 = vector.broadcast %19 : vector<1x96xf32> to vector<4x96xf32>
    %26 = arith.mulf %24, %25 : vector<4x96xf32>
    %cst_22 = arith.constant 3.000000e+00 : f32
    %27 = vector.broadcast %cst_22 : f32 to vector<4x96xf32>
    %28 = arith.addf %26, %27 : vector<4x96xf32>
    %cst_23 = arith.constant 0.000000e+00 : f32
    %cst_24 = arith.constant 6.000000e+00 : f32
    %29 = vector.broadcast %cst_23 : f32 to vector<4x96xf32>
    %30 = arith.maximumf %29, %28 : vector<4x96xf32>
    %31 = vector.broadcast %cst_24 : f32 to vector<4x96xf32>
    %32 = arith.minimumf %31, %30 : vector<4x96xf32>
    %cst_25 = arith.constant 0.166666672 : f32
    %33 = vector.broadcast %cst_25 : f32 to vector<4x96xf32>
    %34 = arith.mulf %32, %33 : vector<4x96xf32>
    %35 = arith.mulf %26, %34 : vector<4x96xf32>
    %36 = arith.truncf %35 : vector<4x96xf32> to vector<4x96xbf16>
    %c0_26 = arith.constant 0 : index
    %c0_27 = arith.constant 0 : index
    %37 = vector.load %arg3[%c0_26, %c0_27] : memref<96x24xbf16, #tpu.memory_space<vmem>>, vector<96x24xbf16>
    %cst_28 = arith.constant dense<0.000000e+00> : vector<4x24xf32>
    %38 = tpu.matmul %36, %37, %cst_28 {dimension_numbers = #tpu.dot_dimension_numbers<[1], [0], [0], [1], [0, 0, 1, 1], [], []>} : vector<4x96xbf16>, vector<96x24xbf16>, vector<4x24xf32> -> vector<4x24xf32>
    %c0_29 = arith.constant 0 : index
    %c0_30 = arith.constant 0 : index
    %39 = vector.load %arg4[%c0_29, %c0_30] : memref<1x24xf32, #tpu.memory_space<vmem>>, vector<1x24xf32>
    %40 = vector.broadcast %39 : vector<1x24xf32> to vector<4x24xf32>
    %41 = arith.mulf %38, %40 : vector<4x24xf32>
    %c0_31 = arith.constant 0 : index
    %c0_32 = arith.constant 0 : index
    %42 = vector.load %arg5[%c0_31, %c0_32] : memref<1x24xf32, #tpu.memory_space<vmem>>, vector<1x24xf32>
    %43 = vector.broadcast %42 : vector<1x24xf32> to vector<4x24xf32>
    %44 = arith.addf %41, %43 : vector<4x24xf32>
    %45 = arith.extf %23 : vector<4x24xbf16> to vector<4x24xf32>
    %46 = arith.addf %44, %45 : vector<4x24xf32>
    %47 = arith.truncf %46 : vector<4x24xf32> to vector<4x24xbf16>
    %c0_33 = arith.constant 0 : index
    %c0_34 = arith.constant 0 : index
    %c0_35 = arith.constant 0 : index
    %48 = vector.load %arg12[%c0_33, %c0_34, %c0_35] : memref<1x4x24xbf16, #tpu.memory_space<vmem>>, vector<1x4x24xbf16>
    %49 = vector.shape_cast %48 : vector<1x4x24xbf16> to vector<4x24xbf16>
    %50 = vector.shape_cast %47 : vector<4x24xbf16> to vector<1x4x24xbf16>
    tpu.vector_store %arg12[%c0_33, %c0_34, %c0_35], %50 {strides = array<i32>} : memref<1x4x24xbf16, #tpu.memory_space<vmem>>, vector<1x4x24xbf16>,
    return
  }
  func.func @transform_0(%arg0: i32, %arg1: i32) -> (i32, i32, i32) {
    %c0_i32 = arith.constant 0 : i32
    %c0_i32_0 = arith.constant 0 : i32
    return %arg0, %arg1, %c0_i32 : i32, i32, i32
  }
  func.func @transform_1(%arg0: i32, %arg1: i32) -> (i32, i32) {
    %c0_i32 = arith.constant 0 : i32
    %c0_i32_0 = arith.constant 0 : i32
    %c0_i32_1 = arith.constant 0 : i32
    return %c0_i32, %c0_i32_0 : i32, i32
  }
  func.func @transform_2(%arg0: i32, %arg1: i32) -> (i32, i32) {
    %c0_i32 = arith.constant 0 : i32
    %c0_i32_0 = arith.constant 0 : i32
    %c0_i32_1 = arith.constant 0 : i32
    return %c0_i32, %c0_i32_0 : i32, i32
  }
  func.func @transform_3(%arg0: i32, %arg1: i32) -> (i32, i32) {
    %c0_i32 = arith.constant 0 : i32
    %c0_i32_0 = arith.constant 0 : i32
    %c0_i32_1 = arith.constant 0 : i32
    return %c0_i32, %c0_i32_0 : i32, i32
  }
  func.func @transform_4(%arg0: i32, %arg1: i32) -> (i32, i32, i32) {
    %c0_i32 = arith.constant 0 : i32
    %c0_i32_0 = arith.constant 0 : i32
    %c0_i32_1 = arith.constant 0 : i32
    return %arg0, %c0_i32, %c0_i32_0 : i32, i32, i32
  }
  func.func @transform_5(%arg0: i32, %arg1: i32) -> (i32, i32) {
    %c0_i32 = arith.constant 0 : i32
    %c0_i32_0 = arith.constant 0 : i32
    %c0_i32_1 = arith.constant 0 : i32
    return %c0_i32, %c0_i32_0 : i32, i32
  }
  func.func @transform_6(%arg0: i32, %arg1: i32) -> (i32, i32) {
    %c0_i32 = arith.constant 0 : i32
    %c0_i32_0 = arith.constant 0 : i32
    %c0_i32_1 = arith.constant 0 : i32
    return %c0_i32, %c0_i32_0 : i32, i32
  }
  func.func @transform_7(%arg0: i32, %arg1: i32) -> (i32, i32) {
    %c0_i32 = arith.constant 0 : i32
    %c0_i32_0 = arith.constant 0 : i32
    %c0_i32_1 = arith.constant 0 : i32
    return %c0_i32, %c0_i32_0 : i32, i32
  }
  func.func @transform_8(%arg0: i32, %arg1: i32) -> (i32, i32) {
    %c0_i32 = arith.constant 0 : i32
    %c0_i32_0 = arith.constant 0 : i32
    %c0_i32_1 = arith.constant 0 : i32
    return %c0_i32, %c0_i32_0 : i32, i32
  }
  func.func @transform_9(%arg0: i32, %arg1: i32) -> (i32, i32, i32) {
    %c0_i32 = arith.constant 0 : i32
    %c0_i32_0 = arith.constant 0 : i32
    return %arg0, %arg1, %c0_i32 : i32, i32, i32
  }
  func.func @transform_10(%arg0: i32, %arg1: i32) -> (i32, i32, i32) {
    %c0_i32 = arith.constant 0 : i32
    %c0_i32_0 = arith.constant 0 : i32
    return %arg0, %arg1, %c0_i32 : i32, i32, i32
  }
}

module attributes {stable_mosaic.version = 11 : i64} {
  func.func @kernel(%arg0: i32, %arg1: memref<2x4x96xbf16, #tpu.memory_space<vmem>>, %arg2: memref<96x1024xbf16, #tpu.memory_space<vmem>>, %arg3: memref<1x1024xf32, #tpu.memory_space<vmem>>, %arg4: memref<1024x10xbf16, #tpu.memory_space<vmem>>, %arg5: memref<1x10xf32, #tpu.memory_space<vmem>>, %arg6: memref<2x10xf32, #tpu.memory_space<vmem>>) attributes {dimension_semantics = [#tpu.dimension_semantics<arbitrary>], iteration_bounds = array<i64: 1>, scalar_prefetch = 0 : i64, scratch_operands = 0 : i64, tpu.core_type = #tpu.core_type<tc>, window_params = [{pipeline_mode = #tpu.pipeline_mode<synchronous>, transform_indices = @transform_0, window_bounds = array<i64: 2, 4, 96>}, {pipeline_mode = #tpu.pipeline_mode<synchronous>, transform_indices = @transform_1, window_bounds = array<i64: 96, 1024>}, {pipeline_mode = #tpu.pipeline_mode<synchronous>, transform_indices = @transform_2, window_bounds = array<i64: 1, 1024>}, {pipeline_mode = #tpu.pipeline_mode<synchronous>, transform_indices = @transform_3, window_bounds = array<i64: 1024, 10>}, {pipeline_mode = #tpu.pipeline_mode<synchronous>, transform_indices = @transform_4, window_bounds = array<i64: 1, 10>}, {pipeline_mode = #tpu.pipeline_mode<synchronous>, transform_indices = @transform_5, window_bounds = array<i64: 2, 10>}]} {
    %c0 = arith.constant 0 : index
    %c0_0 = arith.constant 0 : index
    %c0_1 = arith.constant 0 : index
    %0 = vector.load %arg1[%c0, %c0_0, %c0_1] : memref<2x4x96xbf16, #tpu.memory_space<vmem>>, vector<2x4x96xbf16>
    %1 = arith.extf %0 : vector<2x4x96xbf16> to vector<2x4x96xf32>
    %cst = arith.constant dense<0.000000e+00> : vector<2x96xf32>
    %2 = vector.multi_reduction <add>, %1, %cst [1] : vector<2x4x96xf32> to vector<2x96xf32>
    %cst_2 = arith.constant 2.500000e-01 : f32
    %3 = vector.broadcast %cst_2 : f32 to vector<2x96xf32>
    %4 = arith.mulf %2, %3 : vector<2x96xf32>
    %5 = arith.truncf %4 : vector<2x96xf32> to vector<2x96xbf16>
    %c0_3 = arith.constant 0 : index
    %c0_4 = arith.constant 0 : index
    %6 = vector.load %arg2[%c0_3, %c0_4] : memref<96x1024xbf16, #tpu.memory_space<vmem>>, vector<96x1024xbf16>
    %cst_5 = arith.constant dense<0.000000e+00> : vector<2x1024xf32>
    %7 = tpu.matmul %5, %6, %cst_5 {dimension_numbers = #tpu.dot_dimension_numbers<[1], [0], [0], [1], [0, 0, 1, 1], [], []>} : vector<2x96xbf16>, vector<96x1024xbf16>, vector<2x1024xf32> -> vector<2x1024xf32>
    %c0_6 = arith.constant 0 : index
    %c0_7 = arith.constant 0 : index
    %8 = vector.load %arg3[%c0_6, %c0_7] : memref<1x1024xf32, #tpu.memory_space<vmem>>, vector<1x1024xf32>
    %9 = vector.broadcast %8 : vector<1x1024xf32> to vector<2x1024xf32>
    %10 = arith.addf %7, %9 : vector<2x1024xf32>
    %cst_8 = arith.constant 3.000000e+00 : f32
    %11 = vector.broadcast %cst_8 : f32 to vector<2x1024xf32>
    %12 = arith.addf %10, %11 : vector<2x1024xf32>
    %cst_9 = arith.constant 0.000000e+00 : f32
    %cst_10 = arith.constant 6.000000e+00 : f32
    %13 = vector.broadcast %cst_9 : f32 to vector<2x1024xf32>
    %14 = arith.maximumf %13, %12 : vector<2x1024xf32>
    %15 = vector.broadcast %cst_10 : f32 to vector<2x1024xf32>
    %16 = arith.minimumf %15, %14 : vector<2x1024xf32>
    %cst_11 = arith.constant 0.166666672 : f32
    %17 = vector.broadcast %cst_11 : f32 to vector<2x1024xf32>
    %18 = arith.mulf %16, %17 : vector<2x1024xf32>
    %19 = arith.mulf %10, %18 : vector<2x1024xf32>
    %20 = arith.truncf %19 : vector<2x1024xf32> to vector<2x1024xbf16>
    %c0_12 = arith.constant 0 : index
    %c0_13 = arith.constant 0 : index
    %21 = vector.load %arg4[%c0_12, %c0_13] : memref<1024x10xbf16, #tpu.memory_space<vmem>>, vector<1024x10xbf16>
    %cst_14 = arith.constant dense<0.000000e+00> : vector<2x10xf32>
    %22 = tpu.matmul %20, %21, %cst_14 {dimension_numbers = #tpu.dot_dimension_numbers<[1], [0], [0], [1], [0, 0, 1, 1], [], []>} : vector<2x1024xbf16>, vector<1024x10xbf16>, vector<2x10xf32> -> vector<2x10xf32>
    %c0_15 = arith.constant 0 : index
    %c0_16 = arith.constant 0 : index
    %23 = vector.load %arg5[%c0_15, %c0_16] : memref<1x10xf32, #tpu.memory_space<vmem>>, vector<1x10xf32>
    %24 = vector.broadcast %23 : vector<1x10xf32> to vector<2x10xf32>
    %25 = arith.addf %22, %24 : vector<2x10xf32>
    %c0_17 = arith.constant 0 : index
    %c0_18 = arith.constant 0 : index
    %26 = vector.load %arg6[%c0_17, %c0_18] : memref<2x10xf32, #tpu.memory_space<vmem>>, vector<2x10xf32>
    tpu.vector_store %arg6[%c0_17, %c0_18], %25 {strides = array<i32>} : memref<2x10xf32, #tpu.memory_space<vmem>>, vector<2x10xf32>,
    return
  }
  func.func @transform_0(%arg0: i32) -> (i32, i32, i32) {
    %c0_i32 = arith.constant 0 : i32
    %c0_i32_0 = arith.constant 0 : i32
    %c0_i32_1 = arith.constant 0 : i32
    %c0_i32_2 = arith.constant 0 : i32
    return %c0_i32, %c0_i32_0, %c0_i32_1 : i32, i32, i32
  }
  func.func @transform_1(%arg0: i32) -> (i32, i32) {
    %c0_i32 = arith.constant 0 : i32
    %c0_i32_0 = arith.constant 0 : i32
    %c0_i32_1 = arith.constant 0 : i32
    return %c0_i32, %c0_i32_0 : i32, i32
  }
  func.func @transform_2(%arg0: i32) -> (i32, i32) {
    %c0_i32 = arith.constant 0 : i32
    %c0_i32_0 = arith.constant 0 : i32
    %c0_i32_1 = arith.constant 0 : i32
    return %c0_i32, %c0_i32_0 : i32, i32
  }
  func.func @transform_3(%arg0: i32) -> (i32, i32) {
    %c0_i32 = arith.constant 0 : i32
    %c0_i32_0 = arith.constant 0 : i32
    %c0_i32_1 = arith.constant 0 : i32
    return %c0_i32, %c0_i32_0 : i32, i32
  }
  func.func @transform_4(%arg0: i32) -> (i32, i32) {
    %c0_i32 = arith.constant 0 : i32
    %c0_i32_0 = arith.constant 0 : i32
    %c0_i32_1 = arith.constant 0 : i32
    return %c0_i32, %c0_i32_0 : i32, i32
  }
  func.func @transform_5(%arg0: i32) -> (i32, i32) {
    %c0_i32 = arith.constant 0 : i32
    %c0_i32_0 = arith.constant 0 : i32
    %c0_i32_1 = arith.constant 0 : i32
    return %c0_i32, %c0_i32_0 : i32, i32
  }
}

</mosaic_0001>

<bundles_post_ra>
// kernel: _lambda_.11
= control target key start
LH: loop header
LB: loop body
LE: loop exit
PB: predicated region body
PF: predicated region fallthrough
CT: control target
= control target key end

     0   :  { %vm90_vm0 = vcmask 261120   ;;  %vm402_vm1 = vcmask 125952   ;;  %s688_s1 = inlined_call_operand.vmem [shape: bf16[32,16], index: 1, kind: input, shape index: {}]   ;;  %s689_s0 = inlined_call_operand.vmem [shape: bf16[128,32], index: 0, kind: input, shape index: {}]   ;;  %s690_s2 = inlined_call_operand.vmem [shape: f32[1,16], index: 2, kind: input, shape index: {}]   ;;  %s691_s3 = inlined_call_operand.vmem [shape: f32[1,16], index: 3, kind: input, shape index: {}]   ;;  %s692_s4 = inlined_call_operand.vmem [shape: bf16[128,16], index: 4, kind: output, shape index: {}]  }
   0x1   :  { %v509_v0 = vld [vmem:[%s688_s1] sm:$0xff]   ;;  %v510_v1 = vld [vmem:[%s688_s1 + $0x8] sm:$0xff]   ;;  %v515_v6 = vld [vmem:[%s689_s0 + $0x10] sm:$0xff]  }
   0x2   :  { %485 = vmatprep.subr.bf16.mxu0 %v509_v0  ;;  %505 = vmatprep.subr.bf16.mxu1 %v509_v0  ;;  %v511_v2 = vld [vmem:[%s689_s0] sm:$0xff]   ;;  %v513_v4 = vld [vmem:[%s689_s0 + $0x8] sm:$0xff]   ;;  %v516_v7 = vld [vmem:[%s689_s0 + $0x30] sm:$0xff]  }
   0x3   :  { %486 = vmatpush3.bf16.msra.mxu0 %v509_v0  ;;  %507 = vmatpush3.bf16.msra.mxu1 %v509_v0  ;;  %v512_v3 = vld [vmem:[%s689_s0 + $0x20] sm:$0xff]   ;;  %v514_v5 = vld [vmem:[%s689_s0 + $0x28] sm:$0xff]   ;;  %v517_v8 = vld [vmem:[%s689_s0 + $0x18] sm:$0xff]  }
   0x4   :  { %487 = vmatprep.subr.bf16.mxu0 %v510_v1  ;;  %506 = vmatprep.subr.bf16.mxu1 %v510_v1  ;;  %v518_v9 = vld [vmem:[%s689_s0 + $0x38] sm:$0xff]   ;;  %v585_v10 = vld [vmem:[%s690_s2] ss:$0 sm:$0xff] }
   0x5   :  { %489 = vmatprep.mubr.msk.bf16.mxu0 %vm90_vm0, %v511_v2  ;;  %497 = vmatprep.mubr.msk.bf16.mxu1 %vm90_vm0, %v512_v3  ;;  %v590_v12 = vld [vmem:[%s691_s3] ss:$0 sm:$0xff] }
   0x7   :  { %488 = vmatpush3.bf16.msra.mxu0 %v510_v1  ;;  %508 = vmatpush3.bf16.msra.mxu1 %v510_v1 }
   0xa   :  { %490 = vmatmul.mubr.msk.bf16.vlgmr.msra.gmra.mrb[0].mxu0 %vm90_vm0, %v513_v4  ;;  %498 = vmatmul.mubr.msk.bf16.vlgmr.msra.gmra.mrb[0].mxu1 %vm90_vm0, %v514_v5 }
   0xb   :  { %493 = vmatprep.mubr.msk.bf16.mxu0 %vm90_vm0, %v515_v6  ;;  %501 = vmatprep.mubr.msk.bf16.mxu1 %vm90_vm0, %v516_v7 }
  0x12   :  { %494 = vmatmul.mubr.msk.bf16.gmra.mrb[4].mxu0 %vm90_vm0, %v517_v8  ;;  %502 = vmatmul.mubr.msk.bf16.gmra.mrb[4].mxu1 %vm90_vm0, %v518_v9 }
  0xdd   :  { %v491_v11 = vpop.f32.mrb[0].mxu0  ;;  %v499_v13 = vpop.f32.mrb[0].mxu1 }
  0xde   :  { %v221_v14 = vmul.f32 %v491_v11, %v585_v10  ;;  %v229_v15 = vmul.f32 %v499_v13, %v585_v10  ;;  %v149_v16 = vpop.f32.mrb[1].mxu0  ;;  %v181_v17 = vpop.f32.mrb[1].mxu1 }
  0xdf   :  { %v219_v18 = vmul.f32 %v585_v10, %v149_v16  ;;  %v227_v19 = vmul.f32 %v585_v10, %v181_v17  ;;  %v492_v20 = vpop.f32.mrb[2].mxu0  ;;  %v500_v21 = vpop.f32.mrb[2].mxu1 }
  0xe0   :  { %v244_v22 = vadd.f32 %v590_v12, %v221_v14  ;;  %v252_v23 = vadd.f32 %v590_v12, %v229_v15  ;;  %v222_v24 = vmul.f32 %v492_v20, %v585_v10  ;;  %v230_v25 = vmul.f32 %v500_v21, %v585_v10  ;;  %v152_v26 = vpop.f32.mrb[3].mxu0  ;;  %v184_v27 = vpop.f32.mrb[3].mxu1 }
  0xe1   :  { %v242_v28 = vadd.f32 %v590_v12, %v219_v18  ;;  %v250_v29 = vadd.f32 %v590_v12, %v227_v19  ;;  %v220_v30 = vmul.f32 %v585_v10, %v152_v26  ;;  %v228_v31 = vmul.f32 %v585_v10, %v184_v27 }
  0xe2   :  { %v260_v32 = vadd.f32 3.0, %v244_v22  ;;  %v268_v33 = vadd.f32 3.0, %v252_v23  ;;  %v245_v34 = vadd.f32 %v590_v12, %v222_v24  ;;  %v253_v35 = vadd.f32 %v590_v12, %v230_v25 }
  0xe3   :  { %v258_v36 = vadd.f32 3.0, %v242_v28  ;;  %v266_v37 = vadd.f32 3.0, %v250_v29  ;;  %v243_v38 = vadd.f32 %v590_v12, %v220_v30  ;;  %v251_v39 = vadd.f32 %v590_v12, %v228_v31 }
  0xe4   :  { %v276_v40 = vmax.f32 %v260_v32, 0.0  ;;  %v284_v41 = vmax.f32 %v268_v33, 0.0  ;;  %v261_v42 = vadd.f32 3.0, %v245_v34  ;;  %v269_v43 = vadd.f32 3.0, %v253_v35 }
  0xe5   :  { %v274_v44 = vmax.f32 %v258_v36, 0.0  ;;  %v282_v45 = vmax.f32 %v266_v37, 0.0  ;;  %v259_v46 = vadd.f32 3.0, %v243_v38  ;;  %v267_v47 = vadd.f32 3.0, %v251_v39  ;;  %v495_v48 = vpop.f32.mrb[4].mxu0  ;;  %v503_v49 = vpop.f32.mrb[4].mxu1 }
  0xe6   :  { %v292_v50 = vmin.f32 %v276_v40, 6.0  ;;  %v300_v51 = vmin.f32 %v284_v41, 6.0  ;;  %v277_v52 = vmax.f32 %v261_v42, 0.0  ;;  %v285_v53 = vmax.f32 %v269_v43, 0.0  ;;  %v165_v54 = vpop.f32.mrb[5].mxu0  ;;  %v197_v55 = vpop.f32.mrb[5].mxu1 }
  0xe7   :  { %v290_v56 = vmin.f32 %v274_v44, 6.0  ;;  %v298_v57 = vmin.f32 %v282_v45, 6.0  ;;  %v275_v58 = vmax.f32 %v259_v46, 0.0  ;;  %v283_v59 = vmax.f32 %v267_v47, 0.0  ;;  %v496_v60 = vpop.f32.mrb[6].mxu0  ;;  %v504_v61 = vpop.f32.mrb[6].mxu1 }
  0xe8   :  { %v308_v62 = vmul.f32 0.16666667, %v292_v50  ;;  %v316_v63 = vmul.f32 0.16666667, %v300_v51  ;;  %v293_v0 = vmin.f32 %v277_v52, 6.0  ;;  %v301_v1 = vmin.f32 %v285_v53, 6.0 }
  0xe9   :  { %v306_v2 = vmul.f32 0.16666667, %v290_v56  ;;  %v314_v3 = vmul.f32 0.16666667, %v298_v57  ;;  %v291_v4 = vmin.f32 %v275_v58, 6.0  ;;  %v299_v5 = vmin.f32 %v283_v59, 6.0 }
  0xea   :  { %v324_v6 = vmul.f32 %v308_v62, %v244_v22  ;;  %v332_v7 = vmul.f32 %v316_v63, %v252_v23  ;;  %v309_v8 = vmul.f32 0.16666667, %v293_v0  ;;  %v317_v9 = vmul.f32 0.16666667, %v301_v1  ;;  %v168_v11 = vpop.f32.mrb[7].mxu0  ;;  %v200_v13 = vpop.f32.mrb[7].mxu1 }
  0xeb   :  { %v322_v14 = vmul.f32 %v306_v2, %v242_v28  ;;  %v330_v15 = vmul.f32 %v314_v3, %v250_v29  ;;  %v307_v16 = vmul.f32 0.16666667, %v291_v4  ;;  %v315_v17 = vmul.f32 0.16666667, %v299_v5 }
  0xec   :  { %v461_v18 = vpack.c.bf16 %v324_v6, %v324_v6  ;;  %v469_v19 = vpack.c.bf16 %v332_v7, %v332_v7  ;;  %v325_v20 = vmul.f32 %v309_v8, %v245_v34  ;;  %v333_v21 = vmul.f32 %v317_v9, %v253_v35 }
  0xed   :  { %v459_v24 = vpack.c.bf16 %v322_v14, %v322_v14  ;;  %v467_v25 = vpack.c.bf16 %v330_v15, %v330_v15  ;;  %v323_v26 = vmul.f32 %v307_v16, %v243_v38  ;;  %v331_v27 = vmul.f32 %v315_v17, %v251_v39 }
  0xee   :  { %405 = vst.msk [vmem:[%s692_s4 + $0x8] sm:$0xf] %vm402_vm1, %v461_v18  ;;  %413 = vst.msk [vmem:[%s692_s4 + $0x28] sm:$0xf] %vm402_vm1, %v469_v19  ;;  %v462_v22 = vpack.c.bf16 %v325_v20, %v325_v20  ;;  %v470_v23 = vpack.c.bf16 %v333_v21, %v333_v21  ;;  %v225_v28 = vmul.f32 %v495_v48, %v585_v10 }
  0xef   :  { %v233_v29 = vmul.f32 %v503_v49, %v585_v10  ;;  %403 = vst.msk [vmem:[%s692_s4] sm:$0xf] %vm402_vm1, %v459_v24  ;;  %411 = vst.msk [vmem:[%s692_s4 + $0x20] sm:$0xf] %vm402_vm1, %v467_v25  ;;  %v460_v30 = vpack.c.bf16 %v323_v26, %v323_v26  ;;  %v468_v31 = vpack.c.bf16 %v331_v27, %v331_v27 }
  0xf0   :  { %v223_v32 = vmul.f32 %v585_v10, %v165_v54  ;;  %v231_v33 = vmul.f32 %v585_v10, %v197_v55  ;;  %406 = vst.msk [vmem:[%s692_s4 + $0xc] sm:$0xf] %vm402_vm1, %v462_v22  ;;  %414 = vst.msk [vmem:[%s692_s4 + $0x2c] sm:$0xf] %vm402_vm1, %v470_v23  ;;  %v248_v34 = vadd.f32 %v590_v12, %v225_v28 }
  0xf1   :  { %v256_v35 = vadd.f32 %v590_v12, %v233_v29  ;;  %v226_v36 = vmul.f32 %v496_v60, %v585_v10  ;;  %v234_v37 = vmul.f32 %v504_v61, %v585_v10  ;;  %404 = vst.msk [vmem:[%s692_s4 + $0x4] sm:$0xf] %vm402_vm1, %v460_v30  ;;  %412 = vst.msk [vmem:[%s692_s4 + $0x24] sm:$0xf] %vm402_vm1, %v468_v31 }
  0xf2   :  { %v246_v38 = vadd.f32 %v590_v12, %v223_v32  ;;  %v254_v39 = vadd.f32 %v590_v12, %v231_v33  ;;  %v224_v40 = vmul.f32 %v585_v10, %v168_v11  ;;  %v232_v41 = vmul.f32 %v585_v10, %v200_v13 }
  0xf3   :  { %v264_v42 = vadd.f32 3.0, %v248_v34  ;;  %v272_v43 = vadd.f32 3.0, %v256_v35  ;;  %v249_v44 = vadd.f32 %v590_v12, %v226_v36  ;;  %v257_v45 = vadd.f32 %v590_v12, %v234_v37 }
  0xf4   :  { %v262_v46 = vadd.f32 3.0, %v246_v38  ;;  %v270_v47 = vadd.f32 3.0, %v254_v39  ;;  %v247_v48 = vadd.f32 %v590_v12, %v224_v40  ;;  %v255_v49 = vadd.f32 %v590_v12, %v232_v41 }
  0xf5   :  { %v280_v50 = vmax.f32 %v264_v42, 0.0  ;;  %v288_v51 = vmax.f32 %v272_v43, 0.0  ;;  %v265_v52 = vadd.f32 3.0, %v249_v44  ;;  %v273_v53 = vadd.f32 3.0, %v257_v45 }
  0xf6   :  { %v278_v54 = vmax.f32 %v262_v46, 0.0  ;;  %v286_v55 = vmax.f32 %v270_v47, 0.0  ;;  %v263_v56 = vadd.f32 3.0, %v247_v48  ;;  %v271_v10 = vadd.f32 3.0, %v255_v49 }
  0xf7   :  { %v296_v57 = vmin.f32 %v280_v50, 6.0  ;;  %v304_v58 = vmin.f32 %v288_v51, 6.0  ;;  %v281_v59 = vmax.f32 %v265_v52, 0.0  ;;  %v289_v60 = vmax.f32 %v273_v53, 0.0 }
  0xf8   :  { %v294_v61 = vmin.f32 %v278_v54, 6.0  ;;  %v302_v62 = vmin.f32 %v286_v55, 6.0  ;;  %v279_v63 = vmax.f32 %v263_v56, 0.0  ;;  %v287_v0 = vmax.f32 %v271_v10, 0.0 }
  0xf9   :  { %v312_v1 = vmul.f32 0.16666667, %v296_v57  ;;  %v320_v2 = vmul.f32 0.16666667, %v304_v58  ;;  %v297_v3 = vmin.f32 %v281_v59, 6.0  ;;  %v305_v12 = vmin.f32 %v289_v60, 6.0 }
  0xfa   :  { %v310_v4 = vmul.f32 0.16666667, %v294_v61  ;;  %v318_v5 = vmul.f32 0.16666667, %v302_v62  ;;  %v295_v6 = vmin.f32 %v279_v63, 6.0  ;;  %v303_v7 = vmin.f32 %v287_v0, 6.0 }
  0xfb   :  { %v328_v8 = vmul.f32 %v312_v1, %v248_v34  ;;  %v336_v9 = vmul.f32 %v320_v2, %v256_v35  ;;  %v313_v11 = vmul.f32 0.16666667, %v297_v3  ;;  %v321_v13 = vmul.f32 0.16666667, %v305_v12 }
  0xfc   :  { %v326_v14 = vmul.f32 %v310_v4, %v246_v38  ;;  %v334_v15 = vmul.f32 %v318_v5, %v254_v39  ;;  %v311_v16 = vmul.f32 0.16666667, %v295_v6  ;;  %v319_v17 = vmul.f32 0.16666667, %v303_v7 }
  0xfd   :  { %v465_v18 = vpack.c.bf16 %v328_v8, %v328_v8  ;;  %v473_v19 = vpack.c.bf16 %v336_v9, %v336_v9  ;;  %v329_v20 = vmul.f32 %v313_v11, %v249_v44  ;;  %v337_v21 = vmul.f32 %v321_v13, %v257_v45 }
  0xfe   :  { %v463_v24 = vpack.c.bf16 %v326_v14, %v326_v14  ;;  %v471_v25 = vpack.c.bf16 %v334_v15, %v334_v15  ;;  %v327_v26 = vmul.f32 %v311_v16, %v247_v48  ;;  %v335_v27 = vmul.f32 %v319_v17, %v255_v49 }
  0xff   :  { %409 = vst.msk [vmem:[%s692_s4 + $0x18] sm:$0xf] %vm402_vm1, %v465_v18  ;;  %417 = vst.msk [vmem:[%s692_s4 + $0x38] sm:$0xf] %vm402_vm1, %v473_v19  ;;  %v466_v22 = vpack.c.bf16 %v329_v20, %v329_v20  ;;  %v474_v23 = vpack.c.bf16 %v337_v21, %v337_v21 }
 0x100   :  { %407 = vst.msk [vmem:[%s692_s4 + $0x10] sm:$0xf] %vm402_vm1, %v463_v24  ;;  %415 = vst.msk [vmem:[%s692_s4 + $0x30] sm:$0xf] %vm402_vm1, %v471_v25  ;;  %v464_v28 = vpack.c.bf16 %v327_v26, %v327_v26  ;;  %v472_v29 = vpack.c.bf16 %v335_v27, %v335_v27 }
 0x101   :  { %410 = vst.msk [vmem:[%s692_s4 + $0x1c] sm:$0xf] %vm402_vm1, %v466_v22  ;;  %418 = vst.msk [vmem:[%s692_s4 + $0x3c] sm:$0xf] %vm402_vm1, %v474_v23 }
 0x102   :  { %408 = vst.msk [vmem:[%s692_s4 + $0x14] sm:$0xf] %vm402_vm1, %v464_v28  ;;  %416 = vst.msk [vmem:[%s692_s4 + $0x34] sm:$0xf] %vm402_vm1, %v472_v29 }

// kernel: _lambda_.13
= control target key start
LH: loop header
LB: loop body
LE: loop exit
PB: predicated region body
PF: predicated region fallthrough
CT: control target
= control target key end

     0   :  { %s894_s30 = smov 0   ;;  %s896_s10 = smov 0   ;;  %s960_s0 = inlined_call_operand.vmem [shape: bf16[2,16,16], index: 0, kind: input, shape index: {}]   ;;  %s961_s1 = inlined_call_operand.vmem [shape: bf16[16,16], index: 1, kind: input, shape index: {}]   ;;  %s962_s2 = inlined_call_operand.vmem [shape: f32[1,16], index: 2, kind: input, shape index: {}]   ;;  %s963_s3 = inlined_call_operand.vmem [shape: f32[1,16], index: 3, kind: input, shape index: {}, may-alias: {3,8}]   ;;  %s964_s4 = inlined_call_operand.vmem [shape: f32[2,1,16], index: 4, kind: input, shape index: {}]   ;;  %s965_s5 = inlined_call_operand.vmem [shape: f32[16,8], index: 5, kind: input, shape index: {}]   ;;  %s966_s6 = inlined_call_operand.vmem [shape: f32[1,8], index: 6, kind: input, shape index: {}]   ;;  %s967_s7 = inlined_call_operand.vmem [shape: f32[8,16], index: 7, kind: input, shape index: {}]   ;;  %s968_s8 = inlined_call_operand.vmem [shape: f32[1,16], index: 8, kind: input, shape index: {}, may-alias: {3,8}]   ;;  %s969_s9 = inlined_call_operand.vmem [shape: bf16[2,16,16], index: 9, kind: output, shape index: {}]  }
   0x1   :  { %s898_s11 = smov 0  }
   0x2 LB: > { %s31_s12 = sadd.s32 1, %s835_s10  ;;  %p738_p0 = scmp.ge.s32.totalorder %s839_s11, 1  ;;  %s839_s11 = sphi %s898_s11, %s19_s11   ;;  %s835_s10 = sphi %s896_s10, %s971_s10   ;;  %s831_s30 = sphi %s894_s30, %s970_s30  }
   0x3   : > { %p33_p1 = scmp.ge.s32.totalorder %s31_s12, 2  ;;  %p316_p2 = scmp.lt.s32.totalorder %s839_s11, 3 }
   0x5   : > { %s973_s12 = smov (%p33_p1, %s31_s12), 0  ;;  %p317_p3 = pnand %p738_p0, %p316_p2 }
   0x6   : > { %v388_v0 = vld [vmem:[%s965_s5] sm:$0xff] (!%p317_p3)  ;;  %v389_v1 = vld [vmem:[%s965_s5 + $0x8] sm:$0xff] (!%p317_p3)  ;;  %p364_p4 = scmp.lt.s32.totalorder (!%p317_p3), %s831_s30, 1  ;;  %v841_v2 = vmov (!%p317_p3), 0.0|0.0   ;;  %vm842_vm0 = vmmov (!%p317_p3), 0   ;;  %v843_v4 = vmov (!%p317_p3), 0.0   ;;  %v550_v14 = vlaneseq (!%p317_p3) }
   0x7   : > { %320 = sbr.rel (%p317_p3) target bundleno = 682 (0x2aa), region = 56  ;;  %786 = vmatprep.subr.bf16.mxu0 (!%p317_p3), %v841_v2  ;;  %v787_v3 = vpack.c.bf16 (!%p317_p3), %v389_v1, %v388_v0  ;;  %772 = vmatprep.mubr.msk.f32.mxu0 (!%p317_p3), %vm842_vm0, %v843_v4  ;;  %vm391_vm1 = vcmask (!%p317_p3), 130048   ;;  %v466_v6 = vld [vmem:[%s967_s7] sm:$0xff] (!%p317_p3)  ;;  %vm468_vm2 = vcmask (!%p317_p3), 64512   ;;  %vm635_vm3 = vcmask (!%p317_p3), 125952  }
   0x8   : > { %780 = vmatprep.subr.bf16.mxu1 (!%p317_p3), %v843_v4  ;;  %782 = vmatprep.mubr.msk.bf16.mxu1 (!%p317_p3), %vm842_vm0, %v843_v4  ;;  %v390_v7 = vld [vmem:[%s966_s6] sm:$0x1] (!%p317_p3)  ;;  %v551_v19 = vshrl.u32 (!%p317_p3), %v550_v14, 7 }
   0x9   : > { %788 = vmatpush3.bf16.msra.mxu0 (!%p317_p3), %v787_v3  ;;  %v816_v12 = vld [vmem:[%s961_s1] sm:$0xff] (!%p317_p3)  }
   0xa   : > { %775 = vmatprep.subr.mxu0 (!%p317_p3), %v843_v4  ;;  %781 = vmatpush3.bf16.msra.mxu1 (!%p317_p3), %v816_v12  ;;  %v467_v13 = vld [vmem:[%s968_s8] sm:$0x1] (!%p317_p3)  ;;  %v552_v23 = vsub.s32 (!%p317_p3), 0, %v551_v19 }
   0xb   : > { %v747_v31 = vld [vmem:[%s962_s2] ss:$0 sm:$0xff] (!%p317_p3) }
   0xc   : > { %v748_v33 = vld [vmem:[%s963_s3] ss:$0 sm:$0xff] (!%p317_p3) }
   0xe   : > { %s975_s30 = smov (!%p364_p4, %s831_s30), 1 }
   0xf   : > { %s375_s19 = scalar_lea.vmem %s964_s4, %s975_s30  ;;  %s753_s28 = sshll.u32 %s975_s30, 3 }
  0x10   : > { %v387_v5 = vld [vmem:[%s375_s19] sm:$0x1]  ;;  %s371_s14 = scalar_lea.vmem %s960_s0, %s753_s28  ;;  %s384_s20 = scalar_lea.vmem %s969_s9, %s753_s28 }
  0x11   : > { %773 = vmatmul.mubr.msk.f32.vlgmr.msra.gmra.mrb[0].mxu0 %vm391_vm1, %v387_v5  ;;  %v758_v21 = vld [vmem:[%s371_s14] sm:$0xff]  }
  0x12   : > { %777 = vmatprep.mubr.msk.f32.mxu0 %vm842_vm0, %v843_v4  ;;  %776 = vmatpush3.msra.mxu0 %v466_v6  ;;  %v759_v25 = vunpack.c.l.bf16 %v758_v21  ;;  %v760_v26 = vunpack.c.h.bf16 %v758_v21 }
  0xe4   : > { %v461_v8 = vpop.f32.mrb[0].mxu0 }
  0xe5   : > { %v462_v9 = vadd.f32 %v461_v8, %v390_v7  ;;  %v774_v10 = vpop.f32.mrb[1].mxu0 }
  0xe7   : > { %v465_v11 = vmax.f32 %v462_v9, 0.0 }
  0xe9   : > { %778 = vmatmul.mubr.msk.f32.vlgmr.msra.gmra.mrb[2].mxu0 %vm468_vm2, %v465_v11 }
 0x1bc   : > { %v538_v15 = vpop.f32.mrb[2].mxu0 }
 0x1bd   : > { %v539_v16 = vadd.f32 %v538_v15, %v467_v13  ;;  %v779_v17 = vpop.f32.mrb[3].mxu0 }
 0x1bf   : > { %v542_v18 = vadd.f32 3.0, %v539_v16 }
 0x1c1   : > { %v543_v20 = vmax.f32 %v542_v18, 0.0 }
 0x1c3   : > { %v544_v22 = vmin.f32 %v543_v20, 6.0 }
 0x1c5   : > { %v545_v24 = vmul.f32 0.16666667, %v544_v22 }
 0x1c7   : > { %v553_v27 = vrot.slane %v545_v24, %v552_v23 }
 0x1c9   : > { %v554_v28 = vmul.f32 %v759_v25, %v553_v27  ;;  %v555_v29 = vmul.f32 %v760_v26, %v553_v27 }
 0x1cb   : > { %v556_v30 = vpack.c.bf16 %v555_v29, %v554_v28 }
 0x1cd   : > { %783 = vmatmul.mubr.msk.bf16.vlgmr.msra.gmra.mrb[0].mxu1 %vm391_vm1, %v556_v30 }
 0x2a0   : > { %v602_v32 = vpop.f32.mrb[0].mxu1 }
 0x2a1   : > { %v616_v34 = vmul.f32 %v747_v31, %v602_v32  ;;  %v784_v35 = vpop.f32.mrb[1].mxu1 }
 0x2a2   : > { %v605_v36 = vpop.f32.mrb[2].mxu1 }
 0x2a3   : > { %v625_v37 = vadd.f32 %v748_v33, %v616_v34  ;;  %v617_v38 = vmul.f32 %v747_v31, %v605_v36  ;;  %v785_v39 = vpop.f32.mrb[3].mxu1 }
 0x2a5   : > { %v755_v40 = vpack.c.bf16 %v625_v37, %v625_v37  ;;  %v626_v41 = vadd.f32 %v748_v33, %v617_v38 }
 0x2a7   : > { %636 = vst.msk [vmem:[%s384_s20] sm:$0xf] %vm635_vm3, %v755_v40  ;;  %v756_v42 = vpack.c.bf16 %v626_v41, %v626_v41 }
 0x2a9   : > { %637 = vst.msk [vmem:[%s384_s20 + $0x4] sm:$0xf] %vm635_vm3, %v756_v42 }
 0x2aa PF: > { %s19_s11 = sadd.s32 1, %s839_s11   ;;  %s970_s30 = smov %s835_s10 }
 0x2ab   : > { %p16_p5 = scmp.ge.s32.totalorder %s19_s11, 4   ;;  %s971_s10 = smov %s973_s12 }
 0x2ad   :  { %18 = sbr.rel (!%p16_p5) target bundleno = 2 (0x2), region = 89 }

// kernel: _lambda_.12
= control target key start
LH: loop header
LB: loop body
LE: loop exit
PB: predicated region body
PF: predicated region fallthrough
CT: control target
= control target key end

     0   :  { %s808_s18 = smov 0   ;;  %s810_s19 = smov 0   ;;  %s977_s0 = inlined_call_operand.vmem [shape: bf16[2,4,5,5,16], index: 0, kind: input, shape index: {}]   ;;  %s978_s1 = inlined_call_operand.vmem [shape: f32[9,1,16], index: 1, kind: input, shape index: {}]   ;;  %s979_s2 = inlined_call_operand.vmem [shape: f32[1,16], index: 2, kind: input, shape index: {}]   ;;  %s980_s3 = inlined_call_operand.vmem [shape: f32[1,16], index: 3, kind: input, shape index: {}]   ;;  %s981_s4 = inlined_call_operand.vmem [shape: bf16[2,4,4,16], index: 4, kind: output, shape index: {0}]   ;;  %s982_s5 = inlined_call_operand.vmem [shape: f32[2,1,16], index: 5, kind: output, shape index: {1}]  }
   0x1   :  { %s812_s20 = smov 0  }
   0x2 LB: > { %s28_s21 = sadd.s32 1, %s772_s19  ;;  %p691_p0 = scmp.ge.s32.totalorder %s776_s20, 1  ;;  %s776_s20 = sphi %s812_s20, %s16_s20   ;;  %s772_s19 = sphi %s810_s19, %s984_s19   ;;  %s768_s18 = sphi %s808_s18, %s983_s18  }
   0x3   : > { %p30_p1 = scmp.ge.s32.totalorder %s28_s21, 2  ;;  %p204_p2 = scmp.lt.s32.totalorder %s776_s20, 3 }
   0x5   : > { %s986_s21 = smov (%p30_p1, %s28_s21), 0  ;;  %p205_p3 = pnand %p691_p0, %p204_p2 }
   0x6   : > { %p239_p4 = scmp.lt.s32.totalorder (!%p205_p3), %s768_s18, 1  ;;  %v837_v0 = vld [vmem:[%s978_s1] ss:$0 sm:$0xff] (!%p205_p3)  ;;  %v842_v1 = vld [vmem:[%s978_s1 + $0x2] ss:$0 sm:$0xff] (!%p205_p3)  ;;  %vm524_vm0 = vcmask (!%p205_p3), 123904  }
   0x7   : > { %208 = sbr.rel (%p205_p3) target bundleno = 80 (0x50), region = 36  ;;  %v847_v2 = vld [vmem:[%s978_s1 + $0x1] ss:$0 sm:$0xff] (!%p205_p3)  ;;  %v855_v6 = vld [vmem:[%s978_s1 + $0x5] ss:$0 sm:$0xff] (!%p205_p3)  ;;  %vm529_vm1 = vcmask (!%p205_p3), 125952  }
   0x8   : > { %v862_v12 = vld [vmem:[%s978_s1 + $0x3] ss:$0 sm:$0xff] (!%p205_p3)  ;;  %v869_v16 = vld [vmem:[%s978_s1 + $0x4] ss:$0 sm:$0xff] (!%p205_p3)  ;;  %v878_v22 = vld [vmem:[%s978_s1 + $0x8] ss:$0 sm:$0xff] (!%p205_p3) }
   0x9   : > { %v890_v35 = vld [vmem:[%s978_s1 + $0x6] ss:$0 sm:$0xff] (!%p205_p3)  ;;  %v895_v36 = vld [vmem:[%s978_s1 + $0x7] ss:$0 sm:$0xff] (!%p205_p3)  ;;  %vm549_vm2 = vcmask (!%p205_p3), 122880  }
   0xe   : > { %s988_s18 = smov (!%p239_p4, %s768_s18), 1 }
   0xf   : > { %s729_s22 = smul.u32 80, %s988_s18  ;;  %s728_s28 = sshll.u32 %s988_s18, 3 }
  0x10   : > { %s947_s6 = scalar_lea.vmem %s981_s4, %s728_s28  ;;  %s256_s8 = scalar_lea.vmem %s982_s5, %s988_s18 }
  0x11   : > { %s832_s25 = scalar_lea.vmem %s977_s0, %s729_s22 }
  0x12   : > { %v269_v3 = vld [vmem:[%s832_s25] sm:$0x7]  ;;  %v697_v4 = vld [vmem:[%s832_s25 + $0x14] sm:$0x7]  ;;  %v702_v5 = vld [vmem:[%s832_s25 + $0x28] sm:$0x7] }
  0x13   : > { %v273_v7 = vunpack.c.l.bf16 %v269_v3  ;;  %v324_v8 = vunpack.c.l.bf16 %v697_v4  ;;  %v349_v9 = vunpack.c.l.bf16 %v702_v5  ;;  %v708_v10 = vld [vmem:[%s832_s25 + $0x3c] sm:$0x7]  ;;  %v713_v11 = vld [vmem:[%s832_s25 + $0x4] sm:$0x7]  ;;  %v698_v15 = vld [vmem:[%s832_s25 + $0x18] sm:$0x7] }
  0x14   : > { %v400_v13 = vunpack.c.l.bf16 %v708_v10  ;;  %v270_v14 = vld [vmem:[%s832_s25 + $0x4] sm:$0x7]  ;;  %v425_v19 = vunpack.c.l.bf16 %v713_v11  ;;  %v719_v20 = vld [vmem:[%s832_s25 + $0x18] sm:$0x7]  ;;  %v703_v21 = vld [vmem:[%s832_s25 + $0x2c] sm:$0x7]  ;;  %v325_v27 = vunpack.c.l.bf16 %v698_v15 }
  0x15   : > { %v283_v17 = vmul.f32 %v837_v0, %v273_v7  ;;  %v297_v18 = vmul.f32 %v842_v1, %v273_v7  ;;  %v373_v23 = vmul.f32 %v855_v6, %v349_v9  ;;  %v334_v25 = vmul.f32 %v847_v2, %v324_v8  ;;  %v709_v28 = vld [vmem:[%s832_s25 + $0x40] sm:$0x7]  ;;  %v714_v29 = vld [vmem:[%s832_s25 + $0x8] sm:$0x7]  ;;  %v699_v41 = vld [vmem:[%s832_s25 + $0x1c] sm:$0x7] }
  0x16   : > { %v274_v26 = vunpack.c.l.bf16 %v270_v14  ;;  %v359_v30 = vmul.f32 %v862_v12, %v349_v9  ;;  %v410_v31 = vmul.f32 %v869_v16, %v400_v13  ;;  %v476_v32 = vunpack.c.l.bf16 %v719_v20  ;;  %v271_v34 = vld [vmem:[%s832_s25 + $0x8] sm:$0x7]  ;;  %v720_v46 = vld [vmem:[%s832_s25 + $0x1c] sm:$0x7]  ;;  %v704_v51 = vld [vmem:[%s832_s25 + $0x30] sm:$0x7] }
  0x17   : > { %v305_v24 = vrot.slane %v297_v18, 1  ;;  %v350_v33 = vunpack.c.l.bf16 %v703_v21  ;;  %v449_v38 = vmul.f32 %v878_v22, %v425_v19  ;;  %v381_v42 = vrot.slane %v373_v23, 1  ;;  %v710_v8 = vld [vmem:[%s832_s25 + $0x44] sm:$0x7]  ;;  %v715_v9 = vld [vmem:[%s832_s25 + $0xc] sm:$0x7] }
  0x18   : > { %v284_v39 = vmul.f32 %v837_v0, %v274_v26  ;;  %v298_v40 = vmul.f32 %v842_v1, %v274_v26  ;;  %v335_v43 = vmul.f32 %v847_v2, %v325_v27  ;;  %v401_v44 = vunpack.c.l.bf16 %v709_v28  ;;  %v272_v15 = vld [vmem:[%s832_s25 + $0xc] sm:$0x7]  ;;  %v721_v23 = vld [vmem:[%s832_s25 + $0x20] sm:$0x7] }
  0x19   : > { %v313_v37 = vadd.f32 %v305_v24, %v283_v17  ;;  %v426_v45 = vunpack.c.l.bf16 %v714_v29  ;;  %v374_v49 = vmul.f32 %v855_v6, %v350_v33  ;;  %v275_v50 = vunpack.c.l.bf16 %v271_v34  ;;  %v700_v17 = vld [vmem:[%s832_s25 + $0x20] sm:$0x7]  ;;  %v705_v24 = vld [vmem:[%s832_s25 + $0x34] sm:$0x7] }
  0x1a   : > { %v306_v48 = vrot.slane %v298_v40, 1  ;;  %v435_v52 = vmul.f32 %v890_v35, %v425_v19  ;;  %v486_v53 = vmul.f32 %v895_v36, %v476_v32  ;;  %v360_v54 = vmul.f32 %v862_v12, %v350_v33 }
  0x1b   : > { %v338_v47 = vadd.f32 %v334_v25, %v313_v37  ;;  %v326_v55 = vunpack.c.l.bf16 %v699_v41  ;;  %v450_v58 = vmul.f32 %v878_v22, %v426_v45  ;;  %v477_v59 = vunpack.c.l.bf16 %v720_v46 }
  0x1c   : > { %v314_v57 = vadd.f32 %v306_v48, %v284_v39  ;;  %v457_v60 = vrot.slane %v449_v38, 1  ;;  %v285_v61 = vmul.f32 %v837_v0, %v275_v50  ;;  %v299_v62 = vmul.f32 %v842_v1, %v275_v50 }
  0x1d   : > { %v363_v56 = vadd.f32 %v359_v30, %v338_v47  ;;  %v351_v63 = vunpack.c.l.bf16 %v704_v51  ;;  %v382_v5 = vrot.slane %v374_v49, 1  ;;  %v411_v7 = vmul.f32 %v869_v16, %v401_v44  ;;  %v724_v44 = vld [vmem:[%s979_s2] ss:$0 sm:$0xff]  ;;  %v716_v49 = vld [vmem:[%s832_s25 + $0x10] sm:$0x7] }
  0x1e   : > { %v339_v4 = vadd.f32 %v335_v43, %v314_v57  ;;  %v436_v10 = vmul.f32 %v890_v35, %v426_v45  ;;  %v307_v11 = vrot.slane %v299_v62, 1  ;;  %v336_v13 = vmul.f32 %v847_v2, %v326_v55  ;;  %v711_v43 = vld [vmem:[%s832_s25 + $0x48] sm:$0x7] }
  0x1f   : > { %v389_v3 = vadd.f32 %v381_v42, %v363_v56  ;;  %v375_v14 = vmul.f32 %v855_v6, %v351_v63  ;;  %v458_v20 = vrot.slane %v450_v58, 1  ;;  %v487_v21 = vmul.f32 %v895_v36, %v477_v59 }
  0x20   : > { %v364_v19 = vadd.f32 %v360_v54, %v339_v4  ;;  %v315_v25 = vadd.f32 %v307_v11, %v285_v61  ;;  %v361_v26 = vmul.f32 %v862_v12, %v351_v63  ;;  %v402_v27 = vunpack.c.l.bf16 %v710_v8  ;;  %v722_v4 = vld [vmem:[%s832_s25 + $0x24] sm:$0x7] }
  0x21   : > { %v414_v18 = vadd.f32 %v410_v31, %v389_v3  ;;  %v427_v28 = vunpack.c.l.bf16 %v715_v9  ;;  %v276_v32 = vunpack.c.l.bf16 %v272_v15  ;;  %v327_v33 = vunpack.c.l.bf16 %v700_v17 }
  0x22   : > { %v390_v30 = vadd.f32 %v382_v5, %v364_v19  ;;  %v340_v34 = vadd.f32 %v336_v13, %v315_v25  ;;  %v383_v37 = vrot.slane %v375_v14, 1  ;;  %v478_v31 = vunpack.c.l.bf16 %v721_v23 }
  0x23   : > { %v439_v29 = vadd.f32 %v435_v52, %v414_v18  ;;  %v352_v38 = vunpack.c.l.bf16 %v705_v24  ;;  %v286_v41 = vmul.f32 %v837_v0, %v276_v32  ;;  %v300_v42 = vmul.f32 %v842_v1, %v276_v32  ;;  %v725_v1 = vld [vmem:[%s980_s3] ss:$0 sm:$0xff] }
  0x24   : > { %v415_v40 = vadd.f32 %v411_v7, %v390_v30  ;;  %v365_v45 = vadd.f32 %v361_v26, %v340_v34  ;;  %v412_v46 = vmul.f32 %v869_v16, %v402_v27  ;;  %v451_v47 = vmul.f32 %v878_v22, %v427_v28 }
  0x25   : > { %v465_v39 = vadd.f32 %v457_v60, %v439_v29  ;;  %v337_v48 = vmul.f32 %v847_v2, %v327_v33  ;;  %v308_v52 = vrot.slane %v300_v42, 1  ;;  %v376_v0 = vmul.f32 %v855_v6, %v352_v38 }
  0x26   : > { %v440_v51 = vadd.f32 %v436_v10, %v415_v40  ;;  %v391_v54 = vadd.f32 %v383_v37, %v365_v45  ;;  %v437_v55 = vmul.f32 %v890_v35, %v427_v28  ;;  %v362_v56 = vmul.f32 %v862_v12, %v352_v38 }
  0x27   : > { %v490_v50 = vadd.f32 %v486_v53, %v465_v39  ;;  %v403_v57 = vunpack.c.l.bf16 %v711_v43  ;;  %v316_v59 = vadd.f32 %v308_v52, %v286_v41  ;;  %v428_v60 = vunpack.c.l.bf16 %v716_v49 }
  0x28   : > { %v466_v2 = vadd.f32 %v458_v20, %v440_v51  ;;  %v416_v53 = vadd.f32 %v412_v46, %v391_v54  ;;  %v459_v61 = vrot.slane %v451_v47, 1  ;;  %v384_v3 = vrot.slane %v376_v0, 1 }
  0x29   : > { %v501_v58 = vmul.f32 %v724_v44, %v490_v50  ;;  %v341_v63 = vadd.f32 %v337_v48, %v316_v59  ;;  %v488_v7 = vmul.f32 %v895_v36, %v478_v31  ;;  %v413_v8 = vmul.f32 %v869_v16, %v403_v57 }
  0x2a   : > { %v491_v6 = vadd.f32 %v487_v21, %v466_v2  ;;  %v441_v5 = vadd.f32 %v437_v55, %v416_v53  ;;  %v452_v11 = vmul.f32 %v878_v22, %v428_v60  ;;  %v479_v14 = vunpack.c.l.bf16 %v722_v4 }
  0x2b   : > { %v512_v62 = vadd.f32 %v725_v1, %v501_v58  ;;  %v366_v10 = vadd.f32 %v362_v56, %v341_v63  ;;  %v438_v16 = vmul.f32 %v890_v35, %v428_v60 }
  0x2c   : > { %v502_v12 = vmul.f32 %v724_v44, %v491_v6  ;;  %v467_v13 = vadd.f32 %v459_v61, %v441_v5  ;;  %v460_v21 = vrot.slane %v452_v11, 1  ;;  %v489_v26 = vmul.f32 %v895_v36, %v479_v14 }
  0x2d   : > { %v516_v9 = vmax.f32 %v512_v62, 0.0  ;;  %v392_v18 = vadd.f32 %v384_v3, %v366_v10 }
  0x2e   : > { %v513_v17 = vadd.f32 %v725_v1, %v502_v12  ;;  %v492_v19 = vadd.f32 %v488_v7, %v467_v13 }
  0x2f   : > { %v520_v15 = vpack.c.bf16 %v516_v9, %v516_v9  ;;  %v417_v22 = vadd.f32 %v413_v8, %v392_v18  ;;  %v530_v28 = vsel %vm529_vm1, %v516_v9, 0.0 }
  0x30   : > { %v517_v20 = vmax.f32 %v513_v17, 0.0  ;;  %v503_v23 = vmul.f32 %v724_v44, %v492_v19 }
  0x31   : > { %525 = vst.msk [vmem:[%s947_s6] sm:$0x3] %vm524_vm0, %v520_v15  ;;  %v442_v25 = vadd.f32 %v438_v16, %v417_v22 }
  0x32   : > { %v521_v24 = vpack.c.bf16 %v517_v20, %v517_v20  ;;  %v514_v27 = vadd.f32 %v725_v1, %v503_v23  ;;  %v531_v35 = vsel %vm529_vm1, %v517_v20, 0.0 }
  0x33   : > { %v468_v29 = vadd.f32 %v460_v21, %v442_v25  ;;  %v532_v33 = vadd.f32 %v531_v35, %v530_v28 }
  0x34   : > { %526 = vst.msk [vmem:[%s947_s6 + $0x2] sm:$0x3] %vm524_vm0, %v521_v24  ;;  %v518_v30 = vmax.f32 %v514_v27, 0.0 }
  0x35   : > { %v493_v32 = vadd.f32 %v489_v26, %v468_v29 }
  0x36   : > { %v522_v34 = vpack.c.bf16 %v518_v30, %v518_v30  ;;  %v533_v37 = vsel %vm529_vm1, %v518_v30, 0.0 }
  0x37   : > { %v504_v31 = vmul.f32 %v724_v44, %v493_v32  ;;  %v534_v38 = vadd.f32 %v533_v37, %v532_v33 }
  0x38   : > { %527 = vst.msk [vmem:[%s947_s6 + $0x4] sm:$0x3] %vm524_vm0, %v522_v34 }
  0x39   : > { %v515_v36 = vadd.f32 %v725_v1, %v504_v31 }
  0x3b   : > { %v519_v39 = vmax.f32 %v515_v36, 0.0 }
  0x3d   : > { %v523_v40 = vpack.c.bf16 %v519_v39, %v519_v39  ;;  %v535_v41 = vsel %vm529_vm1, %v519_v39, 0.0 }
  0x3e   : > { %v536_v42 = vadd.f32 %v535_v41, %v534_v38 }
  0x3f   : > { %528 = vst.msk [vmem:[%s947_s6 + $0x6] sm:$0x3] %vm524_vm0, %v523_v40 }
  0x40   : > { %v537_v43 = vsel %vm529_vm1, %v536_v42, 0.0 }
  0x41   : > { %v538_v45 = vrot.slane %v537_v43, 4 }
  0x43   : > { %v539_v46 = vadd.f32 %v538_v45, %v537_v43 }
  0x45   : > { %v540_v47 = vrot.slane %v539_v46, 2 }
  0x47   : > { %v541_v48 = vadd.f32 %v540_v47, %v539_v46 }
  0x49   : > { %v542_v49 = vrot.slane %v541_v48, 1 }
  0x4b   : > { %v543_v44 = vadd.f32 %v542_v49, %v541_v48 }
  0x4d   : > { %v544_v50 = vmul.f32 0.0625, %v543_v44 }
  0x4f   : > { %550 = vst.msk [vmem:[%s256_s8] sm:$0x1] %vm549_vm2, %v544_v50 }
  0x50 PF: > { %s16_s20 = sadd.s32 1, %s776_s20   ;;  %s983_s18 = smov %s772_s19 }
  0x51   : > { %p13_p5 = scmp.ge.s32.totalorder %s16_s20, 4   ;;  %s984_s19 = smov %s986_s21 }
  0x53   :  { %15 = sbr.rel (!%p13_p5) target bundleno = 2 (0x2), region = 92 }

// kernel: _lambda_.14
= control target key start
LH: loop header
LB: loop body
LE: loop exit
PB: predicated region body
PF: predicated region fallthrough
CT: control target
= control target key end

     0   :  { %vm40_vm0 = vcmask 130048   ;;  %vm138_vm1 = vcmask 519168   ;;  %s226_s1 = inlined_call_operand.vmem [shape: bf16[16,64], index: 1, kind: input, shape index: {}]   ;;  %s227_s0 = inlined_call_operand.vmem [shape: bf16[32,16], index: 0, kind: input, shape index: {}]   ;;  %s228_s2 = inlined_call_operand.vmem [shape: f32[1,64], index: 2, kind: input, shape index: {}]   ;;  %s229_s3 = inlined_call_operand.vmem [shape: f32[1,64], index: 3, kind: input, shape index: {}]   ;;  %s230_s4 = inlined_call_operand.vmem [shape: bf16[32,64], index: 4, kind: output, shape index: {}]  }
   0x1   :  { %v171_v0 = vld [vmem:[%s226_s1] sm:$0xff]   ;;  %v173_v2 = vld [vmem:[%s227_s0 + $0x8] sm:$0xff]  }
   0x2   :  { %v172_v1 = vld [vmem:[%s227_s0] sm:$0xff]   ;;  %165 = vmatprep.subr.bf16.mxu0 %v171_v0 }
   0x3   :  { %166 = vmatpush3.bf16.msra.mxu0 %v171_v0  ;;  %167 = vmatprep.mubr.msk.bf16.mxu0 %vm40_vm0, %v172_v1  ;;  %v152_v3 = vld [vmem:[%s228_s2] ss:$0 sm:$0xff] }
   0x4   :  { %v153_v5 = vld [vmem:[%s229_s3] ss:$0 sm:$0xff] }
   0x6   :  { %168 = vmatmul.mubr.msk.bf16.vlgmr.msra.gmra.mrb[0].mxu0 %vm40_vm0, %v173_v2 }
  0xd9   :  { %v169_v4 = vpop.f32.mrb[0].mxu0 }
  0xda   :  { %v105_v6 = vmul.f32 %v169_v4, %v152_v3  ;;  %v81_v7 = vpop.f32.mrb[1].mxu0 }
  0xdb   :  { %v103_v8 = vmul.f32 %v152_v3, %v81_v7  ;;  %v170_v9 = vpop.f32.mrb[2].mxu0 }
  0xdc   :  { %v116_v10 = vadd.f32 %v153_v5, %v105_v6  ;;  %v106_v11 = vmul.f32 %v170_v9, %v152_v3  ;;  %v84_v12 = vpop.f32.mrb[3].mxu0 }
  0xdd   :  { %v114_v13 = vadd.f32 %v153_v5, %v103_v8  ;;  %v104_v14 = vmul.f32 %v152_v3, %v84_v12 }
  0xde   :  { %v120_v15 = vmax.f32 %v116_v10, 0.0  ;;  %v117_v16 = vadd.f32 %v153_v5, %v106_v11 }
  0xdf   :  { %v118_v17 = vmax.f32 %v114_v13, 0.0  ;;  %v115_v18 = vadd.f32 %v153_v5, %v104_v14 }
  0xe0   :  { %v160_v19 = vpack.c.bf16 %v120_v15, %v120_v15  ;;  %v121_v20 = vmax.f32 %v117_v16, 0.0 }
  0xe1   :  { %v158_v21 = vpack.c.bf16 %v118_v17, %v118_v17  ;;  %v119_v22 = vmax.f32 %v115_v18, 0.0 }
  0xe2   :  { %141 = vst.msk [vmem:[%s230_s4 + $0x8] sm:$0xf] %vm138_vm1, %v160_v19  ;;  %v161_v23 = vpack.c.bf16 %v121_v20, %v121_v20 }
  0xe3   :  { %139 = vst.msk [vmem:[%s230_s4] sm:$0xf] %vm138_vm1, %v158_v21  ;;  %v159_v24 = vpack.c.bf16 %v119_v22, %v119_v22 }
  0xe4   :  { %142 = vst.msk [vmem:[%s230_s4 + $0xc] sm:$0xf] %vm138_vm1, %v161_v23 }
  0xe5   :  { %140 = vst.msk [vmem:[%s230_s4 + $0x4] sm:$0xf] %vm138_vm1, %v159_v24 }

// kernel: _lambda_.16
= control target key start
LH: loop header
LB: loop body
LE: loop exit
PB: predicated region body
PF: predicated region fallthrough
CT: control target
= control target key end

     0   :  { %v148_v0 = vmov 0.0   ;;  %vm149_vm0 = vmmov 0   ;;  %vm51_vm1 = vcmask 523264   ;;  %vm112_vm2 = vcmask 191488   ;;  %s199_s1 = inlined_call_operand.vmem [shape: bf16[64,24], index: 1, kind: input, shape index: {}]   ;;  %s200_s0 = inlined_call_operand.vmem [shape: bf16[8,64], index: 0, kind: input, shape index: {}]   ;;  %s201_s2 = inlined_call_operand.vmem [shape: f32[1,24], index: 2, kind: input, shape index: {}]   ;;  %s202_s3 = inlined_call_operand.vmem [shape: f32[1,24], index: 3, kind: input, shape index: {}]   ;;  %s203_s4 = inlined_call_operand.vmem [shape: bf16[8,24], index: 4, kind: output, shape index: {}]  }
   0x1   :  { %130 = vmatprep.subr.bf16.mxu0 %v148_v0  ;;  %v144_v1 = vld [vmem:[%s199_s1] sm:$0xff]   ;;  %138 = vmatprep.mubr.msk.bf16.mxu0 %vm149_vm0, %v148_v0  ;;  %v145_v2 = vld [vmem:[%s199_s1 + $0x8] sm:$0xff]   ;;  %v146_v3 = vld [vmem:[%s199_s1 + $0x10] sm:$0xff]  }
   0x2   :  { %131 = vmatpush3.bf16.msra.mxu0 %v144_v1  ;;  %v147_v4 = vld [vmem:[%s199_s1 + $0x18] sm:$0xff]   ;;  %v18_v5 = vld [vmem:[%s200_s0] sm:$0xf] }
   0x3   :  { %132 = vmatprep.subr.bf16.mxu0 %v148_v0  ;;  %v123_v6 = vld [vmem:[%s201_s2] ss:$0 sm:$0xff] }
   0x4   :  { %v124_v8 = vld [vmem:[%s202_s3] ss:$0 sm:$0xff] }
   0x6   :  { %133 = vmatpush3.bf16.msra.mxu0 %v145_v2 }
   0x7   :  { %134 = vmatprep.subr.bf16.mxu0 %v148_v0 }
   0xa   :  { %135 = vmatpush3.bf16.msra.mxu0 %v146_v3 }
   0xb   :  { %136 = vmatprep.subr.bf16.mxu0 %v148_v0 }
   0xe   :  { %137 = vmatpush3.bf16.msra.mxu0 %v147_v4 }
  0x11   :  { %139 = vmatmul.mubr.msk.bf16.vlgmr.msra.gmra.mrb[0].mxu0 %vm51_vm1, %v18_v5 }
  0xe4   :  { %v89_v7 = vpop.f32.mrb[0].mxu0 }
  0xe5   :  { %v102_v9 = vmul.f32 %v123_v6, %v89_v7  ;;  %v140_v10 = vpop.f32.mrb[1].mxu0 }
  0xe6   :  { %v92_v11 = vpop.f32.mrb[2].mxu0 }
  0xe7   :  { %v110_v12 = vadd.f32 %v124_v8, %v102_v9  ;;  %v141_v13 = vpop.f32.mrb[3].mxu0 }
  0xe9   :  { %v111_v14 = vpack.c.bf16 %v110_v12, %v110_v12 }
  0xeb   :  { %113 = vst.msk [vmem:[%s203_s4] sm:$0xf] %vm112_vm2, %v111_v14 }

// kernel: _lambda_.17
= control target key start
LH: loop header
LB: loop body
LE: loop exit
PB: predicated region body
PF: predicated region fallthrough
CT: control target
= control target key end

     0   :  { %v127_v0 = vmov 0.0   ;;  %vm35_vm0 = vcmask 1043456   ;;  %vm128_vm1 = vmmov 0   ;;  %vm31_vm2 = vcmask 195584   ;;  %s172_s1 = inlined_call_operand.vmem [shape: bf16[24,96], index: 1, kind: input, shape index: {}]   ;;  %s173_s0 = inlined_call_operand.vmem [shape: bf16[8,24], index: 0, kind: input, shape index: {}]   ;;  %s174_s2 = inlined_call_operand.vmem [shape: f32[1,96], index: 2, kind: input, shape index: {}]   ;;  %s175_s3 = inlined_call_operand.vmem [shape: f32[1,96], index: 3, kind: input, shape index: {}]   ;;  %s176_s4 = inlined_call_operand.vmem [shape: bf16[8,96], index: 4, kind: output, shape index: {}]  }
   0x1   :  { %115 = vmatprep.subr.bf16.mxu0 %v127_v0  ;;  %v125_v1 = vld [vmem:[%s172_s1] sm:$0xff]   ;;  %119 = vmatprep.mubr.msk.bf16.mxu0 %vm128_vm1, %v127_v0  ;;  %v126_v2 = vld [vmem:[%s172_s1 + $0x8] ss:$0 sps:$4 sm:$0xff]   ;;  %vm101_vm3 = vcmask 781312  }
   0x2   :  { %116 = vmatpush3.bf16.msra.mxu0 %v125_v1  ;;  %v37_v3 = vsel %vm35_vm0, %v126_v2, 0  ;;  %v18_v4 = vld [vmem:[%s173_s0] sm:$0xf] }
   0x3   :  { %117 = vmatprep.subr.bf16.mxu0 %v127_v0  ;;  %v110_v5 = vld [vmem:[%s174_s2] ss:$0 sm:$0xff] }
   0x4   :  { %v111_v7 = vld [vmem:[%s175_s3] ss:$0 sm:$0xff] }
   0x6   :  { %118 = vmatpush3.bf16.msra.mxu0 %v37_v3 }
   0x9   :  { %120 = vmatmul.mubr.msk.bf16.vlgmr.msra.gmra.mrb[0].mxu0 %vm31_vm2, %v18_v4 }
  0xdc   :  { %v73_v6 = vpop.f32.mrb[0].mxu0 }
  0xdd   :  { %v86_v8 = vmul.f32 %v110_v5, %v73_v6  ;;  %v121_v9 = vpop.f32.mrb[1].mxu0 }
  0xde   :  { %v76_v10 = vpop.f32.mrb[2].mxu0 }
  0xdf   :  { %v94_v11 = vadd.f32 %v111_v7, %v86_v8  ;;  %v122_v12 = vpop.f32.mrb[3].mxu0 }
  0xe1   :  { %v95_v13 = vadd.f32 3.0, %v94_v11 }
  0xe3   :  { %v96_v14 = vmax.f32 %v95_v13, 0.0 }
  0xe5   :  { %v97_v15 = vmin.f32 %v96_v14, 6.0 }
  0xe7   :  { %v98_v16 = vmul.f32 0.16666667, %v97_v15 }
  0xe9   :  { %v99_v17 = vmul.f32 %v98_v16, %v94_v11 }
  0xeb   :  { %v100_v18 = vpack.c.bf16 %v99_v17, %v99_v17 }
  0xed   :  { %102 = vst.msk [vmem:[%s176_s4] sm:$0xf] %vm101_vm3, %v100_v18 }

// kernel: _lambda_.15
= control target key start
LH: loop header
LB: loop body
LE: loop exit
PB: predicated region body
PF: predicated region fallthrough
CT: control target
= control target key end

     0   :  { %11 = vsyncpa [#allocation3], 0  ;;  %s985_s0 = inlined_call_operand.vmem [shape: bf16[2,4,3,3,64], index: 0, kind: input, shape index: {}]   ;;  %s986_s1 = inlined_call_operand.vmem [shape: f32[9,1,64], index: 1, kind: input, shape index: {}]   ;;  %s987_s2 = inlined_call_operand.vmem [shape: f32[1,64], index: 2, kind: input, shape index: {}]   ;;  %s988_s3 = inlined_call_operand.vmem [shape: f32[1,64], index: 3, kind: input, shape index: {}]   ;;  %s989_s4 = inlined_call_operand.vmem [shape: bf16[2,2,2,64], index: 4, kind: output, shape index: {0}]   ;;  %s990_s5 = inlined_call_operand.hbm [shape: f32[2,1,64], index: 5, kind: output, shape index: {1}]  }
   0x1   :  { %13 = vsyncpa [#allocation3 + $0x1], 0  ;;  %s816_s18 = smov 0   ;;  %s818_s19 = smov 0  }
   0x2   :  { %s820_s20 = smov 0   ;;  %s822_s21 = smov 0  }
   0x3   :  { %s824_s22 = smov 0   ;;  %s826_s23 = smov 0  }
   0x4 LB: > { %s612_s24 = sadd.s32 4294967295, %s783_s23   ;;  %s613_s25 = sadd.s32 4294967294, %s783_s23   ;;  %s783_s23 = sphi %s826_s23, %s19_s23   ;;  %s779_s22 = sphi %s824_s22, %s997_s22   ;;  %s775_s21 = sphi %s822_s21, %s996_s21   ;;  %s771_s20 = sphi %s820_s20, %s995_s20   ;;  %s767_s19 = sphi %s818_s19, %s994_s19   ;;  %s763_s18 = sphi %s816_s18, %s993_s18  }
   0x5   : > { %s31_s26 = sadd.s32 1, %s779_s22  ;;  %s155_s27 = sadd.s32 1, %s771_s20 }
   0x6   : > { %p33_p0 = scmp.ge.s32.totalorder %s31_s26, 2  ;;  %p165_p1 = scmp.ne.s32.totalorder %s771_s20, %s767_s19 }
   0x7   : > { %p166_p2 = scmp.eq.s32.totalorder %s612_s24, 1  ;;  %p171_p3 = scmp.ne.s32.totalorder %s767_s19, %s763_s18 }
   0x8   : > { %s999_s26 = smov (%p33_p0, %s31_s26), 0  ;;  %p172_p5 = scmp.eq.s32.totalorder %s613_s25, 1 }
   0x9   : > { %p856_p4 = por %p166_p2, %p165_p1  ;;  %s152_s29 = ssub.s32 %s779_s22, %s999_s26 }
   0xa   : > { %p616_p6 = scmp.ge.s32.totalorder %s783_s23, 1  ;;  %p153_p7 = scmp.eq.s32.totalorder %s152_s29, 0 }
   0xb   : > { %p863_p8 = por %p172_p5, %p171_p3  ;;  %p207_p9 = scmp.lt.s32.totalorder %s783_s23, 3 }
   0xc   : > { %s869_s6 = scalar_select %p153_p7, %s771_s20, %s155_s27  }
   0xd   : > { %p208_p10 = pnand %p616_p6, %p207_p9 }
   0xe   : > { %p242_p11 = scmp.lt.s32.totalorder (!%p208_p10), %s775_s21, 1  ;;  %v619_v0 = vld [vmem:[%s986_s1] ss:$0 sm:$0xff] (!%p208_p10)  ;;  %v625_v1 = vld [vmem:[%s986_s1 + $0x1] ss:$0 sm:$0xff] (!%p208_p10)  ;;  %vm446_vm0 = vcmask (!%p208_p10), 517120  }
   0xf   : > { %211 = sbr.rel (%p208_p10) target bundleno = 88 (0x58), region = 36  ;;  %v620_v2 = vld [vmem:[%s986_s1 + $0x2] ss:$0 sm:$0xff] (!%p208_p10)  ;;  %v629_v12 = vld [vmem:[%s986_s1 + $0x5] ss:$0 sm:$0xff] (!%p208_p10)  ;;  %vm443_vm1 = vcmask (!%p208_p10), 516096  }
  0x10   : > { %v628_v16 = vld [vmem:[%s986_s1 + $0x3] ss:$0 sm:$0xff] (!%p208_p10)  ;;  %v634_v35 = vld [vmem:[%s986_s1 + $0x4] ss:$0 sm:$0xff] (!%p208_p10)  ;;  %v638_v40 = vld [vmem:[%s986_s1 + $0x8] ss:$0 sm:$0xff] (!%p208_p10) }
  0x11   : > { %v637_v41 = vld [vmem:[%s986_s1 + $0x6] ss:$0 sm:$0xff] (!%p208_p10)  ;;  %v643_v60 = vld [vmem:[%s986_s1 + $0x7] ss:$0 sm:$0xff] (!%p208_p10)  ;;  %s646_s13 = sshll.u32 (!%p208_p10), %s775_s21, 4 }
  0x12   : > { %s939_s16 = scalar_lea.hbm (!%p208_p10), %s990_s5, %s646_s13 }
  0x16   : > { %s873_s7 = scalar_select %p242_p11, %s775_s21, 1 }
  0x17   : > { %s785_s21 = smov [#allocation2]  }
  0x18   : > { %s649_s8 = smul.u32 24, %s873_s7  ;;  %s618_s27 = sshll.u32 %s873_s7, 1 }
  0x19   : > { %s254_s9 = scalar_lea.vmem %s989_s4, %s618_s27  ;;  %s240_s7 = sand.u32 1, %s767_s19  }
  0x1a   : > { %s879_s11 = scalar_lea.vmem %s985_s0, %s649_s8  ;;  %s241_s10 = scalar_lea.vmem [#allocation2], %s240_s7 }
  0x1b   : > { %v268_v3 = vld [vmem:[%s879_s11] sm:$0x3]  ;;  %v269_v4 = vld [vmem:[%s879_s11 + $0x2] sm:$0x3]  ;;  %v623_v5 = vld [vmem:[%s879_s11 + $0x6] sm:$0x3] }
  0x1c   : > { %v270_v6 = vunpack.c.l.bf16 %v268_v3  ;;  %v271_v7 = vunpack.c.l.bf16 %v269_v4  ;;  %v624_v8 = vld [vmem:[%s879_s11 + $0x8] sm:$0x3]  ;;  %v305_v9 = vunpack.c.l.bf16 %v623_v5  ;;  %v626_v10 = vld [vmem:[%s879_s11 + $0xc] sm:$0x3]  ;;  %v627_v11 = vld [vmem:[%s879_s11 + $0xe] sm:$0x3] }
  0x1d   : > { %v306_v13 = vunpack.c.l.bf16 %v624_v8  ;;  %v322_v14 = vunpack.c.l.bf16 %v626_v10  ;;  %v323_v15 = vunpack.c.l.bf16 %v627_v11  ;;  %v632_v21 = vld [vmem:[%s879_s11 + $0x12] sm:$0x3]  ;;  %v633_v22 = vld [vmem:[%s879_s11 + $0x14] sm:$0x3]  ;;  %v635_v25 = vld [vmem:[%s879_s11 + $0x2] sm:$0x3] }
  0x1e   : > { %v278_v17 = vmul.f32 %v619_v0, %v270_v6  ;;  %v279_v18 = vmul.f32 %v619_v0, %v271_v7  ;;  %v288_v19 = vmul.f32 %v620_v2, %v270_v6  ;;  %v289_v20 = vmul.f32 %v620_v2, %v271_v7  ;;  %v636_v26 = vld [vmem:[%s879_s11 + $0x4] sm:$0x3]  ;;  %v641_v48 = vld [vmem:[%s879_s11 + $0x8] sm:$0x3]  ;;  %v642_v49 = vld [vmem:[%s879_s11 + $0xa] sm:$0x3] }
  0x1f   : > { %v313_v23 = vmul.f32 %v625_v1, %v305_v9  ;;  %v314_v24 = vmul.f32 %v625_v1, %v306_v13  ;;  %v340_v29 = vmul.f32 %v629_v12, %v322_v14  ;;  %v341_v30 = vmul.f32 %v629_v12, %v323_v15  ;;  %v644_v7 = vld [vmem:[%s987_s2] ss:$0 sm:$0xff]  ;;  %s495_s12 = sshll.u32 %s241_s10, 4  ;;  %s479_s11 = scalar_lea.sflag [#allocation3], %s240_s7  ;;  %s934_s12 = int_to_ptr.vmem [resolvable:$true] %s495_s12 }
  0x20   : > { %v621_v27 = vrot.slane %v288_v19, 9  ;;  %v622_v28 = vrot.slane %v289_v20, 9  ;;  %v330_v31 = vmul.f32 %v628_v16, %v322_v14  ;;  %v331_v32 = vmul.f32 %v628_v16, %v323_v15  ;;  %v645_v10 = vld [vmem:[%s988_s3] ss:$0 sm:$0xff]  ;;  %s705_s17 = scalar_lea.vmem %s934_s12, 16  ;;  %s709_s24 = sshll.u32 %s785_s21, 4  ;;  %s710_s24 = int_to_ptr.vmem [resolvable:$false] %s709_s24 }
  0x21   : > { %v357_v33 = vunpack.c.l.bf16 %v632_v21  ;;  %v358_v34 = vunpack.c.l.bf16 %v633_v22  ;;  %v374_v38 = vunpack.c.l.bf16 %v635_v25  ;;  %v375_v39 = vunpack.c.l.bf16 %v636_v26  ;;  %p706_p12 = scmp.ne.s32.totalorder %s934_s12, %s705_s17  ;;  %s711_s25 = scalar_lea.vmem %s710_s24, 32 }
  0x22   : > { %v298_v36 = vadd.f32 %v621_v27, %v278_v17  ;;  %v299_v37 = vadd.f32 %v622_v28, %v279_v18  ;;  %v630_v44 = vrot.slane %v340_v29, 9  ;;  %v631_v45 = vrot.slane %v341_v30, 9  ;;  %p712_p1 = scmp.lt.s32.totalorder %s934_s12, %s710_s24  ;;  %p713_p2 = scmp.lt.s32.totalorder %s711_s25, %s705_s17 }
  0x23   : > { %v365_v46 = vmul.f32 %v634_v35, %v357_v33  ;;  %v366_v47 = vmul.f32 %v634_v35, %v358_v34  ;;  %v392_v52 = vmul.f32 %v638_v40, %v374_v38  ;;  %v393_v53 = vmul.f32 %v638_v40, %v375_v39  ;;  %p707_p13 = pnand %p706_p12, %p856_p4 }
  0x24   : > { %v315_v42 = vadd.f32 %v313_v23, %v298_v36  ;;  %v316_v43 = vadd.f32 %v314_v24, %v299_v37  ;;  %v382_v54 = vmul.f32 %v637_v41, %v374_v38  ;;  %v383_v55 = vmul.f32 %v637_v41, %v375_v39  ;;  %p714_p3 = por %p713_p2, %p712_p1 }
  0x25   : > { %v409_v58 = vunpack.c.l.bf16 %v641_v48  ;;  %v410_v59 = vunpack.c.l.bf16 %v642_v49  ;;  %v639_v63 = vrot.slane %v392_v52, 9  ;;  %v640_v0 = vrot.slane %v393_v53, 9  ;;  %p708_p0 = pneg %p707_p13 }
  0x26   : > { %v332_v50 = vadd.f32 %v330_v31, %v315_v42  ;;  %v333_v51 = vadd.f32 %v331_v32, %v316_v43 }
  0x27   : > { %v417_v3 = vmul.f32 %v643_v60, %v409_v58  ;;  %v418_v4 = vmul.f32 %v643_v60, %v410_v59  ;;  %p715_p5 = pnand %p714_p3, %p708_p0 }
  0x28   : > { %v350_v56 = vadd.f32 %v630_v44, %v332_v50  ;;  %v351_v57 = vadd.f32 %v631_v45, %v333_v51 }
  0x2a   : > { %v367_v61 = vadd.f32 %v365_v46, %v350_v56  ;;  %v368_v62 = vadd.f32 %v366_v47, %v351_v57 }
  0x2c   : > { %v384_v1 = vadd.f32 %v382_v54, %v367_v61  ;;  %v385_v2 = vadd.f32 %v383_v55, %v368_v62 }
  0x2e   : > { %v402_v5 = vadd.f32 %v639_v63, %v384_v1  ;;  %v403_v6 = vadd.f32 %v640_v0, %v385_v2 }
  0x30   : > { %v419_v8 = vadd.f32 %v417_v3, %v402_v5  ;;  %v420_v9 = vadd.f32 %v418_v4, %v403_v6 }
  0x32   : > { %v428_v11 = vmul.f32 %v644_v7, %v419_v8  ;;  %v429_v12 = vmul.f32 %v644_v7, %v420_v9 }
  0x34   : > { %v437_v13 = vadd.f32 %v645_v10, %v428_v11  ;;  %v438_v14 = vadd.f32 %v645_v10, %v429_v12 }
  0x36   : > { %v439_v15 = vmax.f32 %v437_v13, 0.0  ;;  %v440_v16 = vmax.f32 %v438_v14, 0.0 }
  0x38   : > { %v447_v17 = vsel %vm446_vm0, %v439_v15, 0.0  ;;  %v448_v18 = vsel %vm446_vm0, %v440_v16, 0.0  ;;  %v441_v19 = vpack.c.bf16 %v439_v15, %v439_v15  ;;  %v442_v20 = vpack.c.bf16 %v440_v16, %v440_v16 }
  0x39   : > { %v449_v21 = vadd.f32 %v448_v18, %v447_v17 }
  0x3a   : > { %444 = vst.msk [vmem:[%s254_s9] sm:$0x1] %vm443_vm1, %v441_v19  ;;  %445 = vst.msk [vmem:[%s254_s9 + $0x1] sm:$0x1] %vm443_vm1, %v442_v20 }
  0x3b   : > { %v450_v22 = vsel %vm446_vm0, %v449_v21, 0.0 }
  0x3c   : > { %v451_v23 = vrot.slane %v450_v22, 4 }
  0x3e   : > { %v452_v24 = vadd.f32 %v451_v23, %v450_v22 }
  0x40   : > { %v453_v25 = vrot.slane %v452_v24, 2 }
  0x42   : > { %v454_v26 = vadd.f32 %v453_v25, %v452_v24 }
  0x44   : > { %v455_v27 = vrot.slane %v454_v26, 1 }
  0x46   : > { %v456_v28 = vadd.f32 %v455_v27, %v454_v26 }
  0x48   : > { %v457_v29 = vmul.f32 0.25, %v456_v28 }
  0x4a   : > { %462 = vst.msk [vmem:[%s241_s10] sm:$0x1] %vm443_vm1, %v457_v29 }
  0x4b   : > { %718 = shalt.err (!%p715_p5)
}
  0x4c   : > { %s719_s27 = scalar_lea.hbm %s939_s16, 16  ;;  %s723_s9 = scalar_lea.hbm %s990_s5, 32 }
  0x4d   : > { %p720_p6 = scmp.ne.s32.totalorder %s939_s16, %s719_s27  ;;  %p724_p10 = scmp.lt.u32.totalorder %s939_s16, %s990_s5 }
  0x4e   : > { %p725_p11 = scmp.lt.u32.totalorder %s723_s9, %s719_s27  ;;  %p727_p13 = scmp.lt.u32.totalorder %s719_s27, %s939_s16 }
  0x4f   : > { %p721_p7 = pnand %p720_p6, %p856_p4 }
  0x50   : > { %p726_p12 = por %p725_p11, %p724_p10 }
  0x51   : > { %p722_p9 = pneg %p721_p7 }
  0x52   : > { %p728_p0 = por %p727_p13, %p726_p12 }
  0x54   : > { %p729_p1 = pnand %p728_p0, %p722_p9 }
  0x56   : > { %732 = shalt.err (!%p729_p1)
}
  0x57   : > { %650 = dma.vmem_to_hbm [thread:$0]  (%p856_p4), %s934_s12, 16, %s939_s16, %s479_s11  }
  0x58 PF: > { %p656_p2 = scmp.ge.s32.totalorder %s783_s23, 2  ;;  %s518_s13 = sand.u32 1, %s763_s18  }
  0x59   : > { %s519_s14 = scalar_lea.sflag [#allocation3], %s518_s13 }
  0x5a   : > { %p653_p3 = pnand %p656_p2, %p863_p8 }
  0x5c   : > { %758 = dma.done.wait (!%p653_p3), %s519_s14, 16  }
  0x5d   : > { %760 = vsyncadd (!%p653_p3), %s519_s14, 4294967280  ;;  %s19_s23 = sadd.s32 1, %s783_s23   ;;  %s993_s18 = smov %s767_s19 }
  0x5e   : > { %p16_p5 = scmp.ge.s32.totalorder %s19_s23, 4   ;;  %s994_s19 = smov %s771_s20 }
  0x5f   : > { %s995_s20 = smov %s869_s6  ;;  %s996_s21 = smov %s779_s22 }
  0x60   : > { %s997_s22 = smov %s999_s26  ;;  %18 = sbr.rel (!%p16_p5) target bundleno = 4 (0x4), region = 97 }
  0x67   :  { %523 = vsyncpa [#allocation3], 1 }
  0x68   :  { %525 = vsyncpa [#allocation3 + $0x1], 1 }

// kernel: _lambda_.18
= control target key start
LH: loop header
LB: loop body
LE: loop exit
PB: predicated region body
PF: predicated region fallthrough
CT: control target
= control target key end

     0   :  { %s973_s18 = smov 0   ;;  %s975_s19 = smov 0   ;;  %s1110_s0 = inlined_call_operand.vmem [shape: bf16[2,1,6,6,96], index: 0, kind: input, shape index: {}]   ;;  %s1111_s1 = inlined_call_operand.vmem [shape: f32[25,1,96], index: 1, kind: input, shape index: {}]   ;;  %s1112_s2 = inlined_call_operand.vmem [shape: f32[1,96], index: 2, kind: input, shape index: {}]   ;;  %s1113_s3 = inlined_call_operand.vmem [shape: f32[1,96], index: 3, kind: input, shape index: {}]   ;;  %s1114_s4 = inlined_call_operand.vmem [shape: bf16[2,2,2,96], index: 4, kind: output, shape index: {0}]   ;;  %s1115_s5 = inlined_call_operand.vmem [shape: f32[2,1,96], index: 5, kind: output, shape index: {1}]  }
   0x1   :  { %s977_s20 = smov 0  }
   0x2 LB: > { %s28_s21 = sadd.s32 1, %s937_s19  ;;  %p854_p0 = scmp.ge.s32.totalorder %s941_s20, 1  ;;  %s941_s20 = sphi %s977_s20, %s16_s20   ;;  %s937_s19 = sphi %s975_s19, %s1117_s19   ;;  %s933_s18 = sphi %s973_s18, %s1116_s18  }
   0x3   : > { %p30_p1 = scmp.ge.s32.totalorder %s28_s21, 2  ;;  %p204_p2 = scmp.lt.s32.totalorder %s941_s20, 3 }
   0x5   : > { %s1119_s21 = smov (%p30_p1, %s28_s21), 0  ;;  %p205_p3 = pnand %p854_p0, %p204_p2 }
   0x6   : > { %p238_p4 = scmp.lt.s32.totalorder (!%p205_p3), %s933_s18, 1  ;;  %v857_v0 = vld [vmem:[%s1111_s1] ss:$0 sm:$0xff] (!%p205_p3)  ;;  %v858_v1 = vld [vmem:[%s1111_s1 + $0x1] ss:$0 sm:$0xff] (!%p205_p3)  ;;  %vm708_vm0 = vcmask (!%p205_p3), 779264  }
   0x7   : > { %208 = sbr.rel (%p205_p3) target bundleno = 96 (0x60), region = 36  ;;  %v859_v2 = vld [vmem:[%s1111_s1 + $0x2] ss:$0 sm:$0xff] (!%p205_p3)  ;;  %v860_v5 = vld [vmem:[%s1111_s1 + $0x3] ss:$0 sm:$0xff] (!%p205_p3)  ;;  %vm705_vm1 = vcmask (!%p205_p3), 778240  }
   0x8   : > { %v861_v10 = vld [vmem:[%s1111_s1 + $0x4] ss:$0 sm:$0xff] (!%p205_p3)  ;;  %v865_v21 = vld [vmem:[%s1111_s1 + $0x6] ss:$0 sm:$0xff] (!%p205_p3)  ;;  %v866_v28 = vld [vmem:[%s1111_s1 + $0x7] ss:$0 sm:$0xff] (!%p205_p3) }
   0x9   : > { %v864_v33 = vld [vmem:[%s1111_s1 + $0x5] ss:$0 sm:$0xff] (!%p205_p3)  ;;  %v867_v40 = vld [vmem:[%s1111_s1 + $0x8] ss:$0 sm:$0xff] (!%p205_p3)  ;;  %v868_v43 = vld [vmem:[%s1111_s1 + $0x9] ss:$0 sm:$0xff] (!%p205_p3) }
   0xa   : > { %v872_v60 = vld [vmem:[%s1111_s1 + $0xb] ss:$0 sm:$0xff] (!%p205_p3) }
   0xe   : > { %s1121_s18 = smov (!%p238_p4, %s933_s18), 1 }
   0xf   : > { %s894_s22 = smul.u32 24, %s1121_s18  ;;  %s856_s14 = sshll.u32 %s1121_s18, 1 }
  0x10   : > { %s250_s17 = scalar_lea.vmem %s1114_s4, %s856_s14  ;;  %s254_s24 = scalar_lea.vmem %s1115_s5, %s1121_s18 }
  0x11   : > { %s997_s25 = scalar_lea.vmem %s1110_s0, %s894_s22 }
  0x12   : > { %v283_v3 = vld [vmem:[%s997_s25] sm:$0x7]  ;;  %v284_v4 = vld [vmem:[%s997_s25 + $0x4] sm:$0x7]  ;;  %v863_v9 = vld [vmem:[%s997_s25 + $0x8] sm:$0x7] }
  0x13   : > { %v285_v6 = vunpack.c.l.bf16 %v283_v3  ;;  %v286_v7 = vunpack.c.l.bf16 %v284_v4  ;;  %v862_v8 = vld [vmem:[%s997_s25 + $0x4] sm:$0x7]  ;;  %v367_v12 = vunpack.c.l.bf16 %v863_v9  ;;  %v869_v48 = vld [vmem:[%s997_s25 + $0x8] sm:$0x7]  ;;  %v870_v51 = vld [vmem:[%s997_s25 + $0xc] sm:$0x7] }
  0x14   : > { %v366_v11 = vunpack.c.l.bf16 %v862_v8  ;;  %v447_v59 = vunpack.c.l.bf16 %v869_v48  ;;  %v874_v9 = vld [vmem:[%s1111_s1 + $0xd] ss:$0 sm:$0xff] }
  0x15   : > { %v293_v13 = vmul.f32 %v857_v0, %v285_v6  ;;  %v294_v14 = vmul.f32 %v857_v0, %v286_v7  ;;  %v303_v15 = vmul.f32 %v858_v1, %v285_v6  ;;  %v304_v16 = vmul.f32 %v858_v1, %v286_v7  ;;  %v873_v1 = vld [vmem:[%s1111_s1 + $0xc] ss:$0 sm:$0xff] }
  0x16   : > { %v319_v17 = vmul.f32 %v859_v2, %v285_v6  ;;  %v320_v18 = vmul.f32 %v859_v2, %v286_v7  ;;  %v335_v19 = vmul.f32 %v860_v5, %v285_v6  ;;  %v336_v20 = vmul.f32 %v860_v5, %v286_v7 }
  0x17   : > { %v307_v22 = vrot.slane %v303_v15, 1  ;;  %v308_v23 = vrot.slane %v304_v16, 1  ;;  %v351_v24 = vmul.f32 %v861_v10, %v285_v6  ;;  %v352_v25 = vmul.f32 %v861_v10, %v286_v7  ;;  %v871_v6 = vld [vmem:[%s1111_s1 + $0xa] ss:$0 sm:$0xff]  ;;  %v875_v16 = vld [vmem:[%s1111_s1 + $0xe] ss:$0 sm:$0xff] }
  0x18   : > { %v323_v26 = vrot.slane %v319_v17, 2  ;;  %v324_v27 = vrot.slane %v320_v18, 2  ;;  %v339_v31 = vrot.slane %v335_v19, 3  ;;  %v340_v32 = vrot.slane %v336_v20, 3 }
  0x19   : > { %v311_v29 = vadd.f32 %v307_v22, %v293_v13  ;;  %v312_v30 = vadd.f32 %v308_v23, %v294_v14  ;;  %v384_v34 = vmul.f32 %v865_v21, %v366_v11  ;;  %v385_v35 = vmul.f32 %v865_v21, %v367_v12  ;;  %v876_v21 = vld [vmem:[%s997_s25 + $0xc] sm:$0x7] }
  0x1a   : > { %v355_v38 = vrot.slane %v351_v24, 4  ;;  %v356_v39 = vrot.slane %v352_v25, 4  ;;  %v400_v41 = vmul.f32 %v866_v28, %v366_v11  ;;  %v401_v42 = vmul.f32 %v866_v28, %v367_v12  ;;  %v877_v24 = vld [vmem:[%s997_s25 + $0x10] sm:$0x7] }
  0x1b   : > { %v327_v36 = vadd.f32 %v323_v26, %v311_v29  ;;  %v328_v37 = vadd.f32 %v324_v27, %v312_v30  ;;  %v374_v46 = vmul.f32 %v864_v33, %v366_v11  ;;  %v375_v47 = vmul.f32 %v864_v33, %v367_v12  ;;  %v879_v33 = vld [vmem:[%s1111_s1 + $0x10] ss:$0 sm:$0xff] }
  0x1c   : > { %v388_v49 = vrot.slane %v384_v34, 1  ;;  %v389_v50 = vrot.slane %v385_v35, 1  ;;  %v416_v54 = vmul.f32 %v867_v40, %v366_v11  ;;  %v417_v55 = vmul.f32 %v867_v40, %v367_v12 }
  0x1d   : > { %v343_v44 = vadd.f32 %v339_v31, %v327_v36  ;;  %v344_v45 = vadd.f32 %v340_v32, %v328_v37  ;;  %v404_v56 = vrot.slane %v400_v41, 2  ;;  %v405_v57 = vrot.slane %v401_v42, 2 }
  0x1e   : > { %v432_v58 = vmul.f32 %v868_v43, %v366_v11  ;;  %v433_v63 = vmul.f32 %v868_v43, %v367_v12  ;;  %v448_v0 = vunpack.c.l.bf16 %v870_v51  ;;  %v420_v4 = vrot.slane %v416_v54, 3  ;;  %v878_v43 = vld [vmem:[%s1111_s1 + $0xf] ss:$0 sm:$0xff] }
  0x1f   : > { %v359_v52 = vadd.f32 %v355_v38, %v343_v44  ;;  %v360_v53 = vadd.f32 %v356_v39, %v344_v45  ;;  %v421_v5 = vrot.slane %v417_v55, 3  ;;  %v465_v8 = vmul.f32 %v872_v60, %v447_v59  ;;  %v880_v38 = vld [vmem:[%s1111_s1 + $0x11] ss:$0 sm:$0xff] }
  0x20   : > { %v436_v7 = vrot.slane %v432_v58, 4  ;;  %v437_v12 = vrot.slane %v433_v63, 4  ;;  %v466_v13 = vmul.f32 %v872_v60, %v448_v0  ;;  %v481_v14 = vmul.f32 %v873_v1, %v447_v59  ;;  %v884_v58 = vld [vmem:[%s997_s25 + $0x14] sm:$0x7] }
  0x21   : > { %v376_v61 = vadd.f32 %v374_v46, %v359_v52  ;;  %v377_v62 = vadd.f32 %v375_v47, %v360_v53  ;;  %v482_v15 = vmul.f32 %v873_v1, %v448_v0  ;;  %v455_v19 = vmul.f32 %v871_v6, %v447_v59  ;;  %v881_v46 = vld [vmem:[%s1111_s1 + $0x12] ss:$0 sm:$0xff] }
  0x22   : > { %v456_v20 = vmul.f32 %v871_v6, %v448_v0  ;;  %v469_v22 = vrot.slane %v465_v8, 1  ;;  %v497_v23 = vmul.f32 %v874_v9, %v447_v59  ;;  %v470_v27 = vrot.slane %v466_v13, 1  ;;  %v886_v6 = vld [vmem:[%s1111_s1 + $0x15] ss:$0 sm:$0xff] }
  0x23   : > { %v392_v2 = vadd.f32 %v388_v49, %v376_v61  ;;  %v393_v3 = vadd.f32 %v389_v50, %v377_v62  ;;  %v498_v28 = vmul.f32 %v874_v9, %v448_v0  ;;  %v485_v29 = vrot.slane %v481_v14, 2 }
  0x24   : > { %v486_v30 = vrot.slane %v482_v15, 2  ;;  %v513_v31 = vmul.f32 %v875_v16, %v447_v59  ;;  %v528_v32 = vunpack.c.l.bf16 %v876_v21  ;;  %v514_v36 = vmul.f32 %v875_v16, %v448_v0  ;;  %v882_v59 = vld [vmem:[%s1111_s1 + $0x13] ss:$0 sm:$0xff]  ;;  %v885_v16 = vld [vmem:[%s1111_s1 + $0x14] ss:$0 sm:$0xff] }
  0x25   : > { %v408_v10 = vadd.f32 %v404_v56, %v392_v2  ;;  %v409_v11 = vadd.f32 %v405_v57, %v393_v3  ;;  %v529_v37 = vunpack.c.l.bf16 %v877_v24  ;;  %v501_v41 = vrot.slane %v497_v23, 3  ;;  %v883_v57 = vld [vmem:[%s997_s25 + $0x10] sm:$0x7]  ;;  %v888_v23 = vld [vmem:[%s1111_s1 + $0x17] ss:$0 sm:$0xff] }
  0x26   : > { %v502_v42 = vrot.slane %v498_v28, 3  ;;  %v517_v44 = vrot.slane %v513_v31, 4  ;;  %v546_v45 = vmul.f32 %v879_v33, %v528_v32  ;;  %v518_v49 = vrot.slane %v514_v36, 4 }
  0x27   : > { %v424_v17 = vadd.f32 %v420_v4, %v408_v10  ;;  %v425_v18 = vadd.f32 %v421_v5, %v409_v11  ;;  %v547_v50 = vmul.f32 %v879_v33, %v529_v37  ;;  %v562_v51 = vmul.f32 %v880_v38, %v528_v32  ;;  %v887_v11 = vld [vmem:[%s1111_s1 + $0x16] ss:$0 sm:$0xff] }
  0x28   : > { %v563_v52 = vmul.f32 %v880_v38, %v529_v37  ;;  %v536_v55 = vmul.f32 %v878_v43, %v528_v32  ;;  %v537_v56 = vmul.f32 %v878_v43, %v529_v37  ;;  %v550_v60 = vrot.slane %v546_v45, 1 }
  0x29   : > { %v440_v25 = vadd.f32 %v436_v7, %v424_v17  ;;  %v441_v26 = vadd.f32 %v437_v12, %v425_v18  ;;  %v578_v61 = vmul.f32 %v881_v46, %v528_v32  ;;  %v551_v0 = vrot.slane %v547_v50, 1 }
  0x2a   : > { %v579_v1 = vmul.f32 %v881_v46, %v529_v37  ;;  %v566_v2 = vrot.slane %v562_v51, 2  ;;  %v567_v3 = vrot.slane %v563_v52, 2  ;;  %v609_v4 = vunpack.c.l.bf16 %v883_v57 }
  0x2b   : > { %v457_v34 = vadd.f32 %v455_v19, %v440_v25  ;;  %v458_v35 = vadd.f32 %v456_v20, %v441_v26  ;;  %v610_v5 = vunpack.c.l.bf16 %v884_v58  ;;  %v594_v9 = vmul.f32 %v882_v59, %v528_v32 }
  0x2c   : > { %v595_v10 = vmul.f32 %v882_v59, %v529_v37  ;;  %v582_v14 = vrot.slane %v578_v61, 3  ;;  %v583_v15 = vrot.slane %v579_v1, 3  ;;  %v627_v17 = vmul.f32 %v886_v6, %v609_v4 }
  0x2d   : > { %v473_v39 = vadd.f32 %v469_v22, %v457_v34  ;;  %v474_v40 = vadd.f32 %v470_v27, %v458_v35  ;;  %v628_v18 = vmul.f32 %v886_v6, %v610_v5  ;;  %v598_v21 = vrot.slane %v594_v9, 4 }
  0x2e   : > { %v599_v22 = vrot.slane %v595_v10, 4  ;;  %v643_v24 = vmul.f32 %v887_v11, %v609_v4  ;;  %v644_v25 = vmul.f32 %v887_v11, %v610_v5  ;;  %v617_v28 = vmul.f32 %v885_v16, %v609_v4 }
  0x2f   : > { %v489_v47 = vadd.f32 %v485_v29, %v473_v39  ;;  %v490_v48 = vadd.f32 %v486_v30, %v474_v40  ;;  %v618_v29 = vmul.f32 %v885_v16, %v610_v5  ;;  %v889_v30 = vld [vmem:[%s1111_s1 + $0x18] ss:$0 sm:$0xff]  ;;  %v631_v31 = vrot.slane %v627_v17, 1 }
  0x30   : > { %v632_v32 = vrot.slane %v628_v18, 1  ;;  %v659_v35 = vmul.f32 %v888_v23, %v609_v4  ;;  %v660_v36 = vmul.f32 %v888_v23, %v610_v5  ;;  %v647_v37 = vrot.slane %v643_v24, 2 }
  0x31   : > { %v505_v53 = vadd.f32 %v501_v41, %v489_v47  ;;  %v506_v54 = vadd.f32 %v502_v42, %v490_v48  ;;  %v648_v38 = vrot.slane %v644_v25, 2  ;;  %v675_v41 = vmul.f32 %v889_v30, %v609_v4 }
  0x32   : > { %v676_v42 = vmul.f32 %v889_v30, %v610_v5  ;;  %v663_v45 = vrot.slane %v659_v35, 3  ;;  %v664_v46 = vrot.slane %v660_v36, 3 }
  0x33   : > { %v521_v62 = vadd.f32 %v517_v44, %v505_v53  ;;  %v522_v63 = vadd.f32 %v518_v49, %v506_v54  ;;  %v679_v49 = vrot.slane %v675_v41, 4  ;;  %v890_v53 = vld [vmem:[%s1112_s2] ss:$0 sm:$0xff] }
  0x34   : > { %v680_v50 = vrot.slane %v676_v42, 4 }
  0x35   : > { %v538_v7 = vadd.f32 %v536_v55, %v521_v62  ;;  %v539_v8 = vadd.f32 %v537_v56, %v522_v63  ;;  %v891_v56 = vld [vmem:[%s1113_s3] ss:$0 sm:$0xff] }
  0x37   : > { %v554_v12 = vadd.f32 %v550_v60, %v538_v7  ;;  %v555_v13 = vadd.f32 %v551_v0, %v539_v8 }
  0x39   : > { %v570_v19 = vadd.f32 %v566_v2, %v554_v12  ;;  %v571_v20 = vadd.f32 %v567_v3, %v555_v13 }
  0x3b   : > { %v586_v26 = vadd.f32 %v582_v14, %v570_v19  ;;  %v587_v27 = vadd.f32 %v583_v15, %v571_v20 }
  0x3d   : > { %v602_v33 = vadd.f32 %v598_v21, %v586_v26  ;;  %v603_v34 = vadd.f32 %v599_v22, %v587_v27 }
  0x3f   : > { %v619_v39 = vadd.f32 %v617_v28, %v602_v33  ;;  %v620_v40 = vadd.f32 %v618_v29, %v603_v34 }
  0x41   : > { %v635_v43 = vadd.f32 %v631_v31, %v619_v39  ;;  %v636_v44 = vadd.f32 %v632_v32, %v620_v40 }
  0x43   : > { %v651_v47 = vadd.f32 %v647_v37, %v635_v43  ;;  %v652_v48 = vadd.f32 %v648_v38, %v636_v44 }
  0x45   : > { %v667_v51 = vadd.f32 %v663_v45, %v651_v47  ;;  %v668_v52 = vadd.f32 %v664_v46, %v652_v48 }
  0x47   : > { %v683_v54 = vadd.f32 %v679_v49, %v667_v51  ;;  %v684_v55 = vadd.f32 %v680_v50, %v668_v52 }
  0x49   : > { %v692_v57 = vmul.f32 %v890_v53, %v683_v54  ;;  %v693_v58 = vmul.f32 %v890_v53, %v684_v55 }
  0x4b   : > { %v701_v59 = vadd.f32 %v891_v56, %v692_v57  ;;  %v702_v60 = vadd.f32 %v891_v56, %v693_v58 }
  0x4d   : > { %v703_v61 = vpack.c.bf16 %v701_v59, %v701_v59  ;;  %v704_v62 = vpack.c.bf16 %v702_v60, %v702_v60  ;;  %v709_v63 = vsel %vm708_vm0, %v701_v59, 0.0  ;;  %v710_v0 = vsel %vm708_vm0, %v702_v60, 0.0 }
  0x4e   : > { %v711_v1 = vadd.f32 %v710_v0, %v709_v63 }
  0x4f   : > { %706 = vst.msk [vmem:[%s250_s17] sm:$0x1] %vm705_vm1, %v703_v61  ;;  %707 = vst.msk [vmem:[%s250_s17 + $0x1] sm:$0x1] %vm705_vm1, %v704_v62 }
  0x50   : > { %v712_v2 = vsel %vm708_vm0, %v711_v1, 0.0 }
  0x51   : > { %v713_v3 = vrot.slane %v712_v2, 4 }
  0x53   : > { %v714_v4 = vadd.f32 %v713_v3, %v712_v2 }
  0x55   : > { %v715_v5 = vrot.slane %v714_v4, 2 }
  0x57   : > { %v716_v6 = vadd.f32 %v715_v5, %v714_v4 }
  0x59   : > { %v717_v7 = vrot.slane %v716_v6, 1 }
  0x5b   : > { %v718_v8 = vadd.f32 %v717_v7, %v716_v6 }
  0x5d   : > { %v719_v9 = vmul.f32 0.25, %v718_v8 }
  0x5f   : > { %724 = vst.msk [vmem:[%s254_s24] sm:$0x1] %vm705_vm1, %v719_v9 }
  0x60 PF: > { %s16_s20 = sadd.s32 1, %s941_s20   ;;  %s1116_s18 = smov %s937_s19 }
  0x61   : > { %p13_p5 = scmp.ge.s32.totalorder %s16_s20, 4   ;;  %s1117_s19 = smov %s1119_s21 }
  0x63   :  { %15 = sbr.rel (!%p13_p5) target bundleno = 2 (0x2), region = 91 }

// kernel: _lambda_.19
= control target key start
LH: loop header
LB: loop body
LE: loop exit
PB: predicated region body
PF: predicated region fallthrough
CT: control target
= control target key end

     0   :  { %s1057_s13 = smov 0   ;;  %s1059_s14 = smov 0   ;;  %s1199_s0 = inlined_call_operand.vmem [shape: bf16[2,4,96], index: 0, kind: input, shape index: {}]   ;;  %s1200_s1 = inlined_call_operand.vmem [shape: bf16[96,24], index: 1, kind: input, shape index: {}]   ;;  %s1201_s2 = inlined_call_operand.vmem [shape: f32[1,24], index: 2, kind: input, shape index: {}]   ;;  %s1202_s3 = inlined_call_operand.vmem [shape: f32[1,24], index: 3, kind: input, shape index: {}, may-alias: {3,6}]   ;;  %s1203_s4 = inlined_call_operand.vmem [shape: f32[2,1,96], index: 4, kind: input, shape index: {}]   ;;  %s1204_s5 = inlined_call_operand.vmem [shape: f32[96,24], index: 5, kind: input, shape index: {}]   ;;  %s1205_s6 = inlined_call_operand.vmem [shape: f32[1,24], index: 6, kind: input, shape index: {}, may-alias: {3,6}]   ;;  %s1206_s7 = inlined_call_operand.vmem [shape: f32[24,96], index: 7, kind: input, shape index: {}]   ;;  %s1207_s8 = inlined_call_operand.vmem [shape: f32[1,96], index: 8, kind: input, shape index: {}]   ;;  %s1208_s9 = inlined_call_operand.vmem [shape: bf16[2,4,24], index: 9, kind: input, shape index: {}]   ;;  %s1209_s10 = inlined_call_operand.vmem [shape: bf16[2,4,24], index: 10, kind: output, shape index: {}]  }
   0x1   :  { %s1061_s15 = smov 0  }
   0x2 LB: > { %s32_s16 = sadd.s32 1, %s993_s14  ;;  %p828_p0 = scmp.ge.s32.totalorder %s997_s15, 1  ;;  %s997_s15 = sphi %s1061_s15, %s20_s15   ;;  %s993_s14 = sphi %s1059_s14, %s1211_s14   ;;  %s989_s13 = sphi %s1057_s13, %s1210_s13  }
   0x3   : > { %p34_p1 = scmp.ge.s32.totalorder %s32_s16, 2  ;;  %p352_p2 = scmp.lt.s32.totalorder %s997_s15, 3 }
   0x5   : > { %s1213_s16 = smov (%p34_p1, %s32_s16), 0  ;;  %p353_p3 = pnand %p828_p0, %p352_p2 }
   0x6   : > { %v430_v0 = vld [vmem:[%s1204_s5] sm:$0xff] (!%p353_p3)  ;;  %v431_v1 = vld [vmem:[%s1204_s5 + $0x8] sm:$0xff] (!%p353_p3)  ;;  %v432_v2 = vld [vmem:[%s1204_s5 + $0x10] sm:$0xff] (!%p353_p3)  ;;  %v999_v3 = vmov (!%p353_p3), 0.0|0.0   ;;  %vm1000_vm0 = vmmov (!%p353_p3), 0   ;;  %v1001_v6 = vmov (!%p353_p3), 0.0   ;;  %v603_v37 = vlaneseq (!%p353_p3) }
   0x7   : > { %356 = sbr.rel (%p353_p3) target bundleno = 707 (0x2c3), region = 60  ;;  %921 = vmatprep.subr.bf16.mxu0 (!%p353_p3), %v999_v3  ;;  %v922_v4 = vpack.c.bf16 (!%p353_p3), %v431_v1, %v430_v0  ;;  %v433_v5 = vld [vmem:[%s1204_s5 + $0x18] sm:$0xff] (!%p353_p3)  ;;  %893 = vmatprep.mubr.msk.f32.mxu0 (!%p353_p3), %vm1000_vm0, %v1001_v6  ;;  %v434_v8 = vld [vmem:[%s1204_s5 + $0x20] sm:$0xff] (!%p353_p3)  ;;  %v435_v9 = vld [vmem:[%s1204_s5 + $0x28] sm:$0xff] (!%p353_p3)  ;;  %p404_p4 = scmp.lt.s32.totalorder (!%p353_p3), %s989_s13, 1  ;;  %vm443_vm1 = vcmask (!%p353_p3), 785408  }
   0x8   : > { %905 = vmatprep.subr.bf16.mxu1 (!%p353_p3), %v1001_v6  ;;  %917 = vmatprep.mubr.msk.bf16.mxu1 (!%p353_p3), %vm1000_vm0, %v1001_v6  ;;  %v925_v7 = vpack.c.bf16 (!%p353_p3), %v433_v5, %v432_v2  ;;  %v436_v10 = vld [vmem:[%s1204_s5 + $0x30] sm:$0xff] (!%p353_p3)  ;;  %v437_v11 = vld [vmem:[%s1204_s5 + $0x38] sm:$0xff] (!%p353_p3)  ;;  %v928_v12 = vpack.c.bf16 (!%p353_p3), %v435_v9, %v434_v8  ;;  %v438_v14 = vld [vmem:[%s1204_s5 + $0x40] sm:$0xff] (!%p353_p3)  ;;  %vm522_vm2 = vcmask (!%p353_p3), 195584   ;;  %v604_v42 = vshrl.u32 (!%p353_p3), %v603_v37, 7 }
   0x9   : > { %923 = vmatpush3.bf16.msra.mxu0 (!%p353_p3), %v922_v4  ;;  %v931_v13 = vpack.c.bf16 (!%p353_p3), %v437_v11, %v436_v10  ;;  %v439_v15 = vld [vmem:[%s1204_s5 + $0x48] sm:$0xff] (!%p353_p3)  ;;  %v440_v17 = vld [vmem:[%s1204_s5 + $0x50] sm:$0xff] (!%p353_p3)  ;;  %v441_v18 = vld [vmem:[%s1204_s5 + $0x58] sm:$0xff] (!%p353_p3)  ;;  %vm724_vm3 = vcmask (!%p353_p3), 189440  }
   0xa   : > { %924 = vmatprep.subr.bf16.mxu0 (!%p353_p3), %v999_v3  ;;  %v934_v16 = vpack.c.bf16 (!%p353_p3), %v439_v15, %v438_v14  ;;  %v937_v19 = vpack.c.bf16 (!%p353_p3), %v441_v18, %v440_v17  ;;  %v518_v20 = vld [vmem:[%s1206_s7] sm:$0xff] (!%p353_p3)  ;;  %v519_v21 = vld [vmem:[%s1206_s7 + $0x8] sm:$0xff] (!%p353_p3)  ;;  %v520_v24 = vld [vmem:[%s1206_s7 + $0x10] sm:$0xff] (!%p353_p3)  ;;  %v605_v46 = vsub.s32 (!%p353_p3), 0, %v604_v42 }
   0xb   : > { %v940_v23 = vpack.c.bf16 (!%p353_p3), %v519_v21, %v518_v20  ;;  %v442_v25 = vld [vmem:[%s1205_s6] sm:$0x1] (!%p353_p3)  ;;  %v970_v31 = vld [vmem:[%s1200_s1 + $0x8] sm:$0xff] (!%p353_p3)   ;;  %v971_v32 = vld [vmem:[%s1200_s1 + $0x10] sm:$0xff] (!%p353_p3)  }
   0xc   : > { %v969_v30 = vld [vmem:[%s1200_s1] sm:$0xff] (!%p353_p3)   ;;  %v972_v33 = vld [vmem:[%s1200_s1 + $0x18] sm:$0xff] (!%p353_p3)   ;;  %v974_v35 = vld [vmem:[%s1200_s1 + $0x28] sm:$0xff] (!%p353_p3)  }
   0xd   : > { %926 = vmatpush3.bf16.msra.mxu0 (!%p353_p3), %v925_v7  ;;  %906 = vmatpush3.bf16.msra.mxu1 (!%p353_p3), %v969_v30  ;;  %v973_v34 = vld [vmem:[%s1200_s1 + $0x20] sm:$0xff] (!%p353_p3)  }
   0xe   : > { %927 = vmatprep.subr.bf16.mxu0 %v999_v3  ;;  %s1215_s13 = smov (!%p404_p4, %s989_s13), 1  ;;  %907 = vmatprep.subr.bf16.mxu1 %v1001_v6  ;;  %v521_v36 = vld [vmem:[%s1207_s8] sm:$0x1] }
   0xf   : > { %s413_s27 = scalar_lea.vmem %s1203_s4, %s1215_s13  ;;  %s1169_s18 = sshll.u32 %s1215_s13, 1  ;;  %v841_v58 = vld [vmem:[%s1201_s2] ss:$0 sm:$0xff] }
  0x10   : > { %v429_v22 = vld [vmem:[%s413_s27] sm:$0x1]  ;;  %s410_s21 = scalar_lea.vmem %s1199_s0, %s1169_s18  ;;  %s420_s23 = scalar_lea.vmem %s1208_s9, %s1169_s18 }
  0x11   : > { %929 = vmatpush3.bf16.msra.mxu0 %v928_v12  ;;  %908 = vmatpush3.bf16.msra.mxu1 %v970_v31  ;;  %v600_v44 = vld [vmem:[%s410_s21] sm:$0x3]  ;;  %s427_s30 = scalar_lea.vmem %s1209_s10, %s1169_s18 }
  0x12   : > { %930 = vmatprep.subr.bf16.mxu0 %v999_v3  ;;  %909 = vmatprep.subr.bf16.mxu1 %v1001_v6  ;;  %v602_v48 = vunpack.c.l.bf16 %v600_v44  ;;  %v601_v57 = vld [vmem:[%s420_s23] sm:$0x3] }
  0x13   : > { %v842_v60 = vld [vmem:[%s1202_s3] ss:$0 sm:$0xff]  ;;  %v721_v62 = vunpack.c.l.bf16 %v601_v57 }
  0x15   : > { %932 = vmatpush3.bf16.msra.mxu0 %v931_v13  ;;  %910 = vmatpush3.bf16.msra.mxu1 %v971_v32 }
  0x16   : > { %933 = vmatprep.subr.bf16.mxu0 %v999_v3  ;;  %911 = vmatprep.subr.bf16.mxu1 %v1001_v6 }
  0x19   : > { %935 = vmatpush3.bf16.msra.mxu0 %v934_v16  ;;  %912 = vmatpush3.bf16.msra.mxu1 %v972_v33 }
  0x1a   : > { %936 = vmatprep.subr.bf16.mxu0 %v999_v3  ;;  %913 = vmatprep.subr.bf16.mxu1 %v1001_v6 }
  0x1d   : > { %938 = vmatpush3.bf16.msra.mxu0 %v937_v19  ;;  %914 = vmatpush3.bf16.msra.mxu1 %v973_v34 }
  0x1e   : > { %939 = vmatprep.subr.bf16.mxu0 %v999_v3  ;;  %915 = vmatprep.subr.bf16.mxu1 %v1001_v6 }
  0x20   : > { %894 = vmatmul.mubr.msk.f32.vlgmr.msra.gmra.mrb[0].mxu0 %vm443_vm1, %v429_v22 }
  0x21   : > { %941 = vmatpush3.bf16.msra.mxu0 %v940_v23  ;;  %902 = vmatprep.mubr.msk.f32.mxu0 %vm1000_vm0, %v1001_v6 }
  0x22   : > { %900 = vmatprep.subr.mxu0 %v1001_v6  ;;  %916 = vmatpush3.bf16.msra.mxu1 %v974_v35 }
  0x25   : > { %901 = vmatpush3.msra.mxu0 %v520_v24 }
  0xf3   : > { %v513_v26 = vpop.f32.mrb[0].mxu0 }
  0xf4   : > { %v514_v27 = vadd.f32 %v513_v26, %v442_v25  ;;  %v895_v28 = vpop.f32.mrb[1].mxu0 }
  0xf6   : > { %v517_v29 = vmax.f32 %v514_v27, 0.0 }
  0xf8   : > { %903 = vmatmul.mubr.msk.f32.vlgmr.msra.gmra.mrb[2].mxu0 %vm522_vm2, %v517_v29 }
 0x1cb   : > { %v592_v38 = vpop.f32.mrb[2].mxu0 }
 0x1cc   : > { %v593_v39 = vadd.f32 %v592_v38, %v521_v36  ;;  %v904_v40 = vpop.f32.mrb[3].mxu0 }
 0x1ce   : > { %v596_v41 = vadd.f32 3.0, %v593_v39 }
 0x1d0   : > { %v597_v43 = vmax.f32 %v596_v41, 0.0 }
 0x1d2   : > { %v598_v45 = vmin.f32 %v597_v43, 6.0 }
 0x1d4   : > { %v599_v47 = vmul.f32 0.16666667, %v598_v45 }
 0x1d6   : > { %v606_v49 = vrot.slane %v599_v47, %v605_v46 }
 0x1d8   : > { %v607_v50 = vmul.f32 %v606_v49, %v602_v48 }
 0x1da   : > { %v608_v51 = vadd.f32 3.0, %v607_v50 }
 0x1dc   : > { %v609_v52 = vmax.f32 %v608_v51, 0.0 }
 0x1de   : > { %v610_v53 = vmin.f32 %v609_v52, 6.0 }
 0x1e0   : > { %v611_v54 = vmul.f32 0.16666667, %v610_v53 }
 0x1e2   : > { %v612_v55 = vmul.f32 %v611_v54, %v607_v50 }
 0x1e4   : > { %v613_v56 = vpack.c.bf16 %v612_v55, %v612_v55 }
 0x1e6   : > { %918 = vmatmul.mubr.msk.bf16.vlgmr.msra.gmra.mrb[0].mxu1 %vm443_vm1, %v613_v56 }
 0x2b9   : > { %v699_v59 = vpop.f32.mrb[0].mxu1 }
 0x2ba   : > { %v712_v61 = vmul.f32 %v841_v58, %v699_v59  ;;  %v919_v63 = vpop.f32.mrb[1].mxu1 }
 0x2bb   : > { %v702_v0 = vpop.f32.mrb[2].mxu1 }
 0x2bc   : > { %v720_v1 = vadd.f32 %v842_v60, %v712_v61  ;;  %v920_v2 = vpop.f32.mrb[3].mxu1 }
 0x2be   : > { %v722_v3 = vadd.f32 %v721_v62, %v720_v1 }
 0x2c0   : > { %v723_v4 = vpack.c.bf16 %v722_v3, %v722_v3 }
 0x2c2   : > { %725 = vst.msk [vmem:[%s427_s30] sm:$0x3] %vm724_vm3, %v723_v4 }
 0x2c3 PF: > { %s20_s15 = sadd.s32 1, %s997_s15   ;;  %s1210_s13 = smov %s993_s14 }
 0x2c4   : > { %p17_p5 = scmp.ge.s32.totalorder %s20_s15, 4   ;;  %s1211_s14 = smov %s1213_s16 }
 0x2c6   :  { %19 = sbr.rel (!%p17_p5) target bundleno = 2 (0x2), region = 96 }

// kernel: _lambda_.21
= control target key start
LH: loop header
LB: loop body
LE: loop exit
PB: predicated region body
PF: predicated region fallthrough
CT: control target
= control target key end

     0   :  { %v1588_v8 = vmov 0   ;;  %vm26_vm0 = vcmask 781312   ;;  %vm139_vm1 = vcmask 1041409   ;;  %vm382_vm2 = vcmask 785408   ;;  %s2022_s0 = inlined_call_operand.vmem [shape: bf16[2,4,96], index: 0, kind: input, shape index: {}]   ;;  %s2023_s1 = inlined_call_operand.vmem [shape: bf16[96,1024], index: 1, kind: input, shape index: {}]   ;;  %s2024_s2 = inlined_call_operand.vmem [shape: f32[1,1024], index: 2, kind: input, shape index: {}]   ;;  %s2025_s3 = inlined_call_operand.vmem [shape: bf16[1024,10], index: 3, kind: input, shape index: {}]   ;;  %s2026_s4 = inlined_call_operand.vmem [shape: f32[1,10], index: 4, kind: input, shape index: {}]   ;;  %s2027_s5 = inlined_call_operand.hbm [shape: f32[2,10], index: 5, kind: output, shape index: {}]  }
   0x1   :  { %v45_v0 = vld [vmem:[%s2023_s1] sm:$0xff]  ;;  %v46_v2 = vld [vmem:[%s2023_s1 + $0x8] sm:$0xff]  ;;  %418 = vmatprep.mubr.bf16.mxu0 %v1588_v8  ;;  %459 = vmatprep.mubr.bf16.mxu1 %v1588_v8  ;;  %v47_v56 = vld [vmem:[%s2023_s1 + $0x10] sm:$0xff] }
   0x2   :  { %v49_v1 = vld [vmem:[%s2023_s1 + $0x20] sm:$0xff]  ;;  %v50_v4 = vld [vmem:[%s2023_s1 + $0x28] sm:$0xff]  ;;  %v51_v59 = vld [vmem:[%s2023_s1 + $0x30] sm:$0xff] }
   0x3   :  { %v1294_v3 = vcombine.high %v45_v0, %v49_v1  ;;  %v1293_v5 = vcombine.low %v45_v0, %v49_v1  ;;  %v53_v6 = vld [vmem:[%s2023_s1 + $0x40] sm:$0xff]  ;;  %v1296_v9 = vcombine.high %v46_v2, %v50_v4  ;;  %v1295_v10 = vcombine.low %v46_v2, %v50_v4  ;;  %v54_v12 = vld [vmem:[%s2023_s1 + $0x48] sm:$0xff]  ;;  %v48_v63 = vld [vmem:[%s2023_s1 + $0x18] sm:$0xff] }
   0x4   :  { %v57_v7 = vld [vmem:[%s2023_s1 + $0x60] sm:$0xff]  ;;  %v58_v13 = vld [vmem:[%s2023_s1 + $0x68] sm:$0xff]  ;;  %v52_v0 = vld [vmem:[%s2023_s1 + $0x38] sm:$0xff] }
   0x5   :  { %v1302_v11 = vcombine.high %v53_v6, %v57_v7  ;;  %v61_v14 = vld [vmem:[%s2023_s1 + $0x80] sm:$0xff]  ;;  %386 = vmatprep.subr.bf16.mxu0 %v1294_v3  ;;  %v1304_v15 = vcombine.high %v54_v12, %v58_v13  ;;  %v62_v17 = vld [vmem:[%s2023_s1 + $0x88] sm:$0xff]  ;;  %427 = vmatprep.subr.bf16.mxu1 %v1296_v9  ;;  %v1301_v19 = vcombine.low %v53_v6, %v57_v7 }
   0x6   :  { %v65_v16 = vld [vmem:[%s2023_s1 + $0xa0] sm:$0xff]  ;;  %v66_v18 = vld [vmem:[%s2023_s1 + $0xa8] sm:$0xff]  ;;  %387 = vmatpush1.bf16.msra.mxu0 %v1293_v5  ;;  %428 = vmatpush1.bf16.msra.mxu1 %v1295_v10  ;;  %v1303_v20 = vcombine.low %v54_v12, %v58_v13  ;;  %v1298_v5 = vcombine.high %v47_v56, %v51_v59  ;;  %v1300_v9 = vcombine.high %v48_v63, %v52_v0 }
   0x7   :  { %388 = vmatprep.subr.bf16.mxu0 %v1302_v11  ;;  %v1310_v21 = vcombine.high %v61_v14, %v65_v16  ;;  %429 = vmatprep.subr.bf16.mxu1 %v1304_v15  ;;  %v1312_v22 = vcombine.high %v62_v17, %v66_v18  ;;  %v69_v23 = vld [vmem:[%s2023_s1 + $0xc0] sm:$0xff]  ;;  %v70_v25 = vld [vmem:[%s2023_s1 + $0xc8] sm:$0xff]  ;;  %v1309_v27 = vcombine.low %v61_v14, %v65_v16  ;;  %v55_v14 = vld [vmem:[%s2023_s1 + $0x50] sm:$0xff] }
   0x8   :  { %v73_v24 = vld [vmem:[%s2023_s1 + $0xe0] sm:$0xff]  ;;  %v74_v26 = vld [vmem:[%s2023_s1 + $0xe8] sm:$0xff]  ;;  %v1311_v30 = vcombine.low %v62_v17, %v66_v18  ;;  %v59_v15 = vld [vmem:[%s2023_s1 + $0x70] sm:$0xff] }
   0x9   :  { %v22_v28 = vld [vmem:[%s2022_s0] sm:$0x3]  ;;  %v23_v29 = vld [vmem:[%s2022_s0 + $0x2] sm:$0x3]  ;;  %v1318_v31 = vcombine.high %v69_v23, %v73_v24  ;;  %v1320_v34 = vcombine.high %v70_v25, %v74_v26  ;;  %v78_v37 = vld [vmem:[%s2023_s1 + $0x108] sm:$0xff]  ;;  %v1317_v41 = vcombine.low %v69_v23, %v73_v24  ;;  %v1319_v44 = vcombine.low %v70_v25, %v74_v26 }
   0xa   :  { %389 = vmatpush1.bf16.msra.mxu0 %v1301_v19  ;;  %430 = vmatpush1.bf16.msra.mxu1 %v1303_v20  ;;  %v24_v32 = vunpack.c.l.bf16 %v22_v28  ;;  %v25_v33 = vunpack.c.l.bf16 %v23_v29  ;;  %v77_v35 = vld [vmem:[%s2023_s1 + $0x100] sm:$0xff]  ;;  %v82_v38 = vld [vmem:[%s2023_s1 + $0x128] sm:$0xff]  ;;  %v56_v16 = vld [vmem:[%s2023_s1 + $0x58] sm:$0xff]  ;;  %v1306_v25 = vcombine.high %v55_v14, %v59_v15 }
   0xb   :  { %390 = vmatprep.subr.bf16.mxu0 %v1310_v21  ;;  %431 = vmatprep.subr.bf16.mxu1 %v1312_v22  ;;  %v81_v36 = vld [vmem:[%s2023_s1 + $0x120] sm:$0xff]  ;;  %v1328_v46 = vcombine.high %v78_v37, %v82_v38  ;;  %v86_v51 = vld [vmem:[%s2023_s1 + $0x148] sm:$0xff]  ;;  %v1327_v57 = vcombine.low %v78_v37, %v82_v38  ;;  %v60_v19 = vld [vmem:[%s2023_s1 + $0x78] sm:$0xff]  ;;  %v1297_v21 = vcombine.low %v47_v56, %v51_v59 }
   0xc   :  { %v27_v39 = vsel %vm26_vm0, %v24_v32, 0.0  ;;  %v34_v40 = vsel %vm26_vm0, %v25_v33, 0.0  ;;  %v1326_v45 = vcombine.high %v77_v35, %v81_v36  ;;  %v85_v47 = vld [vmem:[%s2023_s1 + $0x140] sm:$0xff]  ;;  %v90_v52 = vld [vmem:[%s2023_s1 + $0x168] sm:$0xff]  ;;  %v1325_v53 = vcombine.low %v77_v35, %v81_v36  ;;  %v63_v23 = vld [vmem:[%s2023_s1 + $0x90] sm:$0xff] }
   0xd   :  { %v28_v42 = vrot.slane %v27_v39, 4  ;;  %v35_v43 = vrot.slane %v34_v40, 4  ;;  %v89_v48 = vld [vmem:[%s2023_s1 + $0x160] sm:$0xff]  ;;  %v1336_v60 = vcombine.high %v86_v51, %v90_v52  ;;  %v1335_v4 = vcombine.low %v86_v51, %v90_v52  ;;  %v64_v28 = vld [vmem:[%s2023_s1 + $0x98] sm:$0xff]  ;;  %v71_v32 = vld [vmem:[%s2023_s1 + $0xd0] sm:$0xff] }
   0xe   :  { %391 = vmatpush1.bf16.msra.mxu0 %v1309_v27  ;;  %432 = vmatpush1.bf16.msra.mxu1 %v1311_v30  ;;  %v1334_v58 = vcombine.high %v85_v47, %v89_v48  ;;  %v1333_v1 = vcombine.low %v85_v47, %v89_v48  ;;  %v1299_v22 = vcombine.low %v48_v63, %v52_v0  ;;  %v67_v27 = vld [vmem:[%s2023_s1 + $0xb0] sm:$0xff]  ;;  %v68_v29 = vld [vmem:[%s2023_s1 + $0xb8] sm:$0xff]  ;;  %v1504_v63 = vld [vmem:[%s2025_s3 + $0x48] sm:$0xff]  }
   0xf   :  { %392 = vmatprep.subr.bf16.mxu0 %v1318_v31  ;;  %433 = vmatprep.subr.bf16.mxu1 %v1320_v34  ;;  %v29_v49 = vadd.f32 %v28_v42, %v27_v39  ;;  %v36_v50 = vadd.f32 %v35_v43, %v34_v40  ;;  %v1308_v26 = vcombine.high %v56_v16, %v60_v19  ;;  %v75_v33 = vld [vmem:[%s2023_s1 + $0xf0] sm:$0xff]  ;;  %v72_v34 = vld [vmem:[%s2023_s1 + $0xd8] sm:$0xff]  ;;  %v1505_v0 = vld [vmem:[%s2025_s3 + $0xc8] sm:$0xff]  }
  0x10   :  { %v1305_v30 = vcombine.low %v55_v14, %v59_v15  ;;  %v1307_v31 = vcombine.low %v56_v16, %v60_v19  ;;  %v76_v35 = vld [vmem:[%s2023_s1 + $0xf8] sm:$0xff]  ;;  %v1314_v36 = vcombine.high %v63_v23, %v67_v27  ;;  %v1316_v37 = vcombine.high %v64_v28, %v68_v29  ;;  %v79_v40 = vld [vmem:[%s2023_s1 + $0x110] sm:$0xff] }
  0x11   :  { %v30_v54 = vrot.slane %v29_v49, 2  ;;  %v37_v55 = vrot.slane %v36_v50, 2  ;;  %v1313_v38 = vcombine.low %v63_v23, %v67_v27  ;;  %v1315_v39 = vcombine.low %v64_v28, %v68_v29  ;;  %v80_v42 = vld [vmem:[%s2023_s1 + $0x118] sm:$0xff]  ;;  %v87_v47 = vld [vmem:[%s2023_s1 + $0x150] sm:$0xff] }
  0x12   :  { %393 = vmatpush1.bf16.msra.mxu0 %v1317_v41  ;;  %434 = vmatpush1.bf16.msra.mxu1 %v1319_v44  ;;  %v83_v41 = vld [vmem:[%s2023_s1 + $0x130] sm:$0xff]  ;;  %v1322_v43 = vcombine.high %v71_v32, %v75_v33  ;;  %v1324_v44 = vcombine.high %v72_v34, %v76_v35 }
  0x13   :  { %394 = vmatprep.subr.bf16.mxu0 %v1326_v45  ;;  %435 = vmatprep.subr.bf16.mxu1 %v1328_v46  ;;  %v31_v61 = vadd.f32 %v30_v54, %v29_v49  ;;  %v38_v62 = vadd.f32 %v37_v55, %v36_v50  ;;  %v1321_v45 = vcombine.low %v71_v32, %v75_v33  ;;  %v91_v48 = vld [vmem:[%s2023_s1 + $0x170] sm:$0xff]  ;;  %v88_v49 = vld [vmem:[%s2023_s1 + $0x158] sm:$0xff] }
  0x14   :  { %v1323_v46 = vcombine.low %v72_v34, %v76_v35  ;;  %v92_v50 = vld [vmem:[%s2023_s1 + $0x178] sm:$0xff]  ;;  %v1330_v51 = vcombine.high %v79_v40, %v83_v41  ;;  %v1338_v55 = vcombine.high %v87_v47, %v91_v48  ;;  %v1337_v59 = vcombine.low %v87_v47, %v91_v48 }
  0x15   :  { %v32_v2 = vrot.slane %v31_v61, 1  ;;  %v39_v3 = vrot.slane %v38_v62, 1  ;;  %v1340_v56 = vcombine.high %v88_v49, %v92_v50 }
  0x16   :  { %395 = vmatpush1.bf16.msra.mxu0 %v1325_v53  ;;  %436 = vmatpush1.bf16.msra.mxu1 %v1327_v57  ;;  %v1329_v53 = vcombine.low %v79_v40, %v83_v41  ;;  %v1500_v57 = vld [vmem:[%s2025_s3 + $0x40] sm:$0xff]  }
  0x17   :  { %396 = vmatprep.subr.bf16.mxu0 %v1334_v58  ;;  %437 = vmatprep.subr.bf16.mxu1 %v1336_v60  ;;  %v33_v6 = vadd.f32 %v32_v2, %v31_v61  ;;  %v40_v7 = vadd.f32 %v39_v3, %v38_v62  ;;  %v1501_v58 = vld [vmem:[%s2025_s3 + $0xc0] sm:$0xff]   ;;  %v1339_v60 = vcombine.low %v88_v49, %v92_v50  ;;  %v1507_v2 = vld [vmem:[%s2025_s3 + $0x88] sm:$0xff]   ;;  %v1508_v3 = vld [vmem:[%s2025_s3 + $0x50] sm:$0xff]  }
  0x18   :  { %v1502_v61 = vld [vmem:[%s2025_s3] sm:$0xff]  }
  0x19   :  { %v41_v10 = vmul.f32 0.25, %v33_v6  ;;  %v42_v11 = vmul.f32 0.25, %v40_v7  ;;  %v1503_v62 = vld [vmem:[%s2025_s3 + $0x80] sm:$0xff]   ;;  %v1511_v6 = vld [vmem:[%s2025_s3 + $0x90] sm:$0xff]   ;;  %v1512_v7 = vld [vmem:[%s2025_s3 + $0x58] sm:$0xff]  }
  0x1a   :  { %397 = vmatpush1.bf16.msra.mxu0 %v1333_v1  ;;  %438 = vmatpush1.bf16.msra.mxu1 %v1335_v4  ;;  %v1506_v1 = vld [vmem:[%s2025_s3 + $0x8] sm:$0xff]   ;;  %v1509_v4 = vld [vmem:[%s2025_s3 + $0xd0] sm:$0xff]  }
  0x1b   :  { %468 = vmatprep.subr.bf16.mxu0 %v1298_v5  ;;  %v43_v12 = vpack.c.bf16 %v41_v10, %v41_v10  ;;  %v44_v13 = vpack.c.bf16 %v42_v11, %v42_v11  ;;  %509 = vmatprep.subr.bf16.mxu1 %v1300_v9  ;;  %v1510_v5 = vld [vmem:[%s2025_s3 + $0x10] sm:$0xff]   ;;  %v1513_v9 = vld [vmem:[%s2025_s3 + $0xd8] sm:$0xff]  }
  0x1d   :  { %v137_v17 = vunpack.c.l.b16 %v43_v12  ;;  %v138_v18 = vunpack.c.l.b16 %v44_v13 }
  0x1f   :  { %v140_v20 = vsel %vm139_vm1, %v138_v18, %v137_v17 }
  0x20   :  { %v1727_v24 = vpack.c.b16 %v140_v20, %v140_v20 }
  0x22   :  { %1341 = vmatmul.mubr.msk.bf16.vlgmr.msra.gmra.mrb[0].mxu0 %vm382_vm2, %v1727_v24  ;;  %1342 = vmatmul.mubr.msk.bf16.vlgmr.msra.gmra.mrb[0].mxu1 %vm382_vm2, %v1727_v24 }
  0x23   :  { %469 = vmatpush1.bf16.msra.mxu0 %v1297_v21  ;;  %510 = vmatpush1.bf16.msra.mxu1 %v1299_v22 }
  0x24   :  { %470 = vmatprep.subr.bf16.mxu0 %v1306_v25  ;;  %511 = vmatprep.subr.bf16.mxu1 %v1308_v26 }
  0x25   :  { %500 = vmatprep.mubr.bf16.mxu0 %v1588_v8  ;;  %541 = vmatprep.mubr.bf16.mxu1 %v1588_v8  ;;  %v84_v8 = vld [vmem:[%s2023_s1 + $0x138] sm:$0xff] }
  0x26   :  { %v1332_v52 = vcombine.high %v80_v42, %v84_v8  ;;  %v1331_v54 = vcombine.low %v80_v42, %v84_v8 }
  0x27   :  { %471 = vmatpush1.bf16.msra.mxu0 %v1305_v30  ;;  %512 = vmatpush1.bf16.msra.mxu1 %v1307_v31 }
  0x28   :  { %472 = vmatprep.subr.bf16.mxu0 %v1314_v36  ;;  %513 = vmatprep.subr.bf16.mxu1 %v1316_v37 }
  0x2b   :  { %473 = vmatpush1.bf16.msra.mxu0 %v1313_v38  ;;  %514 = vmatpush1.bf16.msra.mxu1 %v1315_v39 }
  0x2c   :  { %474 = vmatprep.subr.bf16.mxu0 %v1322_v43  ;;  %515 = vmatprep.subr.bf16.mxu1 %v1324_v44 }
  0x2f   :  { %475 = vmatpush1.bf16.msra.mxu0 %v1321_v45  ;;  %516 = vmatpush1.bf16.msra.mxu1 %v1323_v46 }
  0x30   :  { %476 = vmatprep.subr.bf16.mxu0 %v1330_v51  ;;  %517 = vmatprep.subr.bf16.mxu1 %v1332_v52 }
  0x33   :  { %477 = vmatpush1.bf16.msra.mxu0 %v1329_v53  ;;  %518 = vmatpush1.bf16.msra.mxu1 %v1331_v54 }
  0x34   :  { %478 = vmatprep.subr.bf16.mxu0 %v1338_v55  ;;  %519 = vmatprep.subr.bf16.mxu1 %v1340_v56 }
  0x37   :  { %479 = vmatpush1.bf16.msra.mxu0 %v1337_v59  ;;  %520 = vmatpush1.bf16.msra.mxu1 %v1339_v60 }
  0x38   :  { %1410 = vmatprep.subr.bf16.mxu0 %v1500_v57  ;;  %1432 = vmatprep.subr.bf16.mxu1 %v1501_v58 }
  0x3a   :  { %1343 = vmatmul.mubr.msk.bf16.vlgmr.msra.gmra.mrb[4].mxu0 %vm382_vm2, %v1727_v24  ;;  %1344 = vmatmul.mubr.msk.bf16.vlgmr.msra.gmra.mrb[4].mxu1 %vm382_vm2, %v1727_v24 }
  0x3b   :  { %1411 = vmatpush3.bf16.msra.mxu0 %v1502_v61  ;;  %1433 = vmatpush3.bf16.msra.mxu1 %v1503_v62 }
  0x3c   :  { %1412 = vmatprep.subr.bf16.mxu0 %v1504_v63  ;;  %1434 = vmatprep.subr.bf16.mxu1 %v1505_v0 }
  0x3f   :  { %1413 = vmatpush3.bf16.msra.mxu0 %v1506_v1  ;;  %1435 = vmatpush3.bf16.msra.mxu1 %v1507_v2 }
  0x40   :  { %1414 = vmatprep.subr.bf16.mxu0 %v1508_v3  ;;  %1436 = vmatprep.subr.bf16.mxu1 %v1509_v4 }
  0x41   :  { %10 = vsyncpa [#allocation3], 0  ;;  %v1514_v10 = vld [vmem:[%s2025_s3 + $0x18] sm:$0xff]   ;;  %v1516_v12 = vld [vmem:[%s2025_s3 + $0x60] sm:$0xff]   ;;  %v95_v30 = vlaneseq  ;;  %vm1277_vm3 = vcmask 74752  }
  0x42   :  { %v1515_v11 = vld [vmem:[%s2025_s3 + $0x98] sm:$0xff]   ;;  %v1517_v13 = vld [vmem:[%s2025_s3 + $0xe0] sm:$0xff]   ;;  %v1520_v16 = vld [vmem:[%s2025_s3 + $0x68] sm:$0xff]  }
  0x43   :  { %1415 = vmatpush3.bf16.msra.mxu0 %v1510_v5  ;;  %1437 = vmatpush3.bf16.msra.mxu1 %v1511_v6  ;;  %v1518_v14 = vld [vmem:[%s2025_s3 + $0x20] sm:$0xff]   ;;  %v1521_v17 = vld [vmem:[%s2025_s3 + $0xe8] sm:$0xff]   ;;  %v1524_v20 = vld [vmem:[%s2025_s3 + $0x70] sm:$0xff]   ;;  %v1886_v31 = vshrl.u32 %v95_v30, 7 }
  0x44   :  { %1416 = vmatprep.subr.bf16.mxu0 %v1512_v7  ;;  %1438 = vmatprep.subr.bf16.mxu1 %v1513_v9  ;;  %v1519_v15 = vld [vmem:[%s2025_s3 + $0xa0] sm:$0xff]   ;;  %v1522_v18 = vld [vmem:[%s2025_s3 + $0x28] sm:$0xff]   ;;  %v1525_v21 = vld [vmem:[%s2025_s3 + $0xf0] sm:$0xff]  }
  0x45   :  { %v1523_v19 = vld [vmem:[%s2025_s3 + $0xa8] sm:$0xff]   ;;  %v1526_v22 = vld [vmem:[%s2025_s3 + $0x30] sm:$0xff]   ;;  %v1528_v24 = vld [vmem:[%s2025_s3 + $0x78] sm:$0xff]   ;;  %v97_v32 = vsub.s32 0, %v1886_v31  ;;  %v105_v33 = vsub.s32 2, %v1886_v31  ;;  %v101_v35 = vsub.s32 1, %v1886_v31 }
  0x46   :  { %v1527_v23 = vld [vmem:[%s2025_s3 + $0xb0] sm:$0xff]   ;;  %v1529_v25 = vld [vmem:[%s2025_s3 + $0xf8] sm:$0xff]   ;;  %v1532_v28 = vld [vmem:[%s2025_s3 + $0x140] sm:$0xff]   ;;  %v109_v36 = vsub.s32 3, %v1886_v31 }
  0x47   :  { %1417 = vmatpush3.bf16.msra.mxu0 %v1514_v10  ;;  %1439 = vmatpush3.bf16.msra.mxu1 %v1515_v11  ;;  %v1530_v26 = vld [vmem:[%s2025_s3 + $0x38] sm:$0xff]   ;;  %v1533_v29 = vld [vmem:[%s2025_s3 + $0x1c0] sm:$0xff]   ;;  %v1543_v30 = vld [vmem:[%s2025_s3 + $0x190] sm:$0xff]  }
  0x48   :  { %1418 = vmatprep.subr.bf16.mxu0 %v1516_v12  ;;  %1440 = vmatprep.subr.bf16.mxu1 %v1517_v13  ;;  %v1531_v27 = vld [vmem:[%s2025_s3 + $0xb8] sm:$0xff]   ;;  %v1893_v34 = vld [vmem:[%s2024_s2] sm:$0xff] }
  0x49   :  { %v98_v37 = vrot.slane %v1893_v34, %v97_v32  ;;  %v106_v38 = vrot.slane %v1893_v34, %v105_v33  ;;  %v102_v39 = vrot.slane %v1893_v34, %v101_v35  ;;  %v110_v40 = vrot.slane %v1893_v34, %v109_v36  ;;  %v1534_v11 = vld [vmem:[%s2025_s3 + $0x100] sm:$0xff]   ;;  %v1545_v32 = vld [vmem:[%s2025_s3 + $0x1d8] sm:$0xff]  }
  0x4a   :  { %v1535_v12 = vld [vmem:[%s2025_s3 + $0x180] sm:$0xff]  }
  0x4b   :  { %1419 = vmatpush3.bf16.msra.mxu0 %v1518_v14  ;;  %1441 = vmatpush3.bf16.msra.mxu1 %v1519_v15  ;;  %v1536_v15 = vld [vmem:[%s2025_s3 + $0x148] sm:$0xff]  }
  0x4c   :  { %1420 = vmatprep.subr.bf16.mxu0 %v1520_v16  ;;  %1442 = vmatprep.subr.bf16.mxu1 %v1521_v17  ;;  %v1537_v16 = vld [vmem:[%s2025_s3 + $0x1c8] sm:$0xff]   ;;  %v113_v17 = vsub.s32 4, %v1886_v31 }
  0x4f   :  { %1421 = vmatpush3.bf16.msra.mxu0 %v1522_v18  ;;  %1443 = vmatpush3.bf16.msra.mxu1 %v1523_v19  ;;  %v121_v18 = vsub.s32 6, %v1886_v31  ;;  %v1538_v19 = vld [vmem:[%s2025_s3 + $0x108] sm:$0xff]  }
  0x50   :  { %1422 = vmatprep.subr.bf16.mxu0 %v1524_v20  ;;  %1444 = vmatprep.subr.bf16.mxu1 %v1525_v21  ;;  %v1539_v20 = vld [vmem:[%s2025_s3 + $0x188] sm:$0xff]   ;;  %v117_v21 = vsub.s32 5, %v1886_v31 }
  0x53   :  { %1423 = vmatpush3.bf16.msra.mxu0 %v1526_v22  ;;  %1445 = vmatpush3.bf16.msra.mxu1 %v1527_v23  ;;  %v125_v22 = vsub.s32 7, %v1886_v31  ;;  %v1540_v23 = vld [vmem:[%s2025_s3 + $0x150] sm:$0xff]   ;;  %v1544_v31 = vld [vmem:[%s2025_s3 + $0x158] sm:$0xff]  }
  0x54   :  { %1424 = vmatprep.subr.bf16.mxu0 %v1528_v24  ;;  %1446 = vmatprep.subr.bf16.mxu1 %v1529_v25  ;;  %v1541_v24 = vld [vmem:[%s2025_s3 + $0x1d0] sm:$0xff]   ;;  %v114_v25 = vrot.slane %v1893_v34, %v113_v17  ;;  %v1562_v17 = vld [vmem:[%s2025_s3 + $0x138] sm:$0xff]  }
  0x57   :  { %1425 = vmatpush3.bf16.msra.mxu0 %v1530_v26  ;;  %1447 = vmatpush3.bf16.msra.mxu1 %v1531_v27  ;;  %v122_v26 = vrot.slane %v1893_v34, %v121_v18  ;;  %v118_v27 = vrot.slane %v1893_v34, %v117_v21  ;;  %v1563_v18 = vld [vmem:[%s2025_s3 + $0x1b8] sm:$0xff]  }
  0x58   :  { %1454 = vmatprep.subr.bf16.mxu0 %v1532_v28  ;;  %1476 = vmatprep.subr.bf16.mxu1 %v1533_v29  ;;  %v126_v28 = vrot.slane %v1893_v34, %v125_v22  ;;  %v1542_v29 = vld [vmem:[%s2025_s3 + $0x110] sm:$0xff]  }
  0xf5   :  { %v420_v41 = vpop.f32.mrb[0].mxu0  ;;  %v461_v42 = vpop.f32.mrb[0].mxu1 }
  0xf6   :  { %v421_v8 = vadd.f32 %v420_v41, %v98_v37  ;;  %v462_v43 = vadd.f32 %v461_v42, %v106_v38  ;;  %v422_v44 = vpop.f32.mrb[1].mxu0  ;;  %v463_v45 = vpop.f32.mrb[1].mxu1  ;;  %v1546_v41 = vld [vmem:[%s2025_s3 + $0x118] sm:$0xff]  }
  0xf7   :  { %v423_v46 = vadd.f32 %v422_v44, %v102_v39  ;;  %v464_v47 = vadd.f32 %v463_v45, %v110_v40  ;;  %v424_v48 = vpop.f32.mrb[2].mxu0  ;;  %v465_v49 = vpop.f32.mrb[2].mxu1  ;;  %v1547_v42 = vld [vmem:[%s2025_s3 + $0x198] sm:$0xff]  }
  0xf8   :  { %v550_v50 = vadd.f32 3.0, %v421_v8  ;;  %v552_v51 = vadd.f32 3.0, %v462_v43  ;;  %v425_v52 = vpop.f32.mrb[3].mxu0  ;;  %v466_v53 = vpop.f32.mrb[3].mxu1  ;;  %v1549_v48 = vld [vmem:[%s2025_s3 + $0x1e0] sm:$0xff]  }
  0xf9   :  { %v551_v54 = vadd.f32 3.0, %v423_v46  ;;  %v553_v55 = vadd.f32 3.0, %v464_v47 }
  0xfa   :  { %v558_v56 = vmax.f32 %v550_v50, 0.0  ;;  %v560_v57 = vmax.f32 %v552_v51, 0.0 }
  0xfb   :  { %v559_v58 = vmax.f32 %v551_v54, 0.0  ;;  %v561_v59 = vmax.f32 %v553_v55, 0.0  ;;  %v1550_v54 = vld [vmem:[%s2025_s3 + $0x120] sm:$0xff]  }
  0xfc   :  { %v566_v60 = vmin.f32 %v558_v56, 6.0  ;;  %v568_v61 = vmin.f32 %v560_v57, 6.0  ;;  %v1551_v55 = vld [vmem:[%s2025_s3 + $0x1a0] sm:$0xff]  }
  0xfd   :  { %v567_v62 = vmin.f32 %v559_v58, 6.0  ;;  %v569_v63 = vmin.f32 %v561_v59, 6.0  ;;  %v1552_v58 = vld [vmem:[%s2025_s3 + $0x168] sm:$0xff]  }
  0xfe   :  { %v574_v0 = vmul.f32 0.16666667, %v566_v60  ;;  %v576_v1 = vmul.f32 0.16666667, %v568_v61  ;;  %v1553_v59 = vld [vmem:[%s2025_s3 + $0x1e8] sm:$0xff]  }
  0xff   :  { %v575_v2 = vmul.f32 0.16666667, %v567_v62  ;;  %v577_v3 = vmul.f32 0.16666667, %v569_v63 }
 0x100   :  { %v582_v4 = vmul.f32 %v574_v0, %v421_v8  ;;  %v584_v5 = vmul.f32 %v576_v1, %v462_v43  ;;  %v1554_v0 = vld [vmem:[%s2025_s3 + $0x128] sm:$0xff]  }
 0x101   :  { %v583_v6 = vmul.f32 %v575_v2, %v423_v46  ;;  %v585_v7 = vmul.f32 %v577_v3, %v464_v47  ;;  %v1548_v47 = vld [vmem:[%s2025_s3 + $0x160] sm:$0xff]   ;;  %v1555_v1 = vld [vmem:[%s2025_s3 + $0x1a8] sm:$0xff]  }
 0x102   :  { %v590_v13 = vpack.c.bf16 %v582_v4, %v582_v4  ;;  %v592_v14 = vpack.c.bf16 %v584_v5, %v584_v5  ;;  %v1556_v4 = vld [vmem:[%s2025_s3 + $0x170] sm:$0xff]  }
 0x103   :  { %v591_v9 = vpack.c.bf16 %v583_v6, %v583_v6  ;;  %v593_v10 = vpack.c.bf16 %v585_v7, %v585_v7  ;;  %v1557_v5 = vld [vmem:[%s2025_s3 + $0x1f0] sm:$0xff]  }
 0x105   :  { %1149 = vmatprep.mubr.bf16.mxu0 %v591_v9  ;;  %1189 = vmatprep.mubr.bf16.mxu1 %v593_v10 }
 0x106   :  { %1150 = vmatmul.mubr.bf16.vlgmr.msra.gmra.mrb[8].mxu0 %v590_v13  ;;  %1190 = vmatmul.mubr.bf16.vlgmr.msra.gmra.mrb[8].mxu1 %v592_v14 }
 0x107   :  { %1455 = vmatpush3.bf16.msra.mxu0 %v1534_v11  ;;  %1477 = vmatpush3.bf16.msra.mxu1 %v1535_v12  ;;  %v1558_v11 = vld [vmem:[%s2025_s3 + $0x130] sm:$0xff]  }
 0x108   :  { %1456 = vmatprep.subr.bf16.mxu0 %v1536_v15  ;;  %1478 = vmatprep.subr.bf16.mxu1 %v1537_v16  ;;  %v1559_v12 = vld [vmem:[%s2025_s3 + $0x1b0] sm:$0xff]   ;;  %v1560_v15 = vld [vmem:[%s2025_s3 + $0x178] sm:$0xff]  }
 0x109   :  { %v1561_v16 = vld [vmem:[%s2025_s3 + $0x1f8] sm:$0xff]   ;;  %s1589_s3 = smov [#allocation2]  }
 0x10b   :  { %1457 = vmatpush3.bf16.msra.mxu0 %v1538_v19  ;;  %1479 = vmatpush3.bf16.msra.mxu1 %v1539_v20 }
 0x10c   :  { %1458 = vmatprep.subr.bf16.mxu0 %v1540_v23  ;;  %1480 = vmatprep.subr.bf16.mxu1 %v1541_v24 }
 0x10d   :  { %v502_v33 = vpop.f32.mrb[4].mxu0  ;;  %v543_v34 = vpop.f32.mrb[4].mxu1 }
 0x10e   :  { %v1945_v35 = vadd.f32 %v502_v33, %v114_v25  ;;  %v1947_v36 = vadd.f32 %v543_v34, %v122_v26  ;;  %v504_v37 = vpop.f32.mrb[5].mxu0  ;;  %v545_v38 = vpop.f32.mrb[5].mxu1  ;;  %v1345_v25 = vld [vmem:[%s2026_s4] ss:$0 sm:$0xff]  ;;  %s1285_s4 = sshll.u32 %s1589_s3, 4  ;;  %s1286_s4 = int_to_ptr.vmem [resolvable:$true] %s1285_s4 }
 0x10f   :  { %v505_v39 = vadd.f32 %v504_v37, %v118_v27  ;;  %v546_v40 = vadd.f32 %v545_v38, %v126_v28  ;;  %1459 = vmatpush3.bf16.msra.mxu0 %v1542_v29  ;;  %1481 = vmatpush3.bf16.msra.mxu1 %v1543_v30  ;;  %v506_v8 = vpop.f32.mrb[6].mxu0  ;;  %v547_v43 = vpop.f32.mrb[6].mxu1  ;;  %s1564_s0 = scalar_lea.vmem %s1286_s4, 32  ;;  %p1569_p1 = scmp.lt.s32.totalorder %s1286_s4, %s1286_s4 }
 0x110   :  { %v554_v44 = vadd.f32 3.0, %v1945_v35  ;;  %v556_v45 = vadd.f32 3.0, %v1947_v36  ;;  %1460 = vmatprep.subr.bf16.mxu0 %v1544_v31  ;;  %1482 = vmatprep.subr.bf16.mxu1 %v1545_v32  ;;  %v507_v46 = vpop.f32.mrb[7].mxu0  ;;  %v548_v49 = vpop.f32.mrb[7].mxu1  ;;  %p1565_p0 = scmp.ne.s32.totalorder %s1286_s4, %s1564_s0  ;;  %p1570_p2 = scmp.lt.s32.totalorder %s1564_s0, %s1564_s0 }
 0x111   :  { %v555_v50 = vadd.f32 3.0, %v505_v39  ;;  %v557_v51 = vadd.f32 3.0, %v546_v40 }
 0x112   :  { %v562_v56 = vmax.f32 %v554_v44, 0.0  ;;  %v564_v57 = vmax.f32 %v556_v45, 0.0  ;;  %p1571_p3 = por %p1570_p2, %p1569_p1 }
 0x113   :  { %v563_v52 = vmax.f32 %v555_v50, 0.0  ;;  %v565_v53 = vmax.f32 %v557_v51, 0.0  ;;  %1461 = vmatpush3.bf16.msra.mxu0 %v1546_v41  ;;  %1483 = vmatpush3.bf16.msra.mxu1 %v1547_v42 }
 0x114   :  { %1462 = vmatprep.subr.bf16.mxu0 %v1548_v47  ;;  %1484 = vmatprep.subr.bf16.mxu1 %v1549_v48  ;;  %v570_v2 = vmin.f32 %v562_v56, 6.0  ;;  %v572_v3 = vmin.f32 %v564_v57, 6.0  ;;  %p1572_p4 = pnand %p1571_p3, %p1565_p0 }
 0x115   :  { %v571_v60 = vmin.f32 %v563_v52, 6.0  ;;  %v573_v61 = vmin.f32 %v565_v53, 6.0 }
 0x116   :  { %v578_v13 = vmul.f32 0.16666667, %v570_v2  ;;  %v580_v14 = vmul.f32 0.16666667, %v572_v3 }
 0x117   :  { %v579_v62 = vmul.f32 0.16666667, %v571_v60  ;;  %v581_v63 = vmul.f32 0.16666667, %v573_v61  ;;  %1463 = vmatpush3.bf16.msra.mxu0 %v1550_v54  ;;  %1485 = vmatpush3.bf16.msra.mxu1 %v1551_v55 }
 0x118   :  { %1464 = vmatprep.subr.bf16.mxu0 %v1552_v58  ;;  %1486 = vmatprep.subr.bf16.mxu1 %v1553_v59  ;;  %v586_v19 = vmul.f32 %v578_v13, %v1945_v35  ;;  %v588_v20 = vmul.f32 %v580_v14, %v1947_v36 }
 0x119   :  { %v587_v6 = vmul.f32 %v579_v62, %v505_v39  ;;  %v589_v7 = vmul.f32 %v581_v63, %v546_v40 }
 0x11a   :  { %v594_v21 = vpack.c.bf16 %v586_v19, %v586_v19  ;;  %v596_v22 = vpack.c.bf16 %v588_v20, %v588_v20 }
 0x11b   :  { %v595_v9 = vpack.c.bf16 %v587_v6, %v587_v6  ;;  %v597_v10 = vpack.c.bf16 %v589_v7, %v589_v7  ;;  %1465 = vmatpush3.bf16.msra.mxu0 %v1554_v0  ;;  %1487 = vmatpush3.bf16.msra.mxu1 %v1555_v1 }
 0x11c   :  { %1466 = vmatprep.subr.bf16.mxu0 %v1556_v4  ;;  %1488 = vmatprep.subr.bf16.mxu1 %v1557_v5 }
 0x11d   :  { %1229 = vmatprep.mubr.bf16.mxu0 %v595_v9  ;;  %1269 = vmatprep.mubr.bf16.mxu1 %v597_v10 }
 0x11f   :  { %1467 = vmatpush3.bf16.msra.mxu0 %v1558_v11  ;;  %1489 = vmatpush3.bf16.msra.mxu1 %v1559_v12 }
 0x120   :  { %1468 = vmatprep.subr.bf16.mxu0 %v1560_v15  ;;  %1490 = vmatprep.subr.bf16.mxu1 %v1561_v16 }
 0x123   :  { %1469 = vmatpush3.bf16.msra.mxu0 %v1562_v17  ;;  %1491 = vmatpush3.bf16.msra.mxu1 %v1563_v18 }
 0x126   :  { %1230 = vmatmul.mubr.bf16.vlgmr.msra.gmra.mrb[12].mxu0 %v594_v21  ;;  %1270 = vmatmul.mubr.bf16.vlgmr.msra.gmra.mrb[12].mxu1 %v596_v22 }
 0x1d9   :  { %v1426_v23 = vpop.f32.mrb[8].mxu0  ;;  %v1448_v24 = vpop.f32.mrb[8].mxu1 }
 0x1da   :  { %v1427_v26 = vpop.f32.mrb[9].mxu0  ;;  %v1449_v27 = vpop.f32.mrb[9].mxu1 }
 0x1db   :  { %v1428_v28 = vadd.f32 %v1427_v26, %v1426_v23  ;;  %v1450_v29 = vadd.f32 %v1449_v27, %v1448_v24  ;;  %v1429_v30 = vpop.f32.mrb[10].mxu0  ;;  %v1451_v31 = vpop.f32.mrb[10].mxu1 }
 0x1dc   :  { %v1430_v32 = vpop.f32.mrb[11].mxu0  ;;  %v1452_v33 = vpop.f32.mrb[11].mxu1 }
 0x1dd   :  { %v1152_v34 = vadd.f32 %v1428_v28, %v1345_v25 }
 0x1df   :  { %v1192_v35 = vadd.f32 %v1450_v29, %v1152_v34 }
 0x1f9   :  { %v1470_v36 = vpop.f32.mrb[12].mxu0  ;;  %v1492_v37 = vpop.f32.mrb[12].mxu1 }
 0x1fa   :  { %v1471_v38 = vpop.f32.mrb[13].mxu0  ;;  %v1493_v39 = vpop.f32.mrb[13].mxu1 }
 0x1fb   :  { %v1472_v40 = vadd.f32 %v1471_v38, %v1470_v36  ;;  %v1494_v41 = vadd.f32 %v1493_v39, %v1492_v37  ;;  %v1473_v42 = vpop.f32.mrb[14].mxu0  ;;  %v1495_v8 = vpop.f32.mrb[14].mxu1 }
 0x1fc   :  { %v1474_v43 = vpop.f32.mrb[15].mxu0  ;;  %v1496_v44 = vpop.f32.mrb[15].mxu1 }
 0x1fd   :  { %v1232_v45 = vadd.f32 %v1472_v40, %v1192_v35 }
 0x1ff   :  { %v1272_v46 = vadd.f32 %v1494_v41, %v1232_v45 }
 0x201   :  { %1278 = vst.msk [vmem:[#allocation2] sm:$0x3] %vm1277_vm3, %v1272_v46 }
 0x202   :  { %1575 = shalt.err (!%p1572_p4)
}
 0x203   :  { %s1576_s12 = scalar_lea.hbm %s2027_s5, 32 }
 0x204   :  { %p1577_p5 = scmp.ne.s32.totalorder %s2027_s5, %s1576_s12  ;;  %p1580_p6 = scmp.lt.u32.totalorder %s1576_s12, %s2027_s5 }
 0x206   :  { %p1582_p7 = pnand %p1580_p6, %p1577_p5 }
 0x208   :  { %1585 = shalt.err (!%p1582_p7)
}
 0x209   :  { %1288 = dma.vmem_to_hbm [thread:$0]  %s1286_s4, 32, %s2027_s5, [#allocation3]  }
 0x20a   :  { %1586 = dma.done.wait [#allocation3], 32  }
 0x20b   :  { %1587 = vsyncadd [#allocation3], 4294967264 }
 0x20c   :  { %1292 = vsyncpa [#allocation3], 1 }

</bundles_post_ra>
